<compile_context>
chip_gen: v5e
topology: v5e:2x2
jax: 0.10.0
libtpu: 0.0.40
codegen_flags: <defaults>
</compile_context>

<pallas_src>
import functools

import jax
import jax.numpy as jnp
from jax.experimental import pallas as pl
from jax.experimental.pallas import tpu as pltpu


# --------------------------------------------------------------------------
# helpers
# --------------------------------------------------------------------------

def _pick_tile(dim, tile, step):
    """Largest multiple of `step` <= `tile` that divides `dim`; else `dim` (full)."""
    t = min(tile, dim)
    t -= t % step
    while t >= step:
        if dim % t == 0:
            return t
        t -= step
    return dim


@functools.lru_cache(maxsize=1)
def _vmem_limit_bytes():
    # Size the scoped-VMEM limit from the actual chip so the same tiles compile
    # on v5e/v6e (128 MiB) and v7x (64 MiB).
    cap = 64 * 1024 * 1024
    try:
        info = pltpu.get_tpu_info()
        cap = int(getattr(info, "vmem_capacity_bytes", cap))
    except Exception:
        pass
    return int(min(cap * 3 // 4, 100 * 1024 * 1024))


def _cparams(dimension_semantics):
    return pltpu.CompilerParams(dimension_semantics=dimension_semantics,
                                vmem_limit_bytes=_vmem_limit_bytes())


# --------------------------------------------------------------------------
# RMSNorm (row tiled, f32 statistics)
# --------------------------------------------------------------------------

def _rmsnorm_kernel(x_ref, w_ref, o_ref, *, eps):
    h = x_ref[...].astype(jnp.float32)
    var = jnp.mean(h * h, axis=-1, keepdims=True)
    n = h * jax.lax.rsqrt(var + eps)
    o_ref[...] = (n * w_ref[...].astype(jnp.float32)).astype(o_ref.dtype)


def _rmsnorm_add_kernel(x_ref, r_ref, w_ref, o_ref, res_ref, *, eps):
    h = x_ref[...].astype(jnp.float32) + r_ref[...].astype(jnp.float32)
    var = jnp.mean(h * h, axis=-1, keepdims=True)
    n = h * jax.lax.rsqrt(var + eps)
    o_ref[...] = (n * w_ref[...].astype(jnp.float32)).astype(o_ref.dtype)
    res_ref[...] = h.astype(res_ref.dtype)


def rmsnorm(x, residual, weight, eps=1e-6, *, tm=512):
    T, Hd = x.shape
    tm = _pick_tile(T, tm, 16)
    grid = (T // tm,)
    w2 = weight.reshape(1, Hd)
    row = pl.BlockSpec((tm, Hd), lambda i: (i, 0))
    wspec = pl.BlockSpec((1, Hd), lambda i: (0, 0))
    params = _cparams(("parallel",))
    if residual is None:
        out = pl.pallas_call(
            functools.partial(_rmsnorm_kernel, eps=eps),
            grid=grid,
            in_specs=[row, wspec],
            out_specs=row,
            out_shape=jax.ShapeDtypeStruct((T, Hd), x.dtype),
            compiler_params=params,
        )(x, w2)
        return out, x
    out, new_res = pl.pallas_call(
        functools.partial(_rmsnorm_add_kernel, eps=eps),
        grid=grid,
        in_specs=[row, row, wspec],
        out_specs=[row, row],
        out_shape=[jax.ShapeDtypeStruct((T, Hd), x.dtype),
                   jax.ShapeDtypeStruct((T, Hd), x.dtype)],
        compiler_params=params,
    )(x, residual, w2)
    return out, new_res


# --------------------------------------------------------------------------
# Tiled matmul with f32 accumulator (all dense projections + lm_head)
# --------------------------------------------------------------------------

def _matmul_kernel(x_ref, w_ref, o_ref, acc_ref):
    @pl.when(pl.program_id(2) == 0)
    def _():
        acc_ref[...] = jnp.zeros_like(acc_ref)

    acc_ref[...] += jnp.dot(x_ref[...], w_ref[...],
                            preferred_element_type=jnp.float32)

    @pl.when(pl.program_id(2) == pl.num_programs(2) - 1)
    def _():
        o_ref[...] = acc_ref[...].astype(o_ref.dtype)


def matmul(x, w, *, tm=512, tn=1024, tk=512):
    # x: [M, K], w: [K, N]  (nn.Linear weight stored pre-transposed [in, out]).
    M, K = x.shape
    K2, N = w.shape
    assert K == K2
    tm = _pick_tile(M, tm, 16)
    tk = _pick_tile(K, tk, 128)
    # Lane-dense output tiles.  If N has no large multiple-of-128 divisor
    # (e.g. vocab=32000) pad N so wide tiles stay possible.  In a real server
    # the lm_head weight would be padded once at load time.
    tn_eff = _pick_tile(N, tn, 128)
    n_pad = 0
    if tn_eff < 512 and N > 512:
        tn_eff = min(tn, 512)
        n_pad = (-N) % tn_eff
        w = jnp.pad(w, ((0, 0), (0, n_pad)))
    Np = N + n_pad
    grid = (M // tm, Np // tn_eff, K // tk)
    out = pl.pallas_call(
        _matmul_kernel,
        grid=grid,
        in_specs=[pl.BlockSpec((tm, tk), lambda i, j, k: (i, k)),
                  pl.BlockSpec((tk, tn_eff), lambda i, j, k: (k, j))],
        out_specs=pl.BlockSpec((tm, tn_eff), lambda i, j, k: (i, j)),
        out_shape=jax.ShapeDtypeStruct((M, Np), x.dtype),
        scratch_shapes=[pltpu.VMEM((tm, tn_eff), jnp.float32)],
        compiler_params=_cparams(("parallel", "parallel", "arbitrary")),
    )(x, w)
    return out[:, :N] if n_pad else out


# --------------------------------------------------------------------------
# Flash attention with fused RoPE
#   * causal + sliding window, GQA group per grid step, KV tiled
#   * q/k/v column blocks read straight out of the fused qkv buffer
#   * K/V (and cos/sin_k) index maps clamped to the live band -> no DMA for
#     pruned tiles; pl.when skips their compute
#   * separate un-masked fast path for fully-interior tiles
# --------------------------------------------------------------------------

def _flash_attn_kernel(q_ref, k_ref, v_ref, cq_ref, sq_ref, ck_ref, sk_ref,
                       o_ref, acc_ref, m_ref, l_ref,
                       *, scale, window, groups, head_dim, tq, tkv):
    i = pl.program_id(1)
    ki = pl.program_id(2)
    nk = pl.num_programs(2)

    @pl.when(ki == 0)
    def _init():
        m_ref[...] = jnp.full_like(m_ref, -jnp.inf)
        l_ref[...] = jnp.zeros_like(l_ref)
        acc_ref[...] = jnp.zeros_like(acc_ref)

    q_start = i * tq
    kv_start = ki * tkv
    # Tile-level liveness (causal future / outside sliding window -> dead).
    live = kv_start <= q_start + (tq - 1)
    if window > 0:
        live = jnp.logical_and(live, kv_start + (tkv - 1) > q_start - window)
    # Fully-interior tiles need no masking at all.
    interior = kv_start + (tkv - 1) <= q_start
    if window > 0:
        interior = jnp.logical_and(interior,
                                   (q_start + tq - 1) - kv_start < window)

    d2 = head_dim // 2

    def compute(use_mask):
        # Fused RoPE on the K tile (shared by the whole GQA group).
        kf = k_ref[...].astype(jnp.float32)
        k = (kf * ck_ref[...] +
             pltpu.roll(kf, shift=d2, axis=1) * sk_ref[...]).astype(k_ref.dtype)
        v = v_ref[...]
        if use_mask:
            ii = q_start + jax.lax.broadcasted_iota(jnp.int32, (tq, tkv), 0)
            jj = kv_start + jax.lax.broadcasted_iota(jnp.int32, (tq, tkv), 1)
            mask = jj <= ii                               # causal
            if window > 0:                                # Mistral sliding window
                mask = jnp.logical_and(mask, (ii - jj) < window)
        q_all = q_ref[...]
        cq = cq_ref[...]
        sq = sq_ref[...]
        for g in range(groups):                           # static unroll (GQA group)
            lo, hi = g * head_dim, (g + 1) * head_dim
            qg = q_all[:, lo:hi].astype(jnp.float32)
            qg = (qg * cq + pltpu.roll(qg, shift=d2, axis=1) * sq
                  ).astype(q_all.dtype)                   # fused RoPE on q
            s = jax.lax.dot_general(qg, k, (((1,), (1,)), ((), ())),
                                    preferred_element_type=jnp.float32) * scale
            if use_mask:
                s = jnp.where(mask, s, -1e30)
            m_prev = m_ref[g]                             # (tq, 1)
            m_new = jnp.maximum(m_prev, jnp.max(s, axis=-1, keepdims=True))
            alpha = jnp.exp(m_prev - m_new)
            p = jnp.exp(s - m_new)
            l_ref[g] = alpha * l_ref[g] + jnp.sum(p, axis=-1, keepdims=True)
            pv = jax.lax.dot_general(p.astype(v.dtype), v, (((1,), (0,)), ((), ())),
                                     preferred_element_type=jnp.float32)
            acc_ref[:, lo:hi] = alpha * acc_ref[:, lo:hi] + pv
            m_ref[g] = m_new

    @pl.when(jnp.logical_and(live, jnp.logical_not(interior)))
    def _masked():
        compute(True)

    @pl.when(interior)
    def _interior():
        compute(False)

    @pl.when(ki == nk - 1)
    def _finalize():
        outs = []
        for g in range(groups):
            lo, hi = g * head_dim, (g + 1) * head_dim
            outs.append(acc_ref[:, lo:hi] / l_ref[g])      # exact reciprocal
        o_ref[...] = jnp.concatenate(outs, axis=1).astype(o_ref.dtype)


def attention(qkv, cos, sin_signed, *, num_heads, num_kv_heads, head_dim,
              scale, window, tq=256, tkv=256):
    # qkv: [T, (H + 2*KVH)*D] token-major fused projection output.
    # cos / sin_signed: [T, D] f32 (rotate-half sign folded into sin).
    T = qkv.shape[0]
    D = head_dim
    groups = num_heads // num_kv_heads
    gD = groups * D
    tq = _pick_tile(T, tq, 16)
    tkv = _pick_tile(T, tkv, 16)

    def kv_row(i, j):
        # Clamp dead tiles onto the live band so no DMA is issued for them.
        hi = (i * tq + tq - 1) // tkv                  # last causally-live kv tile
        jc = jnp.minimum(j, hi)
        if window > 0:
            lo = jnp.maximum((i * tq - window) // tkv, 0)
            jc = jnp.maximum(jc, lo)
        return jc

    kernel = functools.partial(
        _flash_attn_kernel, scale=scale, window=window, groups=groups,
        head_dim=D, tq=tq, tkv=tkv)

    in_specs = [
        pl.BlockSpec((tq, gD), lambda h, i, j: (i, h)),                      # q
        pl.BlockSpec((tkv, D), lambda h, i, j: (kv_row(i, j), num_heads + h)),  # k
        pl.BlockSpec((tkv, D),
                     lambda h, i, j: (kv_row(i, j), num_heads + num_kv_heads + h)),  # v
        pl.BlockSpec((tq, D), lambda h, i, j: (i, 0)),                       # cos_q
        pl.BlockSpec((tq, D), lambda h, i, j: (i, 0)),                       # sin_q
        pl.BlockSpec((tkv, D), lambda h, i, j: (kv_row(i, j), 0)),           # cos_k
        pl.BlockSpec((tkv, D), lambda h, i, j: (kv_row(i, j), 0)),           # sin_k
    ]
    return pl.pallas_call(
        kernel,
        grid=(num_kv_heads, T // tq, T // tkv),
        in_specs=in_specs,
        out_specs=pl.BlockSpec((tq, gD), lambda h, i, j: (i, h)),
        out_shape=jax.ShapeDtypeStruct((T, num_heads * D), qkv.dtype),
        scratch_shapes=[pltpu.VMEM((tq, gD), jnp.float32),
                        pltpu.VMEM((groups, tq, 1), jnp.float32),
                        pltpu.VMEM((groups, tq, 1), jnp.float32)],
        compiler_params=_cparams(("parallel", "parallel", "arbitrary")),
    )(qkv, qkv, qkv, cos, sin_signed, cos, sin_signed)


# --------------------------------------------------------------------------
# SiLU MLP, tiled over (rows, intermediate) with f32 down-proj accumulator
# --------------------------------------------------------------------------

def _mlp_kernel(x_ref, wg_ref, wu_ref, wd_ref, o_ref, acc_ref):
    j = pl.program_id(1)

    @pl.when(j == 0)
    def _():
        acc_ref[...] = jnp.zeros_like(acc_ref)

    x = x_ref[...]
    g = jnp.dot(x, wg_ref[...], preferred_element_type=jnp.float32)
    u = jnp.dot(x, wu_ref[...], preferred_element_type=jnp.float32)
    h = (g * jax.lax.logistic(g)) * u                     # SiLU(gate) * up
    acc_ref[...] += jnp.dot(h.astype(x.dtype), wd_ref[...],
                            preferred_element_type=jnp.float32)

    @pl.when(j == pl.num_programs(1) - 1)
    def _():
        o_ref[...] = acc_ref[...].astype(o_ref.dtype)


def mlp(x, wg, wu, wd, *, tm=256, ti=512):
    T, H = x.shape
    I = wg.shape[1]
    tm = _pick_tile(T, tm, 16)
    ti = _pick_tile(I, ti, 128)
    return pl.pallas_call(
        _mlp_kernel,
        grid=(T // tm, I // ti),
        in_specs=[pl.BlockSpec((tm, H), lambda i, j: (i, 0)),
                  pl.BlockSpec((H, ti), lambda i, j: (0, j)),
                  pl.BlockSpec((H, ti), lambda i, j: (0, j)),
                  pl.BlockSpec((ti, H), lambda i, j: (j, 0))],
        out_specs=pl.BlockSpec((tm, H), lambda i, j: (i, 0)),
        out_shape=jax.ShapeDtypeStruct((T, H), x.dtype),
        scratch_shapes=[pltpu.VMEM((tm, H), jnp.float32)],
        compiler_params=_cparams(("parallel", "arbitrary")),
    )(x, wg, wu, wd)


# --------------------------------------------------------------------------
# glue / model
# --------------------------------------------------------------------------

def rope_tables(position_ids, head_dim, theta):
    inv_freq = 1.0 / (theta ** (jnp.arange(0, head_dim, 2, dtype=jnp.float32) / head_dim))
    freqs = position_ids.astype(jnp.float32)[:, None] * inv_freq[None, :]
    cos = jnp.cos(freqs)
    sin = jnp.sin(freqs)
    cos_full = jnp.concatenate([cos, cos], axis=-1)           # [T, D]
    sin_signed = jnp.concatenate([-sin, sin], axis=-1)        # rotate-half sign folded in
    return cos_full, sin_signed


def init_params(key, cfg, dtype=jnp.bfloat16):
    H, KVH, D = cfg["num_heads"], cfg["num_kv_heads"], cfg["head_dim"]
    hid, inter, vocab = cfg["hidden_size"], cfg["intermediate_size"], cfg["vocab_size"]

    def nrm(k, shape, scale=0.02):
        return (scale * jax.random.normal(k, shape, dtype=jnp.float32)).astype(dtype)

    keys = jax.random.split(key, 2 + cfg["num_layers"])
    params = {
        "embed": nrm(keys[0], (vocab, hid)),
        "lm_head": nrm(keys[1], (hid, vocab)),   # stored [in, out]
        "norm": jnp.ones((hid,), jnp.float32),
        "layers": [],
    }
    for li in range(cfg["num_layers"]):
        lk = jax.random.split(keys[2 + li], 5)
        params["layers"].append({
            "ln1": jnp.ones((hid,), jnp.float32),
            "ln2": jnp.ones((hid,), jnp.float32),
            # nn.Linear weights stored pre-transposed as [in_features, out_features]
            "wqkv": nrm(lk[0], (hid, (H + 2 * KVH) * D)),
            "wo": nrm(lk[1], (H * D, hid)),
            "wg": nrm(lk[2], (hid, inter)),
            "wu": nrm(lk[3], (hid, inter)),
            "wd": nrm(lk[4], (inter, hid)),
        })
    return params


def flash_mistral_forward(params, input_ids, position_ids, cfg, lm_head_indices=None):
    H, KVH, D = cfg["num_heads"], cfg["num_kv_heads"], cfg["head_dim"]
    scale = D ** -0.5
    window = cfg["sliding_window"] if cfg["sliding_window"] is not None else -1
    eps = cfg["rms_eps"]

    x = jnp.take(params["embed"], input_ids, axis=0)                  # [T, hidden]
    cos, sin_signed = rope_tables(position_ids, D, cfg["rope_theta"])

    residual = None
    for layer in params["layers"]:
        normed, res = rmsnorm(x, residual, layer["ln1"], eps)
        qkv = matmul(normed, layer["wqkv"])                           # [T, (H+2*KVH)*D]
        # RoPE is fused inside the attention kernel; q/k/v column blocks are
        # selected straight from the fused qkv buffer by the BlockSpec index
        # maps (no XLA slices / copies between pallas_calls).
        # TODO(synk): paged_attention.reshape_and_cache / paged decode path,
        # LoRA adapter data, tensor-parallel collectives and varlen cu_seqlen
        # batching are not modeled; this is the single-sequence prefill path.
        attn = attention(qkv, cos, sin_signed, num_heads=H, num_kv_heads=KVH,
                         head_dim=D, scale=scale, window=window)      # [T, H*D]
        attn_out = matmul(attn, layer["wo"])                          # [T, hidden]
        normed2, res2 = rmsnorm(attn_out, res, layer["ln2"], eps)
        x = mlp(normed2, layer["wg"], layer["wu"], layer["wd"])
        residual = res2

    hidden, _ = rmsnorm(x, residual, params["norm"], eps)
    if lm_head_indices is not None:
        hidden = hidden[lm_head_indices]
    logits = matmul(hidden, params["lm_head"])
    return logits, None   # (logits, speculative_logits=None)


# --------------------------------------------------------------------------
# pure-JAX reference (mirrors the kernels' bf16 storage / f32 accumulation)
# --------------------------------------------------------------------------

def reference_forward(params, input_ids, position_ids, cfg, lm_head_indices=None):
    H, KVH, D = cfg["num_heads"], cfg["num_kv_heads"], cfg["head_dim"]
    groups = H // KVH
    scale = D ** -0.5
    window = cfg["sliding_window"] if cfg["sliding_window"] is not None else -1
    eps = cfg["rms_eps"]
    dt = params["embed"].dtype
    T = input_ids.shape[0]

    x = jnp.take(params["embed"], input_ids, axis=0)
    cos, sin_signed = rope_tables(position_ids, D, cfg["rope_theta"])

    def mm(a, w):
        return jnp.dot(a.astype(jnp.float32), w.astype(jnp.float32)).astype(dt)

    def rms(h, r, w):
        h32 = h.astype(jnp.float32) if r is None else (h.astype(jnp.float32)
                                                       + r.astype(jnp.float32))
        res = h if r is None else h32.astype(dt)
        var = jnp.mean(h32 * h32, axis=-1, keepdims=True)
        n = h32 * jax.lax.rsqrt(var + eps) * w.astype(jnp.float32)
        return n.astype(dt), res

    def rope(xc):
        Tn, C = xc.shape
        xh = xc.reshape(Tn, C // D, D).astype(jnp.float32)
        rot = jnp.roll(xh, D // 2, axis=-1)
        out = xh * cos[:, None, :] + rot * sin_signed[:, None, :]
        return out.reshape(Tn, C).astype(dt)

    ii = jnp.arange(T)[:, None]
    jj = jnp.arange(T)[None, :]
    mask = jj <= ii
    if window > 0:
        mask = jnp.logical_and(mask, (ii - jj) < window)

    residual = None
    for layer in params["layers"]:
        normed, res = rms(x, residual, layer["ln1"])
        qkv = mm(normed, layer["wqkv"])
        qk = rope(qkv[:, :(H + KVH) * D])
        q = qk[:, :H * D].reshape(T, H, D)
        k = qk[:, H * D:].reshape(T, KVH, D)
        v = qkv[:, (H + KVH) * D:].reshape(T, KVH, D)
        kf = jnp.repeat(k, groups, axis=1).astype(jnp.float32)
        vf = jnp.repeat(v, groups, axis=1)
        s = jnp.einsum("qhd,khd->hqk", q.astype(jnp.float32), kf) * scale
        s = jnp.where(mask[None], s, -1e30)
        m = jnp.max(s, axis=-1, keepdims=True)
        p = jnp.exp(s - m)
        l = jnp.sum(p, axis=-1, keepdims=True)
        pv = jnp.einsum("hqk,khd->qhd", p.astype(dt).astype(jnp.float32),
                        vf.astype(jnp.float32))
        attn = (pv / jnp.transpose(l, (1, 0, 2))).astype(dt).reshape(T, H * D)
        attn_out = mm(attn, layer["wo"])
        normed2, res2 = rms(attn_out, res, layer["ln2"])
        g32 = jnp.dot(normed2.astype(jnp.float32), layer["wg"].astype(jnp.float32))
        u32 = jnp.dot(normed2.astype(jnp.float32), layer["wu"].astype(jnp.float32))
        hmid = ((g32 * jax.lax.logistic(g32)) * u32).astype(dt)
        x = jnp.dot(hmid.astype(jnp.float32), layer["wd"].astype(jnp.float32)).astype(dt)
        residual = res2

    hidden, _ = rms(x, residual, params["norm"])
    if lm_head_indices is not None:
        hidden = hidden[lm_head_indices]
    return mm(hidden, params["lm_head"]), None


# ---------------------------------- main -----------------------------------

if __name__ == "__main__":
    cfg = dict(
        vocab_size=512,
        hidden_size=512,          # = num_heads * head_dim
        num_heads=4,
        num_kv_heads=2,           # GQA (groups = 2)
        head_dim=128,
        intermediate_size=1024,
        num_layers=2,
        rope_theta=10000.0,
        rms_eps=1e-6,
        sliding_window=600,       # < T  -> exercises the sliding-window mask
    )
    key = jax.random.PRNGKey(0)
    params = init_params(key, cfg, dtype=jnp.bfloat16)

    # T=768 with 256-wide q/kv tiles -> exercises masked diagonal tiles, the
    # un-masked interior fast path, the sliding-window mask and dead-tile
    # skipping + KV index-map clamping.
    T = 768
    input_ids = jax.random.randint(jax.random.PRNGKey(1), (T,), 0, cfg["vocab_size"])
    position_ids = jnp.arange(T, dtype=jnp.int32)
    lm_head_indices = jnp.array([3, 257, T - 1], dtype=jnp.int32)

    logits, spec_logits = flash_mistral_forward(
        params, input_ids, position_ids, cfg, lm_head_indices=lm_head_indices)
    jax.block_until_ready(logits)

    assert logits.shape == (3, cfg["vocab_size"])
    assert spec_logits is None
    logits32 = logits.astype(jnp.float32)
    assert bool(jnp.all(jnp.isfinite(logits32)))

    ref_logits, _ = reference_forward(
        params, input_ids, position_ids, cfg, lm_head_indices=lm_head_indices)
    ref32 = ref_logits.astype(jnp.float32)
    rel_err = float(jnp.max(jnp.abs(logits32 - ref32)) /
                    (jnp.max(jnp.abs(ref32)) + 1e-6))
    assert rel_err < 2e-2, f"mismatch vs reference: rel_err={rel_err}"

    print("KERNEL_OK")
</pallas_src>

<mosaic_0001>
module attributes {stable_mosaic.version = 11 : i64} {
  func.func @_rmsnorm_kernel(%arg0: i32, %arg1: memref<384x512xbf16, #tpu.memory_space<vmem>>, %arg2: memref<1x512xf32, #tpu.memory_space<vmem>>, %arg3: memref<384x512xbf16, #tpu.memory_space<vmem>>) attributes {dimension_semantics = [#tpu.dimension_semantics<parallel>], iteration_bounds = array<i64: 2>, scalar_prefetch = 0 : i64, scratch_operands = 0 : i64, tpu.core_type = #tpu.core_type<tc>, window_params = [{transform_indices = @transform_0, window_bounds = array<i64: 384, 512>}, {pipeline_mode = #tpu.pipeline_mode<synchronous>, transform_indices = @transform_1, window_bounds = array<i64: 1, 512>}, {transform_indices = @transform_2, window_bounds = array<i64: 384, 512>}]} {
    %c0 = arith.constant 0 : index
    %c0_0 = arith.constant 0 : index
    %0 = vector.load %arg1[%c0, %c0_0] : memref<384x512xbf16, #tpu.memory_space<vmem>>, vector<384x512xbf16>
    %1 = arith.extf %0 : vector<384x512xbf16> to vector<384x512xf32>
    %2 = arith.mulf %1, %1 : vector<384x512xf32>
    %cst = arith.constant dense<0.000000e+00> : vector<384xf32>
    %3 = vector.multi_reduction <add>, %2, %cst [1] : vector<384x512xf32> to vector<384xf32>
    %4 = vector.shape_cast %3 : vector<384xf32> to vector<384x1xf32>
    %cst_1 = arith.constant 5.120000e+02 : f32
    %5 = vector.broadcast %cst_1 : f32 to vector<384x1xf32>
    %6 = arith.divf %4, %5 : vector<384x1xf32>
    %cst_2 = arith.constant 9.99999997E-7 : f32
    %7 = vector.broadcast %cst_2 : f32 to vector<384x1xf32>
    %8 = arith.addf %6, %7 : vector<384x1xf32>
    %9 = math.rsqrt %8 : vector<384x1xf32>
    %10 = vector.broadcast %9 : vector<384x1xf32> to vector<384x512xf32>
    %11 = arith.mulf %1, %10 : vector<384x512xf32>
    %c0_3 = arith.constant 0 : index
    %c0_4 = arith.constant 0 : index
    %12 = vector.load %arg2[%c0_3, %c0_4] : memref<1x512xf32, #tpu.memory_space<vmem>>, vector<1x512xf32>
    %13 = vector.broadcast %12 : vector<1x512xf32> to vector<384x512xf32>
    %14 = arith.mulf %11, %13 : vector<384x512xf32>
    %15 = arith.truncf %14 : vector<384x512xf32> to vector<384x512xbf16>
    %c0_5 = arith.constant 0 : index
    %c0_6 = arith.constant 0 : index
    %16 = vector.load %arg3[%c0_5, %c0_6] : memref<384x512xbf16, #tpu.memory_space<vmem>>, vector<384x512xbf16>
    tpu.vector_store %arg3[%c0_5, %c0_6], %15 {strides = array<i32>} : memref<384x512xbf16, #tpu.memory_space<vmem>>, vector<384x512xbf16>,
    return
  }
  func.func @transform_0(%arg0: i32) -> (i32, i32) {
    %c0_i32 = arith.constant 0 : i32
    %c0_i32_0 = arith.constant 0 : i32
    return %arg0, %c0_i32 : i32, i32
  }
  func.func @transform_1(%arg0: i32) -> (i32, i32) {
    %c0_i32 = arith.constant 0 : i32
    %c0_i32_0 = arith.constant 0 : i32
    %c0_i32_1 = arith.constant 0 : i32
    return %c0_i32, %c0_i32_0 : i32, i32
  }
  func.func @transform_2(%arg0: i32) -> (i32, i32) {
    %c0_i32 = arith.constant 0 : i32
    %c0_i32_0 = arith.constant 0 : i32
    return %arg0, %c0_i32 : i32, i32
  }
}

</mosaic_0001>

<bundles_post_ra>
// kernel: tpu_custom_call.1
= control target key start
LH: loop header
LB: loop body
LE: loop exit
PB: predicated region body
PF: predicated region fallthrough
CT: control target
= control target key end

     0   :  { %7 = vsyncpa [#allocation3], 0  ;;  %s4722_s0 = inlined_call_operand.hbm [shape: bf16[768,512], index: 0, kind: input, shape index: {}]   ;;  %s4723_s1 = inlined_call_operand.hbm [shape: f32[1,512], index: 1, kind: input, shape index: {}]   ;;  %s4724_s2 = inlined_call_operand.hbm [shape: bf16[768,512], index: 2, kind: output, shape index: {}]  }
   0x1   :  { %9 = vsyncpa [#allocation3 + $0x1], 0 }
   0x2   :  { %10 = vsyncpa [#allocation6], 0 }
   0x3   :  { %11 = vsyncpa [#allocation4], 0 }
   0x4   :  { %13 = vsyncpa [#allocation4 + $0x1], 0  ;;  %s2504_s9 = smov 0   ;;  %s2506_s10 = smov 0  }
   0x5   :  { %s2508_s11 = smov 0   ;;  %s2510_s12 = smov 0  }
   0x6 LB: > { %s2525_s13 = sadd.s32 4294967295, %s2481_s12   ;;  %s2171_s14 = sadd.s32 4294967294, %s2481_s12   ;;  %s2481_s12 = sphi %s2510_s12, %s5240_s12   ;;  %s2477_s11 = sphi %s2508_s11, %s5239_s11   ;;  %s2473_s10 = sphi %s2506_s10, %s5238_s10   ;;  %s2469_s9 = sphi %s2504_s9, %s5237_s9  }
   0x7   : > { %s2529_s15 = sadd.s32 1, %s2481_s12   ;;  %s26_s16 = sadd.s32 1, %s2477_s11 }
   0x8   : > { %s23_s17 = ssub.s32 %s2481_s12, %s2529_s15  ;;  %p33_p0 = scmp.ne.s32.totalorder %s2477_s11, %s2473_s10 }
   0x9   : > { %p24_p1 = scmp.eq.s32.totalorder %s23_s17, 0  ;;  %p34_p2 = scmp.eq.s32.totalorder %s2481_s12, 0 }
   0xa   : > { %p39_p3 = scmp.ne.s32.totalorder %s2473_s10, %s2469_s9  ;;  %p40_p4 = scmp.eq.s32.totalorder %s2525_s13, 0 }
   0xb   : > { %s2541_s18 = scalar_select %p24_p1, %s2477_s11, %s26_s16  }
   0xc   : > { %p2543_p5 = por %p34_p2, %p33_p0  ;;  %p2549_p6 = por %p40_p4, %p39_p3 }
   0xd   : > { %p84_p7 = scmp.eq.s32.totalorder %s2525_s13, 1  ;;  %p90_p8 = scmp.eq.s32.totalorder %s2171_s14, 1 }
   0xe   : > { %p2172_p9 = scmp.ge.s32.totalorder %s2481_s12, 1  ;;  %p97_p10 = scmp.lt.s32.totalorder %s2481_s12, 3 }
   0xf   : > { %p2556_p11 = por %p84_p7, %p33_p0  ;;  %p2560_p12 = por %p90_p8, %p39_p3 }
  0x10   : > { %p2564_p13 = pnand %p2172_p9, %p97_p10  ;;  %s109_s26 = sshll.u32 %s4723_s1, 4  ;;  %s110_s26 = int_to_ptr.hbm [resolvable:$true] %s109_s26 }
  0x11   : > { %s2483_s27 = smov [#allocation5]   ;;  %p2212_p3 = scmp.lt.s32.totalorder %s2481_s12, 2 }
  0x12   : > { %p2199_p1 = pneg %p2564_p13  ;;  %s111_s28 = sshll.u32 %s2483_s27, 4  ;;  %s112_s28 = int_to_ptr.vmem [resolvable:$true] %s111_s28 }
  0x13   : > { %s122_s29 = sand.u32 1, %s2477_s11   ;;  %p2580_p7 = pnand %p2212_p3, %p2543_p5 }
  0x14   : > { %p2200_p2 = pnand %p2199_p1, %p40_p4  ;;  %s2189_s3 = smul.u32 768, %s122_s29 }
  0x15   : > { %s2187_s4 = smul.u32 768, %s2481_s12  ;;  %s123_s17 = scalar_lea.sflag [#allocation3], %s122_s29 }
  0x16   : > { %2202 = dma.hbm_to_vmem [thread:$0]  (!%p2200_p2), %s110_s26, 64, %s112_s28, [#allocation6]  }
  0x17   : > { %s132_s7 = scalar_lea.hbm %s4722_s0, %s2187_s4  ;;  %s126_s8 = scalar_lea.vmem [#allocation2], %s2189_s3 }
  0x18   : > { %s135_s14 = sshll.u32 %s126_s8, 4  ;;  %s133_s16 = sshll.u32 %s132_s7, 4  ;;  %s136_s14 = int_to_ptr.vmem [resolvable:$true] %s135_s14  ;;  %s134_s16 = int_to_ptr.hbm [resolvable:$true] %s133_s16 }
  0x19   : > { %s2381_s24 = sshra.s32 %s134_s16, 4  ;;  %p2385_p8 = pneg %p2580_p7  ;;  %s2382_s24 = int_to_ptr.hbm [resolvable:$true] %s2381_s24 }
  0x1a   : > { %s2383_s19 = scalar_lea.hbm %s2382_s24, 768  ;;  %s2388_s27 = scalar_lea.hbm %s4722_s0, 1536 }
  0x1b   : > { %p2384_p5 = scmp.ne.s32.totalorder %s2382_s24, %s2383_s19  ;;  %p2389_p1 = scmp.lt.s32.totalorder %s2382_s24, %s4722_s0 }
  0x1c   : > { %p2390_p2 = scmp.lt.s32.totalorder %s2388_s27, %s2383_s19 }
  0x1d   : > { %p2386_p9 = pnand %p2385_p8, %p2384_p5 }
  0x1e   : > { %p2391_p3 = por %p2390_p2, %p2389_p1 }
  0x1f   : > { %p2387_p10 = pneg %p2386_p9 }
  0x21   : > { %p2392_p0 = pnand %p2391_p3, %p2387_p10 }
  0x23   : > { %2395 = shalt.err (!%p2392_p0)
}
  0x24   : > { %s2484_s29 = smov 256   ;;  %s2485_s3 = smov 16  }
  0x25   : > { %2206 = dma.hbm_to_vmem [thread:$0]  (!%p2580_p7), %s134_s16, 12288, %s136_s14, %s123_s17, %s2484_s29, %s2484_s29, %s2485_s3  }
  0x26   : > { %147 = sbr.rel (%p2564_p13) target bundleno = 502 (0x1f6), region = 28 }
  0x2b   : > { %s2601_s5 = sand.u32 1, %s2473_s10  }
  0x2c   : > { %s2190_s6 = smul.u32 768, %s2601_s5  ;;  %s150_s7 = scalar_lea.sflag [#allocation3], %s2601_s5 }
  0x2e   : > { %s2607_s8 = scalar_lea.vmem [#allocation2], %s2190_s6 }
  0x2f   : > { %2456 = dma.done.wait (%p2549_p6), %s150_s7, 12288  }
  0x30   : > { %2458 = vsyncadd (%p2549_p6), %s150_s7, 4294955008 }
  0x31   : > { %2460 = dma.done.wait (%p40_p4), [#allocation6], 64  }
  0x32   : > { %2462 = vsyncadd (%p40_p4), [#allocation6], 4294967232  ;;  %v190_v0 = vld [vmem:[%s2607_s8 + $0x40] sm:$0xff]  ;;  %v191_v1 = vld [vmem:[%s2607_s8 + $0x48] sm:$0xff]  ;;  %s3619_s20 = scalar_lea.vmem [#allocation7], %s2190_s6  ;;  %s2188_s23 = smul.u32 768, %s2525_s13 }
  0x33   : > { %v186_v2 = vld [vmem:[%s2607_s8 + $0x20] sm:$0xff]  ;;  %v2620_v3 = vunpack.c.l.bf16 %v190_v0  ;;  %v2622_v4 = vunpack.c.h.bf16 %v190_v0  ;;  %v2624_v5 = vunpack.c.l.bf16 %v191_v1  ;;  %v2626_v6 = vunpack.c.h.bf16 %v191_v1  ;;  %v187_v7 = vld [vmem:[%s2607_s8 + $0x28] sm:$0xff]  ;;  %v192_v18 = vld [vmem:[%s2607_s8 + $0x50] sm:$0xff]  ;;  %s2085_s16 = sshll.u32 %s3619_s20, 4  ;;  %s2072_s24 = scalar_lea.sflag [#allocation4], %s2601_s5  ;;  %s2086_s16 = int_to_ptr.vmem [resolvable:$true] %s2085_s16 }
  0x34   : > { %v2629_v8 = vunpack.c.l.bf16 %v186_v2  ;;  %v2631_v9 = vunpack.c.h.bf16 %v186_v2  ;;  %v2633_v10 = vunpack.c.l.bf16 %v187_v7  ;;  %v2635_v11 = vunpack.c.h.bf16 %v187_v7  ;;  %v182_v12 = vld [vmem:[%s2607_s8] sm:$0xff]  ;;  %v183_v13 = vld [vmem:[%s2607_s8 + $0x8] sm:$0xff]  ;;  %v193_v27 = vld [vmem:[%s2607_s8 + $0x58] sm:$0xff]  ;;  %s2084_s14 = scalar_lea.hbm %s4724_s2, %s2188_s23  ;;  %s2431_s28 = scalar_lea.hbm %s4724_s2, 1536 }
  0x35   : > { %v486_v14 = vmul.f32 %v2620_v3, %v2620_v3  ;;  %v487_v15 = vmul.f32 %v2622_v4, %v2622_v4  ;;  %v488_v16 = vmul.f32 %v2624_v5, %v2624_v5  ;;  %v489_v17 = vmul.f32 %v2626_v6, %v2626_v6  ;;  %v188_v36 = vld [vmem:[%s2607_s8 + $0x30] sm:$0xff]  ;;  %v189_v41 = vld [vmem:[%s2607_s8 + $0x38] sm:$0xff]  ;;  %v198_v60 = vld [vmem:[%s2607_s8 + $0x80] sm:$0xff]  ;;  %s2087_s17 = sshll.u32 %s2084_s14, 4  ;;  %s2088_s17 = int_to_ptr.hbm [resolvable:$true] %s2087_s17 }
  0x36   : > { %v478_v19 = vmul.f32 %v2629_v8, %v2629_v8  ;;  %v479_v20 = vmul.f32 %v2631_v9, %v2631_v9  ;;  %v480_v21 = vmul.f32 %v2633_v10, %v2633_v10  ;;  %v481_v22 = vmul.f32 %v2635_v11, %v2635_v11  ;;  %v184_v46 = vld [vmem:[%s2607_s8 + $0x10] sm:$0xff]  ;;  %v185_v55 = vld [vmem:[%s2607_s8 + $0x18] sm:$0xff]  ;;  %v199_v1 = vld [vmem:[%s2607_s8 + $0x88] sm:$0xff]  ;;  %s2425_s19 = sshra.s32 %s2088_s17, 4  ;;  %s2426_s19 = int_to_ptr.hbm [resolvable:$true] %s2425_s19 }
  0x37   : > { %v682_v23 = vadd.f32 %v487_v15, %v486_v14  ;;  %v2656_v24 = vunpack.c.l.bf16 %v182_v12  ;;  %v2658_v25 = vunpack.c.h.bf16 %v182_v12  ;;  %v2660_v26 = vunpack.c.l.bf16 %v183_v13  ;;  %s2427_s25 = scalar_lea.hbm %s2426_s19, 768  ;;  %p2432_p0 = scmp.lt.s32.totalorder %s2426_s19, %s4724_s2 }
  0x38   : > { %v672_v28 = vadd.f32 %v479_v20, %v478_v19  ;;  %v2663_v29 = vunpack.c.h.bf16 %v183_v13  ;;  %v2665_v30 = vunpack.c.l.bf16 %v192_v18  ;;  %v2667_v31 = vunpack.c.h.bf16 %v192_v18  ;;  %v196_v18 = vld [vmem:[%s2607_s8 + $0x70] sm:$0xff]  ;;  %p2428_p4 = scmp.ne.s32.totalorder %s2426_s19, %s2427_s25  ;;  %p2433_p7 = scmp.lt.s32.totalorder %s2431_s28, %s2427_s25 }
  0x39   : > { %v683_v32 = vadd.f32 %v682_v23, %v488_v16  ;;  %v470_v33 = vmul.f32 %v2656_v24, %v2656_v24  ;;  %v471_v34 = vmul.f32 %v2658_v25, %v2658_v25  ;;  %v472_v35 = vmul.f32 %v2660_v26, %v2660_v26  ;;  %v197_v23 = vld [vmem:[%s2607_s8 + $0x78] sm:$0xff] }
  0x3a   : > { %v673_v37 = vadd.f32 %v672_v28, %v480_v21  ;;  %v473_v38 = vmul.f32 %v2663_v29, %v2663_v29  ;;  %v2678_v39 = vunpack.c.l.bf16 %v193_v27  ;;  %v2680_v40 = vunpack.c.h.bf16 %v193_v27  ;;  %p2429_p6 = pnand %p2428_p4, %p2556_p11  ;;  %p2434_p5 = por %p2433_p7, %p2432_p0 }
  0x3b   : > { %v684_v42 = vadd.f32 %v683_v32, %v489_v17  ;;  %v662_v43 = vadd.f32 %v471_v34, %v470_v33  ;;  %v490_v44 = vmul.f32 %v2665_v30, %v2665_v30  ;;  %v491_v45 = vmul.f32 %v2667_v31, %v2667_v31 }
  0x3c   : > { %v674_v47 = vadd.f32 %v673_v37, %v481_v22  ;;  %v492_v48 = vmul.f32 %v2678_v39, %v2678_v39  ;;  %v493_v49 = vmul.f32 %v2680_v40, %v2680_v40  ;;  %v2692_v50 = vunpack.c.l.bf16 %v188_v36  ;;  %p2430_p13 = pneg %p2429_p6 }
  0x3d   : > { %685 = vadd.xlane.f32.xlu2 %v684_v42  ;;  %v663_v51 = vadd.f32 %v662_v43, %v472_v35  ;;  %v687_v52 = vadd.f32 %v491_v45, %v490_v44  ;;  %v2694_v53 = vunpack.c.h.bf16 %v188_v36  ;;  %v2696_v54 = vunpack.c.l.bf16 %v189_v41  ;;  %v195_v45 = vld [vmem:[%s2607_s8 + $0x68] sm:$0xff] }
  0x3e   : > { %675 = vadd.xlane.f32.xlu1 %v674_v47  ;;  %v2699_v56 = vunpack.c.h.bf16 %v189_v41  ;;  %v482_v57 = vmul.f32 %v2692_v50, %v2692_v50  ;;  %v2703_v58 = vunpack.c.l.bf16 %v184_v46  ;;  %v2705_v59 = vunpack.c.h.bf16 %v184_v46  ;;  %p2435_p8 = pnand %p2434_p5, %p2430_p13 }
  0x3f   : > { %v664_v61 = vadd.f32 %v663_v51, %v473_v38  ;;  %v688_v62 = vadd.f32 %v687_v52, %v492_v48  ;;  %v483_v63 = vmul.f32 %v2694_v53, %v2694_v53  ;;  %v484_v0 = vmul.f32 %v2696_v54, %v2696_v54  ;;  %v194_v38 = vld [vmem:[%s2607_s8 + $0x60] sm:$0xff]  ;;  %v204_v51 = vld [vmem:[%s2607_s8 + $0xb0] sm:$0xff] }
  0x40   : > { %v485_v2 = vmul.f32 %v2699_v56, %v2699_v56  ;;  %v2715_v7 = vunpack.c.l.bf16 %v185_v55  ;;  %v2717_v12 = vunpack.c.h.bf16 %v185_v55  ;;  %v474_v13 = vmul.f32 %v2703_v58, %v2703_v58 }
  0x41   : > { %665 = vadd.xlane.f32.xlu0 %v664_v61  ;;  %v689_v14 = vadd.f32 %v688_v62, %v493_v49  ;;  %v677_v15 = vadd.f32 %v483_v63, %v482_v57  ;;  %v475_v16 = vmul.f32 %v2705_v59, %v2705_v59  ;;  %v2723_v17 = vunpack.c.l.bf16 %v198_v60 }
  0x42   : > { %v476_v19 = vmul.f32 %v2715_v7, %v2715_v7  ;;  %v477_v20 = vmul.f32 %v2717_v12, %v2717_v12  ;;  %v2730_v21 = vunpack.c.h.bf16 %v198_v60  ;;  %v2732_v22 = vunpack.c.l.bf16 %v199_v1 }
  0x43   : > { %v678_v27 = vadd.f32 %v677_v15, %v484_v0  ;;  %v667_v28 = vadd.f32 %v475_v16, %v474_v13  ;;  %v2735_v32 = vunpack.c.h.bf16 %v199_v1  ;;  %v502_v33 = vmul.f32 %v2723_v17, %v2723_v17  ;;  %v205_v1 = vld [vmem:[%s2607_s8 + $0xb8] sm:$0xff]  ;;  %v202_v16 = vld [vmem:[%s2607_s8 + $0xa0] sm:$0xff] }
  0x44   : > { %4900 = vst [vmem:[#allocation11_spill] sm:$0xff] %v2730_v21  ;;  %v503_v34 = vmul.f32 %v2730_v21, %v2730_v21  ;;  %v504_v35 = vmul.f32 %v2732_v22, %v2732_v22  ;;  %v2743_v36 = vunpack.c.l.bf16 %v196_v18  ;;  %v2745_v37 = vunpack.c.h.bf16 %v196_v18 }
  0x45   : > { %4901 = vst [vmem:[#allocation12_spill] sm:$0xff] %v2732_v22  ;;  %690 = vadd.xlane.f32.xlu2 %v689_v14  ;;  %v679_v41 = vadd.f32 %v678_v27, %v485_v2  ;;  %v668_v42 = vadd.f32 %v667_v28, %v476_v19  ;;  %v505_v43 = vmul.f32 %v2735_v32, %v2735_v32  ;;  %v2750_v44 = vunpack.c.l.bf16 %v197_v23 }
  0x46   : > { %4902 = vst [vmem:[#allocation13_spill] sm:$0xff] %v2735_v32  ;;  %v702_v46 = vadd.f32 %v503_v34, %v502_v33  ;;  %v2753_v47 = vunpack.c.h.bf16 %v197_v23  ;;  %v498_v48 = vmul.f32 %v2743_v36, %v2743_v36  ;;  %v499_v49 = vmul.f32 %v2745_v37, %v2745_v37 }
  0x47   : > { %4903 = vst [vmem:[#allocation14_spill] sm:$0xff] %v2743_v36  ;;  %680 = vadd.xlane.f32.xlu1 %v679_v41  ;;  %v669_v52 = vadd.f32 %v668_v42, %v477_v20  ;;  %v500_v55 = vmul.f32 %v2750_v44, %v2750_v44  ;;  %v2762_v57 = vunpack.c.l.bf16 %v194_v38  ;;  %v2764_v60 = vunpack.c.h.bf16 %v194_v38 }
  0x48   : > { %4904 = vst [vmem:[#allocation15_spill] sm:$0xff] %v2745_v37  ;;  %v703_v61 = vadd.f32 %v702_v46, %v504_v35  ;;  %v501_v62 = vmul.f32 %v2753_v47, %v2753_v47  ;;  %v697_v63 = vadd.f32 %v499_v49, %v498_v48  ;;  %v2768_v0 = vunpack.c.l.bf16 %v195_v45  ;;  %v203_v35 = vld [vmem:[%s2607_s8 + $0xa8] sm:$0xff] }
  0x49   : > { %4905 = vst [vmem:[#allocation16_spill] sm:$0xff] %v2750_v44  ;;  %670 = vadd.xlane.f32.xlu0 %v669_v52  ;;  %v2771_v2 = vunpack.c.h.bf16 %v195_v45  ;;  %v494_v13 = vmul.f32 %v2762_v57, %v2762_v57  ;;  %v495_v14 = vmul.f32 %v2764_v60, %v2764_v60  ;;  %v2777_v15 = vunpack.c.l.bf16 %v204_v51  ;;  %v200_v45 = vld [vmem:[%s2607_s8 + $0x90] sm:$0xff]  ;;  %v201_v52 = vld [vmem:[%s2607_s8 + $0x98] sm:$0xff] }
  0x4a   : > { %4906 = vst [vmem:[#allocation17_spill] sm:$0xff] %v2753_v47  ;;  %v704_v18 = vadd.f32 %v703_v61, %v505_v43  ;;  %v698_v19 = vadd.f32 %v697_v63, %v500_v55  ;;  %v496_v20 = vmul.f32 %v2768_v0, %v2768_v0  ;;  %v2782_v23 = vunpack.c.h.bf16 %v204_v51 }
  0x4b   : > { %4907 = vst [vmem:[#allocation18_spill] sm:$0xff] %v2762_v57  ;;  %v497_v27 = vmul.f32 %v2771_v2, %v2771_v2  ;;  %v692_v28 = vadd.f32 %v495_v14, %v494_v13  ;;  %v2786_v33 = vunpack.c.l.bf16 %v205_v1  ;;  %v2788_v34 = vunpack.c.h.bf16 %v205_v1 }
  0x4c   : > { %4908 = vst [vmem:[#allocation19_spill] sm:$0xff] %v2764_v60  ;;  %v699_v38 = vadd.f32 %v698_v19, %v501_v62  ;;  %v514_v41 = vmul.f32 %v2777_v15, %v2777_v15  ;;  %v515_v42 = vmul.f32 %v2782_v23, %v2782_v23  ;;  %v2795_v43 = vunpack.c.l.bf16 %v202_v16 }
  0x4d   : > { %4909 = vst [vmem:[#allocation20_spill] sm:$0xff] %v2768_v0  ;;  %705 = vadd.xlane.f32.xlu2 %v704_v18  ;;  %v693_v46 = vadd.f32 %v692_v28, %v496_v20  ;;  %v516_v48 = vmul.f32 %v2786_v33, %v2786_v33  ;;  %v517_v49 = vmul.f32 %v2788_v34, %v2788_v34  ;;  %v2802_v51 = vunpack.c.h.bf16 %v202_v16  ;;  %v210_v18 = vld [vmem:[%s2607_s8 + $0xe0] sm:$0xff] }
  0x4e   : > { %4910 = vst [vmem:[#allocation21_spill] sm:$0xff] %v2771_v2  ;;  %v717_v55 = vadd.f32 %v515_v42, %v514_v41  ;;  %v2805_v61 = vunpack.c.l.bf16 %v203_v35  ;;  %v2807_v62 = vunpack.c.h.bf16 %v203_v35  ;;  %v510_v63 = vmul.f32 %v2795_v43, %v2795_v43 }
  0x4f   : > { %4911 = vst [vmem:[#allocation22_spill] sm:$0xff] %v2777_v15  ;;  %700 = vadd.xlane.f32.xlu1 %v699_v38  ;;  %v694_v1 = vadd.f32 %v693_v46, %v497_v27  ;;  %v511_v13 = vmul.f32 %v2802_v51, %v2802_v51  ;;  %v2813_v14 = vunpack.c.l.bf16 %v200_v45  ;;  %v2815_v16 = vunpack.c.h.bf16 %v200_v45  ;;  %v211_v38 = vld [vmem:[%s2607_s8 + $0xe8] sm:$0xff]  ;;  %v208_v46 = vld [vmem:[%s2607_s8 + $0xd0] sm:$0xff] }
  0x50   : > { %4912 = vst [vmem:[#allocation23_spill] sm:$0xff] %v2782_v23  ;;  %v718_v19 = vadd.f32 %v717_v55, %v516_v48  ;;  %v512_v20 = vmul.f32 %v2805_v61, %v2805_v61  ;;  %v513_v28 = vmul.f32 %v2807_v62, %v2807_v62  ;;  %v2822_v35 = vunpack.c.l.bf16 %v201_v52 }
  0x51   : > { %4913 = vst [vmem:[#allocation24_spill] sm:$0xff] %v2786_v33  ;;  %695 = vadd.xlane.f32.xlu0 %v694_v1  ;;  %v712_v27 = vadd.f32 %v511_v13, %v510_v63  ;;  %v2825_v41 = vunpack.c.h.bf16 %v201_v52  ;;  %v506_v42 = vmul.f32 %v2813_v14, %v2813_v14  ;;  %v507_v45 = vmul.f32 %v2815_v16, %v2815_v16 }
  0x52   : > { %4914 = vst [vmem:[#allocation25_spill] sm:$0xff] %v2788_v34  ;;  %v719_v48 = vadd.f32 %v718_v19, %v517_v49  ;;  %v508_v55 = vmul.f32 %v2822_v35, %v2822_v35  ;;  %v2840_v13 = vunpack.c.l.bf16 %v211_v38 }
  0x53   : > { %4915 = vst [vmem:[#allocation26_spill] sm:$0xff] %v2795_v43  ;;  %v713_v1 = vadd.f32 %v712_v27, %v512_v20  ;;  %v509_v52 = vmul.f32 %v2825_v41, %v2825_v41  ;;  %v707_v63 = vadd.f32 %v507_v45, %v506_v42  ;;  %v2854_v45 = vunpack.c.h.bf16 %v208_v46 }
  0x54   : > { %4916 = vst [vmem:[#allocation27_spill] sm:$0xff] %v2802_v51  ;;  %v2843_v51 = vunpack.c.h.bf16 %v211_v38  ;;  %v528_v42 = vmul.f32 %v2840_v13, %v2840_v13 }
  0x55   : > { %4917 = vst [vmem:[#allocation28_spill] sm:$0xff] %v2805_v61  ;;  %v2836_v61 = vunpack.c.h.bf16 %v210_v18  ;;  %720 = vadd.xlane.f32.xlu2 %v719_v48  ;;  %v714_v20 = vadd.f32 %v713_v1, %v513_v28  ;;  %v708_v27 = vadd.f32 %v707_v63, %v508_v55  ;;  %v523_v48 = vmul.f32 %v2854_v45, %v2854_v45  ;;  %v216_v55 = vld [vmem:[%s2607_s8 + $0x110] sm:$0xff] }
  0x56   : > { %4918 = vst [vmem:[#allocation29_spill] sm:$0xff] %v2807_v62  ;;  %v2834_v62 = vunpack.c.l.bf16 %v210_v18  ;;  %v206_v18 = vld [vmem:[%s2607_s8 + $0xc0] sm:$0xff]  ;;  %v529_v38 = vmul.f32 %v2843_v51, %v2843_v51 }
  0x57   : > { %4919 = vst [vmem:[#allocation30_spill] sm:$0xff] %v2813_v14  ;;  %v209_v14 = vld [vmem:[%s2607_s8 + $0xd8] sm:$0xff]  ;;  %v527_v19 = vmul.f32 %v2836_v61, %v2836_v61  ;;  %715 = vadd.xlane.f32.xlu1 %v714_v20  ;;  %v709_v43 = vadd.f32 %v708_v27, %v509_v52 }
  0x58   : > { %4920 = vst [vmem:[#allocation31_spill] sm:$0xff] %v2815_v16  ;;  %v526_v49 = vmul.f32 %v2834_v62, %v2834_v62  ;;  %v207_v16 = vld [vmem:[%s2607_s8 + $0xc8] sm:$0xff]  ;;  %v217_v52 = vld [vmem:[%s2607_s8 + $0x118] sm:$0xff] }
  0x59   : > { %4921 = vst [vmem:[#allocation32_spill] sm:$0xff] %v2822_v35  ;;  %v2849_v35 = vunpack.c.l.bf16 %v208_v46  ;;  %v2867_v46 = vunpack.c.l.bf16 %v206_v18  ;;  %710 = vadd.xlane.f32.xlu0 %v709_v43  ;;  %v2877_v20 = vunpack.c.l.bf16 %v207_v16  ;;  %v2879_v27 = vunpack.c.h.bf16 %v207_v16 }
  0x5a   : > { %4922 = vst [vmem:[#allocation33_spill] sm:$0xff] %v2825_v41  ;;  %v2858_v41 = vunpack.c.l.bf16 %v209_v14 }
  0x5b   : > { %4923 = vst [vmem:[#allocation34_spill] sm:$0xff] %v2834_v62  ;;  %v732_v62 = vadd.f32 %v527_v19, %v526_v49  ;;  %v522_v28 = vmul.f32 %v2849_v35, %v2849_v35  ;;  %v2874_v49 = vunpack.c.h.bf16 %v206_v18  ;;  %v2887_v18 = vunpack.c.h.bf16 %v216_v55 }
  0x5c   : > { %4924 = vst [vmem:[#allocation35_spill] sm:$0xff] %v2836_v61  ;;  %v2860_v61 = vunpack.c.h.bf16 %v209_v14  ;;  %v524_v63 = vmul.f32 %v2858_v41, %v2858_v41  ;;  %v520_v43 = vmul.f32 %v2877_v20, %v2877_v20  ;;  %v521_v16 = vmul.f32 %v2879_v27, %v2879_v27 }
  0x5d   : > { %4925 = vst [vmem:[#allocation36_spill] sm:$0xff] %v2840_v13  ;;  %v733_v1 = vadd.f32 %v732_v62, %v528_v42  ;;  %v727_v19 = vadd.f32 %v523_v48, %v522_v28  ;;  %v518_v62 = vmul.f32 %v2867_v46, %v2867_v46  ;;  %v2894_v28 = vunpack.c.l.bf16 %v217_v52  ;;  %v215_v48 = vld [vmem:[%s2607_s8 + $0x108] sm:$0xff] }
  0x5e   : > { %4926 = vst [vmem:[#allocation37_spill] sm:$0xff] %v2843_v51  ;;  %v525_v14 = vmul.f32 %v2860_v61, %v2860_v61  ;;  %v2915_v51 = vunpack.c.h.bf16 %v215_v48 }
  0x5f   : > { %4927 = vst [vmem:[#allocation38_spill] sm:$0xff] %v2849_v35  ;;  %v734_v42 = vadd.f32 %v733_v1, %v529_v38  ;;  %v728_v35 = vadd.f32 %v727_v19, %v524_v63  ;;  %v2897_v1 = vunpack.c.h.bf16 %v217_v52  ;;  %v212_v63 = vld [vmem:[%s2607_s8 + $0xf0] sm:$0xff] }
  0x60   : > { %4928 = vst [vmem:[#allocation39_spill] sm:$0xff] %v2854_v45  ;;  %v2885_v45 = vunpack.c.l.bf16 %v216_v55  ;;  %v539_v55 = vmul.f32 %v2887_v18, %v2887_v18 }
  0x61   : > { %4929 = vst [vmem:[#allocation40_spill] sm:$0xff] %v2858_v41  ;;  %v519_v41 = vmul.f32 %v2874_v49, %v2874_v49  ;;  %735 = vadd.xlane.f32.xlu2 %v734_v42  ;;  %v729_v19 = vadd.f32 %v728_v35, %v525_v14  ;;  %v541_v52 = vmul.f32 %v2897_v1, %v2897_v1  ;;  %v222_v42 = vld [vmem:[%s2607_s8 + $0x140] sm:$0xff] }
  0x62   : > { %4930 = vst [vmem:[#allocation41_spill] sm:$0xff] %v2860_v61  ;;  %v214_v61 = vld [vmem:[%s2607_s8 + $0x100] sm:$0xff] }
  0x63   : > { %4931 = vst [vmem:[#allocation42_spill] sm:$0xff] %v2867_v46  ;;  %v722_v38 = vadd.f32 %v519_v41, %v518_v62  ;;  %v2908_v46 = vunpack.c.h.bf16 %v214_v61  ;;  %730 = vadd.xlane.f32.xlu1 %v729_v19 }
  0x64   : > { %4932 = vst [vmem:[#allocation43_spill] sm:$0xff] %v2874_v49  ;;  %v538_v49 = vmul.f32 %v2885_v45, %v2885_v45 }
  0x65   : > { %4933 = vst [vmem:[#allocation44_spill] sm:$0xff] %v2877_v20  ;;  %v2906_v20 = vunpack.c.l.bf16 %v214_v61  ;;  %v723_v41 = vadd.f32 %v722_v38, %v520_v43  ;;  %v535_v14 = vmul.f32 %v2908_v46, %v2908_v46  ;;  %v2921_v61 = vunpack.c.l.bf16 %v212_v63 }
  0x66   : > { %4934 = vst [vmem:[#allocation45_spill] sm:$0xff] %v2879_v27  ;;  %v540_v27 = vmul.f32 %v2894_v28, %v2894_v28  ;;  %v747_v62 = vadd.f32 %v539_v55, %v538_v49  ;;  %v2926_v55 = vunpack.c.h.bf16 %v212_v63  ;;  %v2939_v63 = vunpack.c.l.bf16 %v222_v42 }
  0x67   : > { %4935 = vst [vmem:[#allocation46_spill] sm:$0xff] %v2885_v45  ;;  %v2912_v45 = vunpack.c.l.bf16 %v215_v48  ;;  %v534_v35 = vmul.f32 %v2906_v20, %v2906_v20  ;;  %v724_v43 = vadd.f32 %v723_v41, %v521_v16  ;;  %v537_v48 = vmul.f32 %v2915_v51, %v2915_v51  ;;  %v220_v41 = vld [vmem:[%s2607_s8 + $0x130] sm:$0xff] }
  0x68   : > { %4936 = vst [vmem:[#allocation47_spill] sm:$0xff] %v2887_v18  ;;  %v213_v18 = vld [vmem:[%s2607_s8 + $0xf8] sm:$0xff]  ;;  %v748_v38 = vadd.f32 %v747_v62, %v540_v27  ;;  %v530_v27 = vmul.f32 %v2921_v61, %v2921_v61  ;;  %v531_v16 = vmul.f32 %v2926_v55, %v2926_v55 }
  0x69   : > { %4937 = vst [vmem:[#allocation48_spill] sm:$0xff] %v2894_v28  ;;  %v536_v49 = vmul.f32 %v2912_v45, %v2912_v45  ;;  %v742_v19 = vadd.f32 %v535_v14, %v534_v35  ;;  %725 = vadd.xlane.f32.xlu0 %v724_v43  ;;  %v2946_v14 = vunpack.c.h.bf16 %v222_v42  ;;  %v2959_v42 = vunpack.c.h.bf16 %v220_v41 }
  0x6a   : > { %4938 = vst [vmem:[#allocation49_spill] sm:$0xff] %v2897_v1  ;;  %v2932_v1 = vunpack.c.h.bf16 %v213_v18  ;;  %v749_v28 = vadd.f32 %v748_v38, %v541_v52  ;;  %v221_v52 = vld [vmem:[%s2607_s8 + $0x138] sm:$0xff]  ;;  %v737_v43 = vadd.f32 %v531_v16, %v530_v27 }
  0x6b   : > { %4939 = vst [vmem:[#allocation50_spill] sm:$0xff] %v2906_v20  ;;  %v2930_v20 = vunpack.c.l.bf16 %v213_v18  ;;  %v743_v62 = vadd.f32 %v742_v19, %v536_v49  ;;  %v551_v19 = vmul.f32 %v2946_v14, %v2946_v14  ;;  %v2966_v16 = vunpack.c.l.bf16 %v221_v52 }
  0x6c   : > { %4940 = vst [vmem:[#allocation51_spill] sm:$0xff] %v2908_v46  ;;  %v223_v46 = vld [vmem:[%s2607_s8 + $0x148] sm:$0xff]  ;;  %v533_v18 = vmul.f32 %v2932_v1, %v2932_v1  ;;  %750 = vadd.xlane.f32.xlu2 %v749_v28 }
  0x6d   : > { %4941 = vst [vmem:[#allocation52_spill] sm:$0xff] %v2912_v45  ;;  %v532_v35 = vmul.f32 %v2930_v20, %v2930_v20  ;;  %v2949_v38 = vunpack.c.l.bf16 %v223_v46  ;;  %v744_v49 = vadd.f32 %v743_v62, %v537_v48  ;;  %v219_v28 = vld [vmem:[%s2607_s8 + $0x128] sm:$0xff]  ;;  %v2969_v62 = vunpack.c.h.bf16 %v221_v52 }
  0x6e   : > { %4942 = vst [vmem:[#allocation53_spill] sm:$0xff] %v2915_v51 }
  0x6f   : > { %4943 = vst [vmem:[#allocation54_spill] sm:$0xff] %v2921_v61  ;;  %v2951_v61 = vunpack.c.h.bf16 %v223_v46  ;;  %v738_v51 = vadd.f32 %v737_v43, %v532_v35  ;;  %v552_v27 = vmul.f32 %v2949_v38, %v2949_v38  ;;  %745 = vadd.xlane.f32.xlu1 %v744_v49  ;;  %v547_v35 = vmul.f32 %v2959_v42, %v2959_v42  ;;  %v228_v43 = vld [vmem:[%s2607_s8 + $0x170] sm:$0xff] }
  0x70   : > { %4944 = vst [vmem:[#allocation55_spill] sm:$0xff] %v2926_v55  ;;  %v550_v55 = vmul.f32 %v2939_v63, %v2939_v63 }
  0x71   : > { %4945 = vst [vmem:[#allocation56_spill] sm:$0xff] %v2930_v20  ;;  %v2957_v20 = vunpack.c.l.bf16 %v220_v41  ;;  %v553_v46 = vmul.f32 %v2951_v61, %v2951_v61 }
  0x72   : > { %4946 = vst [vmem:[#allocation57_spill] sm:$0xff] %v2932_v1  ;;  %v218_v1 = vld [vmem:[%s2607_s8 + $0x120] sm:$0xff]  ;;  %v762_v48 = vadd.f32 %v551_v19, %v550_v55  ;;  %v549_v55 = vmul.f32 %v2969_v62, %v2969_v62  ;;  %v2984_v19 = vunpack.c.l.bf16 %v219_v28 }
  0x73   : > { %4947 = vst [vmem:[#allocation58_spill] sm:$0xff] %v2939_v63  ;;  %v546_v41 = vmul.f32 %v2957_v20, %v2957_v20  ;;  %v2980_v63 = vunpack.c.h.bf16 %v218_v1 }
  0x74   : > { %4948 = vst [vmem:[#allocation59_spill] sm:$0xff] %v2946_v14  ;;  %v2978_v14 = vunpack.c.l.bf16 %v218_v1  ;;  %v763_v49 = vadd.f32 %v762_v48, %v552_v27  ;;  %v2993_v1 = vunpack.c.l.bf16 %v228_v43  ;;  %v226_v27 = vld [vmem:[%s2607_s8 + $0x160] sm:$0xff] }
  0x75   : > { %4949 = vst [vmem:[#allocation60_spill] sm:$0xff] %v2949_v38  ;;  %v739_v38 = vadd.f32 %v738_v51, %v533_v18  ;;  %v757_v52 = vadd.f32 %v547_v35, %v546_v41  ;;  %v543_v18 = vmul.f32 %v2980_v63, %v2980_v63  ;;  %v544_v41 = vmul.f32 %v2984_v19, %v2984_v19 }
  0x76   : > { %4950 = vst [vmem:[#allocation61_spill] sm:$0xff] %v2951_v61  ;;  %v548_v61 = vmul.f32 %v2966_v16, %v2966_v16  ;;  %v542_v51 = vmul.f32 %v2978_v14, %v2978_v14  ;;  %v764_v48 = vadd.f32 %v763_v49, %v553_v46  ;;  %v2998_v35 = vunpack.c.h.bf16 %v228_v43  ;;  %v224_v49 = vld [vmem:[%s2607_s8 + $0x150] sm:$0xff] }
  0x77   : > { %4951 = vst [vmem:[#allocation62_spill] sm:$0xff] %v2957_v20  ;;  %v229_v20 = vld [vmem:[%s2607_s8 + $0x178] sm:$0xff]  ;;  %740 = vadd.xlane.f32.xlu0 %v739_v38  ;;  %v3011_v43 = vunpack.c.l.bf16 %v226_v27 }
  0x78   : > { %4952 = vst [vmem:[#allocation63_spill] sm:$0xff] %v2959_v42  ;;  %v2987_v42 = vunpack.c.h.bf16 %v219_v28  ;;  %v752_v28 = vadd.f32 %v543_v18, %v542_v51  ;;  %765 = vadd.xlane.f32.xlu2 %v764_v48  ;;  %v563_v46 = vmul.f32 %v2998_v35, %v2998_v35  ;;  %v3018_v18 = vunpack.c.h.bf16 %v226_v27 }
  0x79   : > { %4953 = vst [vmem:[#allocation64_spill] sm:$0xff] %v2966_v16  ;;  %v3004_v16 = vunpack.c.h.bf16 %v229_v20  ;;  %v3031_v27 = vunpack.c.h.bf16 %v224_v49 }
  0x7a   : > { %4954 = vst [vmem:[#allocation65_spill] sm:$0xff] %v2969_v62  ;;  %v758_v62 = vadd.f32 %v757_v52, %v548_v61  ;;  %v545_v38 = vmul.f32 %v2987_v42, %v2987_v42  ;;  %v562_v61 = vmul.f32 %v2993_v1, %v2993_v1  ;;  %v753_v52 = vadd.f32 %v752_v28, %v544_v41 }
  0x7b   : > { %4955 = vst [vmem:[#allocation66_spill] sm:$0xff] %v2978_v14  ;;  %v3002_v14 = vunpack.c.l.bf16 %v229_v20  ;;  %v565_v20 = vmul.f32 %v3004_v16, %v3004_v16  ;;  %v559_v28 = vmul.f32 %v3018_v18, %v3018_v18 }
  0x7c   : > { %4956 = vst [vmem:[#allocation67_spill] sm:$0xff] %v2980_v63  ;;  %v227_v63 = vld [vmem:[%s2607_s8 + $0x168] sm:$0xff]  ;;  %v759_v45 = vadd.f32 %v758_v62, %v549_v55  ;;  %v225_v62 = vld [vmem:[%s2607_s8 + $0x158] sm:$0xff]  ;;  %v777_v55 = vadd.f32 %v563_v46, %v562_v61  ;;  %v754_v41 = vadd.f32 %v753_v52, %v545_v38 }
  0x7d   : > { %4957 = vst [vmem:[#allocation68_spill] sm:$0xff] %v2984_v19  ;;  %v564_v51 = vmul.f32 %v3002_v14, %v3002_v14  ;;  %v3021_v48 = vunpack.c.l.bf16 %v227_v63  ;;  %v3038_v61 = vunpack.c.l.bf16 %v225_v62  ;;  %v235_v46 = vld [vmem:[%s2607_s8 + $0x1a8] sm:$0xff]  ;;  %v3041_v52 = vunpack.c.h.bf16 %v225_v62 }
  0x7e   : > { %4958 = vst [vmem:[#allocation69_spill] sm:$0xff] %v2987_v42  ;;  %760 = vadd.xlane.f32.xlu1 %v759_v45 }
  0x7f   : > { %4959 = vst [vmem:[#allocation70_spill] sm:$0xff] %v2993_v1  ;;  %v558_v1 = vmul.f32 %v3011_v43, %v3011_v43  ;;  %v778_v42 = vadd.f32 %v777_v55, %v564_v51  ;;  %v560_v45 = vmul.f32 %v3021_v48, %v3021_v48  ;;  %755 = vadd.xlane.f32.xlu0 %v754_v41  ;;  %v232_v55 = vld [vmem:[%s2607_s8 + $0x190] sm:$0xff] }
  0x80   : > { %4960 = vst [vmem:[#allocation71_spill] sm:$0xff] %v2998_v35  ;;  %v3023_v35 = vunpack.c.h.bf16 %v227_v63  ;;  %v555_v51 = vmul.f32 %v3031_v27, %v3031_v27 }
  0x81   : > { %4961 = vst [vmem:[#allocation72_spill] sm:$0xff] %v3002_v14  ;;  %v3029_v14 = vunpack.c.l.bf16 %v224_v49  ;;  %v772_v38 = vadd.f32 %v559_v28, %v558_v1  ;;  %v557_v1 = vmul.f32 %v3041_v52, %v3041_v52  ;;  %v3056_v28 = vunpack.c.l.bf16 %v235_v46 }
  0x82   : > { %4962 = vst [vmem:[#allocation73_spill] sm:$0xff] %v3004_v16  ;;  %v234_v16 = vld [vmem:[%s2607_s8 + $0x1a0] sm:$0xff]  ;;  %v561_v63 = vmul.f32 %v3023_v35, %v3023_v35 }
  0x83   : > { %4963 = vst [vmem:[#allocation74_spill] sm:$0xff] %v3011_v43  ;;  %v554_v49 = vmul.f32 %v3029_v14, %v3029_v14  ;;  %v3052_v43 = vunpack.c.h.bf16 %v234_v16  ;;  %v773_v41 = vadd.f32 %v772_v38, %v560_v45  ;;  %v230_v45 = vld [vmem:[%s2607_s8 + $0x180] sm:$0xff] }
  0x84   : > { %4964 = vst [vmem:[#allocation75_spill] sm:$0xff] %v3018_v18  ;;  %v3050_v18 = vunpack.c.l.bf16 %v234_v16  ;;  %v3065_v16 = vunpack.c.l.bf16 %v232_v55 }
  0x85   : > { %4965 = vst [vmem:[#allocation76_spill] sm:$0xff] %v3021_v48  ;;  %v779_v48 = vadd.f32 %v778_v42, %v565_v20  ;;  %v767_v62 = vadd.f32 %v555_v51, %v554_v49  ;;  %v575_v20 = vmul.f32 %v3052_v43, %v3052_v43  ;;  %v774_v38 = vadd.f32 %v773_v41, %v561_v63  ;;  %v240_v41 = vld [vmem:[%s2607_s8 + $0x1d0] sm:$0xff] }
  0x86   : > { %4966 = vst [vmem:[#allocation77_spill] sm:$0xff] %v3023_v35  ;;  %v556_v35 = vmul.f32 %v3038_v61, %v3038_v61  ;;  %v574_v42 = vmul.f32 %v3050_v18, %v3050_v18  ;;  %v576_v49 = vmul.f32 %v3056_v28, %v3056_v28  ;;  %v3070_v51 = vunpack.c.h.bf16 %v232_v55 }
  0x87   : > { %4967 = vst [vmem:[#allocation78_spill] sm:$0xff] %v3029_v14  ;;  %v233_v14 = vld [vmem:[%s2607_s8 + $0x198] sm:$0xff]  ;;  %780 = vadd.xlane.f32.xlu2 %v779_v48  ;;  %775 = vadd.xlane.f32.xlu1 %v774_v38  ;;  %v3083_v55 = vunpack.c.l.bf16 %v230_v45 }
  0x88   : > { %4968 = vst [vmem:[#allocation79_spill] sm:$0xff] %v3031_v27  ;;  %v3059_v27 = vunpack.c.h.bf16 %v235_v46  ;;  %v792_v46 = vadd.f32 %v575_v20, %v574_v42  ;;  %v571_v63 = vmul.f32 %v3070_v51, %v3070_v51  ;;  %v3090_v20 = vunpack.c.h.bf16 %v230_v45 }
  0x89   : > { %4969 = vst [vmem:[#allocation80_spill] sm:$0xff] %v3038_v61  ;;  %v3076_v61 = vunpack.c.h.bf16 %v233_v14  ;;  %v3103_v45 = vunpack.c.h.bf16 %v240_v41 }
  0x8a   : > { %4970 = vst [vmem:[#allocation81_spill] sm:$0xff] %v3041_v52  ;;  %v768_v52 = vadd.f32 %v767_v62, %v556_v35  ;;  %v577_v48 = vmul.f32 %v3059_v27, %v3059_v27  ;;  %v570_v35 = vmul.f32 %v3065_v16, %v3065_v16  ;;  %v793_v62 = vadd.f32 %v792_v46, %v576_v49 }
  0x8b   : > { %4971 = vst [vmem:[#allocation82_spill] sm:$0xff] %v3050_v18  ;;  %v3074_v18 = vunpack.c.l.bf16 %v233_v14  ;;  %v573_v14 = vmul.f32 %v3076_v61, %v3076_v61  ;;  %v567_v46 = vmul.f32 %v3090_v20, %v3090_v20 }
  0x8c   : > { %4972 = vst [vmem:[#allocation83_spill] sm:$0xff] %v3052_v43  ;;  %v231_v43 = vld [vmem:[%s2607_s8 + $0x188] sm:$0xff]  ;;  %v769_v19 = vadd.f32 %v768_v52, %v557_v1  ;;  %v241_v52 = vld [vmem:[%s2607_s8 + $0x1d8] sm:$0xff]  ;;  %v787_v1 = vadd.f32 %v571_v63, %v570_v35  ;;  %v794_v49 = vadd.f32 %v793_v62, %v577_v48 }
  0x8d   : > { %4973 = vst [vmem:[#allocation84_spill] sm:$0xff] %v3056_v28  ;;  %v572_v42 = vmul.f32 %v3074_v18, %v3074_v18  ;;  %v3093_v38 = vunpack.c.l.bf16 %v231_v43  ;;  %v3110_v35 = vunpack.c.l.bf16 %v241_v52  ;;  %v239_v63 = vld [vmem:[%s2607_s8 + $0x1c8] sm:$0xff]  ;;  %v3113_v62 = vunpack.c.h.bf16 %v241_v52 }
  0x8e   : > { %4974 = vst [vmem:[#allocation85_spill] sm:$0xff] %v3059_v27  ;;  %770 = vadd.xlane.f32.xlu0 %v769_v19 }
  0x8f   : > { %4975 = vst [vmem:[#allocation86_spill] sm:$0xff] %v3065_v16  ;;  %v566_v16 = vmul.f32 %v3083_v55, %v3083_v55  ;;  %v788_v27 = vadd.f32 %v787_v1, %v572_v42  ;;  %v568_v19 = vmul.f32 %v3093_v38, %v3093_v38  ;;  %795 = vadd.xlane.f32.xlu2 %v794_v49  ;;  %v236_v1 = vld [vmem:[%s2607_s8 + $0x1b0] sm:$0xff] }
  0x90   : > { %4976 = vst [vmem:[#allocation87_spill] sm:$0xff] %v3070_v51  ;;  %v3095_v51 = vunpack.c.h.bf16 %v231_v43  ;;  %v587_v42 = vmul.f32 %v3103_v45, %v3103_v45 }
  0x91   : > { %4977 = vst [vmem:[#allocation88_spill] sm:$0xff] %v3074_v18  ;;  %v3101_v18 = vunpack.c.l.bf16 %v240_v41  ;;  %v782_v48 = vadd.f32 %v567_v46, %v566_v16  ;;  %v589_v16 = vmul.f32 %v3113_v62, %v3113_v62  ;;  %v3128_v46 = vunpack.c.l.bf16 %v239_v63 }
  0x92   : > { %4978 = vst [vmem:[#allocation89_spill] sm:$0xff] %v3076_v61  ;;  %v238_v61 = vld [vmem:[%s2607_s8 + $0x1c0] sm:$0xff]  ;;  %v569_v43 = vmul.f32 %v3095_v51, %v3095_v51 }
  0x93   : > { %4979 = vst [vmem:[#allocation90_spill] sm:$0xff] %v3083_v55  ;;  %v586_v41 = vmul.f32 %v3101_v18, %v3101_v18  ;;  %v3124_v55 = vunpack.c.h.bf16 %v238_v61  ;;  %v783_v49 = vadd.f32 %v782_v48, %v568_v19  ;;  %v246_v19 = vld [vmem:[%s2607_s8 + $0x200] sm:$0xff] }
  0x94   : > { %4980 = vst [vmem:[#allocation91_spill] sm:$0xff] %v3090_v20  ;;  %v3122_v20 = vunpack.c.l.bf16 %v238_v61  ;;  %v3137_v61 = vunpack.c.l.bf16 %v236_v1 }
  0x95   : > { %4981 = vst [vmem:[#allocation92_spill] sm:$0xff] %v3093_v38  ;;  %v789_v38 = vadd.f32 %v788_v27, %v573_v14  ;;  %v807_v52 = vadd.f32 %v587_v42, %v586_v41  ;;  %v583_v14 = vmul.f32 %v3124_v55, %v3124_v55  ;;  %v784_v48 = vadd.f32 %v783_v49, %v569_v43  ;;  %v244_v49 = vld [vmem:[%s2607_s8 + $0x1f0] sm:$0xff] }
  0x96   : > { %4982 = vst [vmem:[#allocation93_spill] sm:$0xff] %v3095_v51  ;;  %v588_v51 = vmul.f32 %v3110_v35, %v3110_v35  ;;  %v582_v27 = vmul.f32 %v3122_v20, %v3122_v20  ;;  %v584_v41 = vmul.f32 %v3128_v46, %v3128_v46  ;;  %v3142_v42 = vunpack.c.h.bf16 %v236_v1 }
  0x97   : > { %4983 = vst [vmem:[#allocation94_spill] sm:$0xff] %v3101_v18  ;;  %v237_v18 = vld [vmem:[%s2607_s8 + $0x1b8] sm:$0xff]  ;;  %790 = vadd.xlane.f32.xlu1 %v789_v38  ;;  %785 = vadd.xlane.f32.xlu0 %v784_v48  ;;  %v3155_v1 = vunpack.c.l.bf16 %v246_v19 }
  0x98   : > { %4984 = vst [vmem:[#allocation95_spill] sm:$0xff] %v3103_v45  ;;  %v3131_v45 = vunpack.c.h.bf16 %v239_v63  ;;  %v802_v63 = vadd.f32 %v583_v14, %v582_v27  ;;  %v579_v43 = vmul.f32 %v3142_v42, %v3142_v42  ;;  %v3162_v14 = vunpack.c.h.bf16 %v246_v19 }
  0x99   : > { %4985 = vst [vmem:[#allocation96_spill] sm:$0xff] %v3110_v35  ;;  %v3148_v35 = vunpack.c.h.bf16 %v237_v18  ;;  %v3175_v19 = vunpack.c.h.bf16 %v244_v49 }
  0x9a   : > { %4986 = vst [vmem:[#allocation97_spill] sm:$0xff] %v3113_v62  ;;  %v808_v62 = vadd.f32 %v807_v52, %v588_v51  ;;  %v585_v38 = vmul.f32 %v3131_v45, %v3131_v45  ;;  %v578_v51 = vmul.f32 %v3137_v61, %v3137_v61  ;;  %v803_v52 = vadd.f32 %v802_v63, %v584_v41 }
  0x9b   : > { %4987 = vst [vmem:[#allocation98_spill] sm:$0xff] %v3122_v20  ;;  %v3146_v20 = vunpack.c.l.bf16 %v237_v18  ;;  %v581_v18 = vmul.f32 %v3148_v35, %v3148_v35  ;;  %v599_v63 = vmul.f32 %v3162_v14, %v3162_v14 }
  0x9c   : > { %4988 = vst [vmem:[#allocation99_spill] sm:$0xff] %v3124_v55  ;;  %v247_v55 = vld [vmem:[%s2607_s8 + $0x208] sm:$0xff]  ;;  %v809_v28 = vadd.f32 %v808_v62, %v589_v16  ;;  %v245_v62 = vld [vmem:[%s2607_s8 + $0x1f8] sm:$0xff]  ;;  %v797_v16 = vadd.f32 %v579_v43, %v578_v51  ;;  %v804_v41 = vadd.f32 %v803_v52, %v585_v38 }
  0x9d   : > { %4989 = vst [vmem:[#allocation100_spill] sm:$0xff] %v3128_v46  ;;  %v580_v27 = vmul.f32 %v3146_v20, %v3146_v20  ;;  %v3165_v48 = vunpack.c.l.bf16 %v247_v55  ;;  %v3182_v51 = vunpack.c.l.bf16 %v245_v62  ;;  %v243_v43 = vld [vmem:[%s2607_s8 + $0x1e8] sm:$0xff]  ;;  %v3185_v52 = vunpack.c.h.bf16 %v245_v62 }
  0x9e   : > { %4990 = vst [vmem:[#allocation101_spill] sm:$0xff] %v3131_v45  ;;  %810 = vadd.xlane.f32.xlu2 %v809_v28 }
  0x9f   : > { %4991 = vst [vmem:[#allocation102_spill] sm:$0xff] %v3137_v61  ;;  %v598_v61 = vmul.f32 %v3155_v1, %v3155_v1  ;;  %v798_v45 = vadd.f32 %v797_v16, %v580_v27  ;;  %v600_v28 = vmul.f32 %v3165_v48, %v3165_v48  ;;  %805 = vadd.xlane.f32.xlu1 %v804_v41  ;;  %v252_v16 = vld [vmem:[%s2607_s8 + $0x230] sm:$0xff] }
  0xa0   : > { %4992 = vst [vmem:[#allocation103_spill] sm:$0xff] %v3142_v42  ;;  %v3167_v42 = vunpack.c.h.bf16 %v247_v55  ;;  %v595_v27 = vmul.f32 %v3175_v19, %v3175_v19 }
  0xa1   : > { %4993 = vst [vmem:[#allocation104_spill] sm:$0xff] %v3146_v20  ;;  %v3173_v20 = vunpack.c.l.bf16 %v244_v49  ;;  %v822_v38 = vadd.f32 %v599_v63, %v598_v61  ;;  %v597_v61 = vmul.f32 %v3185_v52, %v3185_v52  ;;  %v3200_v63 = vunpack.c.l.bf16 %v243_v43 }
  0xa2   : > { %4994 = vst [vmem:[#allocation105_spill] sm:$0xff] %v3148_v35  ;;  %v242_v35 = vld [vmem:[%s2607_s8 + $0x1e0] sm:$0xff]  ;;  %v601_v55 = vmul.f32 %v3167_v42, %v3167_v42 }
  0xa3   : > { %4995 = vst [vmem:[#allocation106_spill] sm:$0xff] %v3155_v1  ;;  %v594_v49 = vmul.f32 %v3173_v20, %v3173_v20  ;;  %v3196_v1 = vunpack.c.h.bf16 %v242_v35  ;;  %v823_v41 = vadd.f32 %v822_v38, %v600_v28  ;;  %v250_v28 = vld [vmem:[%s2607_s8 + $0x220] sm:$0xff] }
  0xa4   : > { %4996 = vst [vmem:[#allocation107_spill] sm:$0xff] %v3162_v14  ;;  %v3194_v14 = vunpack.c.l.bf16 %v242_v35  ;;  %v3209_v35 = vunpack.c.l.bf16 %v252_v16 }
  0xa5   : > { %4997 = vst [vmem:[#allocation108_spill] sm:$0xff] %v3165_v48  ;;  %v799_v48 = vadd.f32 %v798_v45, %v581_v18  ;;  %v817_v62 = vadd.f32 %v595_v27, %v594_v49  ;;  %v591_v18 = vmul.f32 %v3196_v1, %v3196_v1  ;;  %v824_v38 = vadd.f32 %v823_v41, %v601_v55  ;;  %v248_v41 = vld [vmem:[%s2607_s8 + $0x210] sm:$0xff] }
  0xa6   : > { %4998 = vst [vmem:[#allocation109_spill] sm:$0xff] %v3167_v42  ;;  %v596_v42 = vmul.f32 %v3182_v51, %v3182_v51  ;;  %v590_v45 = vmul.f32 %v3194_v14, %v3194_v14  ;;  %v592_v49 = vmul.f32 %v3200_v63, %v3200_v63  ;;  %v3214_v27 = vunpack.c.h.bf16 %v252_v16 }
  0xa7   : > { %4999 = vst [vmem:[#allocation110_spill] sm:$0xff] %v3173_v20  ;;  %v253_v20 = vld [vmem:[%s2607_s8 + $0x238] sm:$0xff]  ;;  %800 = vadd.xlane.f32.xlu0 %v799_v48  ;;  %825 = vadd.xlane.f32.xlu2 %v824_v38  ;;  %v3227_v16 = vunpack.c.l.bf16 %v250_v28 }
  0xa8   : > { %5000 = vst [vmem:[#allocation111_spill] sm:$0xff] %v3175_v19  ;;  %v3203_v19 = vunpack.c.h.bf16 %v243_v43  ;;  %v812_v43 = vadd.f32 %v591_v18, %v590_v45  ;;  %v611_v55 = vmul.f32 %v3214_v27, %v3214_v27  ;;  %v3234_v18 = vunpack.c.h.bf16 %v250_v28 }
  0xa9   : > { %5001 = vst [vmem:[#allocation112_spill] sm:$0xff] %v3182_v51  ;;  %v3220_v51 = vunpack.c.h.bf16 %v253_v20  ;;  %v3247_v28 = vunpack.c.h.bf16 %v248_v41 }
  0xaa   : > { %5002 = vst [vmem:[#allocation113_spill] sm:$0xff] %v3185_v52  ;;  %v818_v52 = vadd.f32 %v817_v62, %v596_v42  ;;  %v593_v48 = vmul.f32 %v3203_v19, %v3203_v19  ;;  %v610_v42 = vmul.f32 %v3209_v35, %v3209_v35  ;;  %v813_v62 = vadd.f32 %v812_v43, %v592_v49 }
  0xab   : > { %5003 = vst [vmem:[#allocation114_spill] sm:$0xff] %v3194_v14  ;;  %v3218_v14 = vunpack.c.l.bf16 %v253_v20  ;;  %v613_v20 = vmul.f32 %v3220_v51, %v3220_v51  ;;  %v607_v43 = vmul.f32 %v3234_v18, %v3234_v18 }
  0xac   : > { %5004 = vst [vmem:[#allocation115_spill] sm:$0xff] %v3196_v1  ;;  %v251_v1 = vld [vmem:[%s2607_s8 + $0x228] sm:$0xff]  ;;  %v819_v46 = vadd.f32 %v818_v52, %v597_v61  ;;  %v249_v52 = vld [vmem:[%s2607_s8 + $0x218] sm:$0xff]  ;;  %v837_v61 = vadd.f32 %v611_v55, %v610_v42  ;;  %v814_v49 = vadd.f32 %v813_v62, %v593_v48 }
  0xad   : > { %5005 = vst [vmem:[#allocation116_spill] sm:$0xff] %v3200_v63  ;;  %v612_v45 = vmul.f32 %v3218_v14, %v3218_v14  ;;  %v3237_v38 = vunpack.c.l.bf16 %v251_v1  ;;  %v3254_v42 = vunpack.c.l.bf16 %v249_v52  ;;  %v259_v55 = vld [vmem:[%s2607_s8 + $0x268] sm:$0xff]  ;;  %v3257_v62 = vunpack.c.h.bf16 %v249_v52 }
  0xae   : > { %5006 = vst [vmem:[#allocation117_spill] sm:$0xff] %v3203_v19  ;;  %820 = vadd.xlane.f32.xlu1 %v819_v46 }
  0xaf   : > { %5007 = vst [vmem:[#allocation118_spill] sm:$0xff] %v3209_v35  ;;  %v606_v35 = vmul.f32 %v3227_v16, %v3227_v16  ;;  %v838_v19 = vadd.f32 %v837_v61, %v612_v45  ;;  %v608_v46 = vmul.f32 %v3237_v38, %v3237_v38  ;;  %815 = vadd.xlane.f32.xlu0 %v814_v49  ;;  %v256_v61 = vld [vmem:[%s2607_s8 + $0x250] sm:$0xff] }
  0xb0   : > { %5008 = vst [vmem:[#allocation119_spill] sm:$0xff] %v3214_v27  ;;  %v3239_v27 = vunpack.c.h.bf16 %v251_v1  ;;  %v603_v45 = vmul.f32 %v3247_v28, %v3247_v28 }
  0xb1   : > { %5009 = vst [vmem:[#allocation120_spill] sm:$0xff] %v3218_v14  ;;  %v3245_v14 = vunpack.c.l.bf16 %v248_v41  ;;  %v832_v48 = vadd.f32 %v607_v43, %v606_v35  ;;  %v605_v35 = vmul.f32 %v3257_v62, %v3257_v62  ;;  %v3272_v43 = vunpack.c.l.bf16 %v259_v55 }
  0xb2   : > { %5010 = vst [vmem:[#allocation121_spill] sm:$0xff] %v3220_v51  ;;  %v258_v51 = vld [vmem:[%s2607_s8 + $0x260] sm:$0xff]  ;;  %v609_v1 = vmul.f32 %v3239_v27, %v3239_v27 }
  0xb3   : > { %5011 = vst [vmem:[#allocation122_spill] sm:$0xff] %v3227_v16  ;;  %v602_v41 = vmul.f32 %v3245_v14, %v3245_v14  ;;  %v3268_v16 = vunpack.c.h.bf16 %v258_v51  ;;  %v833_v49 = vadd.f32 %v832_v48, %v608_v46  ;;  %v254_v46 = vld [vmem:[%s2607_s8 + $0x240] sm:$0xff] }
  0xb4   : > { %5012 = vst [vmem:[#allocation123_spill] sm:$0xff] %v3234_v18  ;;  %v3266_v18 = vunpack.c.l.bf16 %v258_v51  ;;  %v3281_v51 = vunpack.c.l.bf16 %v256_v61 }
  0xb5   : > { %5013 = vst [vmem:[#allocation124_spill] sm:$0xff] %v3237_v38  ;;  %v839_v38 = vadd.f32 %v838_v19, %v613_v20  ;;  %v827_v52 = vadd.f32 %v603_v45, %v602_v41  ;;  %v623_v20 = vmul.f32 %v3268_v16, %v3268_v16  ;;  %v834_v48 = vadd.f32 %v833_v49, %v609_v1  ;;  %v264_v49 = vld [vmem:[%s2607_s8 + $0x290] sm:$0xff] }
  0xb6   : > { %5014 = vst [vmem:[#allocation125_spill] sm:$0xff] %v3239_v27  ;;  %v604_v27 = vmul.f32 %v3254_v42, %v3254_v42  ;;  %v622_v19 = vmul.f32 %v3266_v18, %v3266_v18  ;;  %v624_v41 = vmul.f32 %v3272_v43, %v3272_v43  ;;  %v3286_v45 = vunpack.c.h.bf16 %v256_v61 }
  0xb7   : > { %5015 = vst [vmem:[#allocation126_spill] sm:$0xff] %v3245_v14  ;;  %v257_v14 = vld [vmem:[%s2607_s8 + $0x258] sm:$0xff]  ;;  %840 = vadd.xlane.f32.xlu2 %v839_v38  ;;  %835 = vadd.xlane.f32.xlu1 %v834_v48  ;;  %v3299_v61 = vunpack.c.l.bf16 %v254_v46 }
  0xb8   : > { %5016 = vst [vmem:[#allocation127_spill] sm:$0xff] %v3247_v28  ;;  %v3275_v28 = vunpack.c.h.bf16 %v259_v55  ;;  %v852_v55 = vadd.f32 %v623_v20, %v622_v19  ;;  %v619_v1 = vmul.f32 %v3286_v45, %v3286_v45  ;;  %v3306_v20 = vunpack.c.h.bf16 %v254_v46 }
  0xb9   : > { %5017 = vst [vmem:[#allocation128_spill] sm:$0xff] %v3254_v42  ;;  %v3292_v42 = vunpack.c.h.bf16 %v257_v14  ;;  %v3319_v46 = vunpack.c.h.bf16 %v264_v49 }
  0xba   : > { %5018 = vst [vmem:[#allocation129_spill] sm:$0xff] %v3257_v62  ;;  %v828_v62 = vadd.f32 %v827_v52, %v604_v27  ;;  %v625_v38 = vmul.f32 %v3275_v28, %v3275_v28  ;;  %v618_v27 = vmul.f32 %v3281_v51, %v3281_v51  ;;  %v853_v52 = vadd.f32 %v852_v55, %v624_v41 }
  0xbb   : > { %5019 = vst [vmem:[#allocation130_spill] sm:$0xff] %v3266_v18  ;;  %v3290_v18 = vunpack.c.l.bf16 %v257_v14  ;;  %v621_v14 = vmul.f32 %v3292_v42, %v3292_v42  ;;  %v615_v55 = vmul.f32 %v3306_v20, %v3306_v20 }
  0xbc   : > { %5020 = vst [vmem:[#allocation131_spill] sm:$0xff] %v3268_v16  ;;  %v255_v16 = vld [vmem:[%s2607_s8 + $0x248] sm:$0xff]  ;;  %v829_v63 = vadd.f32 %v828_v62, %v605_v35  ;;  %v265_v62 = vld [vmem:[%s2607_s8 + $0x298] sm:$0xff]  ;;  %v847_v35 = vadd.f32 %v619_v1, %v618_v27  ;;  %v854_v41 = vadd.f32 %v853_v52, %v625_v38 }
  0xbd   : > { %5021 = vst [vmem:[#allocation132_spill] sm:$0xff] %v3272_v43  ;;  %v620_v19 = vmul.f32 %v3290_v18, %v3290_v18  ;;  %v3309_v48 = vunpack.c.l.bf16 %v255_v16  ;;  %v3326_v27 = vunpack.c.l.bf16 %v265_v62  ;;  %v263_v1 = vld [vmem:[%s2607_s8 + $0x288] sm:$0xff]  ;;  %v3329_v52 = vunpack.c.h.bf16 %v265_v62 }
  0xbe   : > { %5022 = vst [vmem:[#allocation133_spill] sm:$0xff] %v3275_v28  ;;  %830 = vadd.xlane.f32.xlu0 %v829_v63 }
  0xbf   : > { %5023 = vst [vmem:[#allocation134_spill] sm:$0xff] %v3281_v51  ;;  %v614_v51 = vmul.f32 %v3299_v61, %v3299_v61  ;;  %v848_v28 = vadd.f32 %v847_v35, %v620_v19  ;;  %v616_v63 = vmul.f32 %v3309_v48, %v3309_v48  ;;  %855 = vadd.xlane.f32.xlu2 %v854_v41  ;;  %v260_v35 = vld [vmem:[%s2607_s8 + $0x270] sm:$0xff] }
  0xc0   : > { %5024 = vst [vmem:[#allocation135_spill] sm:$0xff] %v3286_v45  ;;  %v3311_v45 = vunpack.c.h.bf16 %v255_v16  ;;  %v635_v19 = vmul.f32 %v3319_v46, %v3319_v46 }
  0xc1   : > { %5025 = vst [vmem:[#allocation136_spill] sm:$0xff] %v3290_v18  ;;  %v3317_v18 = vunpack.c.l.bf16 %v264_v49  ;;  %v842_v38 = vadd.f32 %v615_v55, %v614_v51  ;;  %v637_v51 = vmul.f32 %v3329_v52, %v3329_v52  ;;  %v3344_v55 = vunpack.c.l.bf16 %v263_v1 }
  0xc2   : > { %5026 = vst [vmem:[#allocation137_spill] sm:$0xff] %v3292_v42  ;;  %v262_v42 = vld [vmem:[%s2607_s8 + $0x280] sm:$0xff]  ;;  %v617_v16 = vmul.f32 %v3311_v45, %v3311_v45 }
  0xc3   : > { %5027 = vst [vmem:[#allocation138_spill] sm:$0xff] %v3299_v61  ;;  %v634_v49 = vmul.f32 %v3317_v18, %v3317_v18  ;;  %v3340_v61 = vunpack.c.h.bf16 %v262_v42  ;;  %v843_v41 = vadd.f32 %v842_v38, %v616_v63  ;;  %v270_v63 = vld [vmem:[%s2607_s8 + $0x2c0] sm:$0xff] }
  0xc4   : > { %5028 = vst [vmem:[#allocation139_spill] sm:$0xff] %v3306_v20  ;;  %v3338_v20 = vunpack.c.l.bf16 %v262_v42  ;;  %v3353_v42 = vunpack.c.l.bf16 %v260_v35 }
  0xc5   : > { %5029 = vst [vmem:[#allocation140_spill] sm:$0xff] %v3309_v48  ;;  %v849_v48 = vadd.f32 %v848_v28, %v621_v14  ;;  %v867_v62 = vadd.f32 %v635_v19, %v634_v49  ;;  %v631_v14 = vmul.f32 %v3340_v61, %v3340_v61  ;;  %v844_v38 = vadd.f32 %v843_v41, %v617_v16  ;;  %v268_v41 = vld [vmem:[%s2607_s8 + $0x2b0] sm:$0xff] }
  0xc6   : > { %5030 = vst [vmem:[#allocation141_spill] sm:$0xff] %v3311_v45  ;;  %v636_v45 = vmul.f32 %v3326_v27, %v3326_v27  ;;  %v630_v28 = vmul.f32 %v3338_v20, %v3338_v20  ;;  %v632_v49 = vmul.f32 %v3344_v55, %v3344_v55  ;;  %v3358_v19 = vunpack.c.h.bf16 %v260_v35 }
  0xc7   : > { %5031 = vst [vmem:[#allocation142_spill] sm:$0xff] %v3317_v18  ;;  %v261_v18 = vld [vmem:[%s2607_s8 + $0x278] sm:$0xff]  ;;  %850 = vadd.xlane.f32.xlu1 %v849_v48  ;;  %845 = vadd.xlane.f32.xlu0 %v844_v38  ;;  %v3371_v35 = vunpack.c.l.bf16 %v270_v63 }
  0xc8   : > { %5032 = vst [vmem:[#allocation143_spill] sm:$0xff] %v3319_v46  ;;  %v3347_v46 = vunpack.c.h.bf16 %v263_v1  ;;  %v862_v1 = vadd.f32 %v631_v14, %v630_v28  ;;  %v627_v16 = vmul.f32 %v3358_v19, %v3358_v19  ;;  %v3378_v14 = vunpack.c.h.bf16 %v270_v63  ;;  %v266_v63 = vld [vmem:[%s2607_s8 + $0x2a0] sm:$0xff] }
  0xc9   : > { %5033 = vst [vmem:[#allocation144_spill] sm:$0xff] %v3326_v27  ;;  %v3364_v27 = vunpack.c.h.bf16 %v261_v18 }
  0xca   : > { %5034 = vst [vmem:[#allocation145_spill] sm:$0xff] %v3329_v52  ;;  %v868_v52 = vadd.f32 %v867_v62, %v636_v45  ;;  %v633_v48 = vmul.f32 %v3347_v46, %v3347_v46  ;;  %v626_v45 = vmul.f32 %v3353_v42, %v3353_v42  ;;  %v863_v62 = vadd.f32 %v862_v1, %v632_v49 }
  0xcb   : > { %5035 = vst [vmem:[#allocation146_spill] sm:$0xff] %v3338_v20  ;;  %v3362_v20 = vunpack.c.l.bf16 %v261_v18  ;;  %v629_v18 = vmul.f32 %v3364_v27, %v3364_v27  ;;  %v647_v1 = vmul.f32 %v3378_v14, %v3378_v14 }
  0xcc   : > { %5036 = vst [vmem:[#allocation147_spill] sm:$0xff] %v3340_v61  ;;  %v271_v61 = vld [vmem:[%s2607_s8 + $0x2c8] sm:$0xff]  ;;  %v869_v43 = vadd.f32 %v868_v52, %v637_v51  ;;  %v269_v52 = vld [vmem:[%s2607_s8 + $0x2b8] sm:$0xff]  ;;  %v857_v51 = vadd.f32 %v627_v16, %v626_v45  ;;  %v864_v49 = vadd.f32 %v863_v62, %v633_v48 }
  0xcd   : > { %5037 = vst [vmem:[#allocation148_spill] sm:$0xff] %v3344_v55  ;;  %v628_v28 = vmul.f32 %v3362_v20, %v3362_v20  ;;  %v3381_v38 = vunpack.c.l.bf16 %v271_v61  ;;  %v3398_v45 = vunpack.c.l.bf16 %v269_v52  ;;  %v267_v16 = vld [vmem:[%s2607_s8 + $0x2a8] sm:$0xff]  ;;  %v3401_v62 = vunpack.c.h.bf16 %v269_v52 }
  0xce   : > { %5038 = vst [vmem:[#allocation149_spill] sm:$0xff] %v3347_v46  ;;  %870 = vadd.xlane.f32.xlu2 %v869_v43 }
  0xcf   : > { %5039 = vst [vmem:[#allocation150_spill] sm:$0xff] %v3353_v42  ;;  %v646_v42 = vmul.f32 %v3371_v35, %v3371_v35  ;;  %v858_v46 = vadd.f32 %v857_v51, %v628_v28  ;;  %v648_v43 = vmul.f32 %v3381_v38, %v3381_v38  ;;  %865 = vadd.xlane.f32.xlu1 %v864_v49 }
  0xd0   : > { %5040 = vst [vmem:[#allocation151_spill] sm:$0xff] %v3358_v19  ;;  %v3383_v19 = vunpack.c.h.bf16 %v271_v61 }
  0xd1   : > { %5041 = vst [vmem:[#allocation152_spill] sm:$0xff] %v3362_v20  ;;  %v3389_v20 = vunpack.c.l.bf16 %v268_v41  ;;  %v882_v48 = vadd.f32 %v647_v1, %v646_v42  ;;  %v859_v51 = vadd.f32 %v858_v46, %v629_v18  ;;  %v645_v42 = vmul.f32 %v3401_v62, %v3401_v62 }
  0xd2   : > { %5042 = vst [vmem:[#allocation153_spill] sm:$0xff] %v3364_v27  ;;  %v3391_v27 = vunpack.c.h.bf16 %v268_v41  ;;  %v649_v61 = vmul.f32 %v3383_v19, %v3383_v19  ;;  %v3415_v1 = vunpack.c.l.bf16 %v267_v16 }
  0xd3   : > { %5043 = vst [vmem:[#allocation154_spill] sm:$0xff] %v3371_v35  ;;  %v642_v41 = vmul.f32 %v3389_v20, %v3389_v20  ;;  %v883_v49 = vadd.f32 %v882_v48, %v648_v43  ;;  %860 = vadd.xlane.f32.xlu0 %v859_v51  ;;  %v274_v51 = vld [vmem:[%s2607_s8 + $0x2e0] sm:$0xff] }
  0xd4   : > { %5044 = vst [vmem:[#allocation155_spill] sm:$0xff] %v3378_v14  ;;  %v643_v28 = vmul.f32 %v3391_v27, %v3391_v27  ;;  %v3409_v14 = vunpack.c.l.bf16 %v266_v63  ;;  %v640_v48 = vmul.f32 %v3415_v1, %v3415_v1 }
  0xd5   : > { %5045 = vst [vmem:[#allocation156_spill] sm:$0xff] %v3381_v38  ;;  %v644_v38 = vmul.f32 %v3398_v45, %v3398_v45 }
  0xd6   : > { %5046 = vst [vmem:[#allocation157_spill] sm:$0xff] %v3383_v19  ;;  %v3411_v19 = vunpack.c.h.bf16 %v266_v63  ;;  %v877_v52 = vadd.f32 %v643_v28, %v642_v41  ;;  %v638_v46 = vmul.f32 %v3409_v14, %v3409_v14  ;;  %v276_v63 = vld [vmem:[%s2607_s8 + $0x2f0] sm:$0xff]  ;;  %v277_v41 = vld [vmem:[%s2607_s8 + $0x2f8] sm:$0xff] }
  0xd7   : > { %5047 = vst [vmem:[#allocation158_spill] sm:$0xff] %v3389_v20  ;;  %v275_v20 = vld [vmem:[%s2607_s8 + $0x2e8] sm:$0xff]  ;;  %v3431_v35 = vunpack.c.l.bf16 %v276_v63 }
  0xd8   : > { %5048 = vst [vmem:[#allocation159_spill] sm:$0xff] %v3391_v27  ;;  %v3417_v27 = vunpack.c.h.bf16 %v267_v16  ;;  %v639_v18 = vmul.f32 %v3411_v19, %v3411_v19  ;;  %v878_v43 = vadd.f32 %v877_v52, %v644_v38  ;;  %v686_v38 = vpop.xlane.xlu2 %685  ;;  %v3435_v52 = vunpack.c.l.bf16 %v277_v41 }
  0xd9   : > { %5049 = vst [vmem:[#allocation160_spill] sm:$0xff] %v3398_v45  ;;  %v884_v45 = vadd.f32 %v883_v49, %v649_v61  ;;  %v3433_v49 = vunpack.c.h.bf16 %v276_v63 }
  0xda   : > { %5050 = vst [vmem:[#allocation161_spill] sm:$0xff] %v3401_v62  ;;  %v2486_v62 = vmov 512.0   ;;  %v641_v28 = vmul.f32 %v3417_v27, %v3417_v27  ;;  %v872_v16 = vadd.f32 %v639_v18, %v638_v46  ;;  %v658_v46 = vmul.f32 %v3431_v35, %v3431_v35 }
  0xdb   : > { %5051 = vst [vmem:[#allocation162_spill] sm:$0xff] %v3409_v14  ;;  %2253 = vrcp.f32 %v2486_v62  ;;  %885 = vadd.xlane.f32.xlu2 %v884_v45  ;;  %v879_v14 = vadd.f32 %v878_v43, %v645_v42  ;;  %v3437_v62 = vunpack.c.h.bf16 %v277_v41  ;;  %v3441_v18 = vunpack.c.l.bf16 %v274_v51  ;;  %v272_v43 = vld [vmem:[%s2607_s8 + $0x2d0] sm:$0xff] }
  0xdc   : > { %5052 = vst [vmem:[#allocation163_spill] sm:$0xff] %v3411_v19  ;;  %v873_v61 = vadd.f32 %v872_v16, %v640_v48  ;;  %v3443_v45 = vunpack.c.h.bf16 %v274_v51  ;;  %v3445_v42 = vunpack.c.l.bf16 %v275_v20  ;;  %v659_v63 = vmul.f32 %v3433_v49, %v3433_v49  ;;  %v273_v16 = vld [vmem:[%s2607_s8 + $0x2d8] sm:$0xff] }
  0xdd   : > { %5053 = vst [vmem:[#allocation164_spill] sm:$0xff] %v3415_v1  ;;  %880 = vadd.xlane.f32.xlu1 %v879_v14  ;;  %v676_v1 = vpop.xlane.xlu1 %675  ;;  %v660_v41 = vmul.f32 %v3435_v52, %v3435_v52  ;;  %v3463_v55 = vunpack.c.l.bf16 %v272_v43  ;;  %v3469_v34 = vunpack.c.l.bf16 %v273_v16 }
  0xde   : > { %5054 = vst [vmem:[#allocation165_spill] sm:$0xff] %v3417_v27  ;;  %v874_v48 = vadd.f32 %v873_v61, %v641_v28  ;;  %v3453_v27 = vunpack.c.h.bf16 %v275_v20  ;;  %v655_v51 = vmul.f32 %v3443_v45, %v3443_v45  ;;  %v656_v19 = vmul.f32 %v3445_v42, %v3445_v42  ;;  %v666_v61 = vpop.xlane.xlu0 %665 }
  0xdf   : > { %5055 = vst [vmem:[#allocation166_spill] sm:$0xff] %v3431_v35  ;;  %v654_v35 = vmul.f32 %v3441_v18, %v3441_v18 }
  0xe0   : > { %5056 = vst [vmem:[#allocation167_spill] sm:$0xff] %v3433_v49  ;;  %875 = vadd.xlane.f32.xlu0 %v874_v48  ;;  %v661_v49 = vmul.f32 %v3437_v62, %v3437_v62  ;;  %v657_v20 = vmul.f32 %v3453_v27, %v3453_v27  ;;  %v650_v48 = vmul.f32 %v3463_v55, %v3463_v55 }
  0xe1   : > { %5057 = vst [vmem:[#allocation168_spill] sm:$0xff] %v3435_v52  ;;  %v2254_v14 = vpop.eup %2253  ;;  %v897_v52 = vadd.f32 %v659_v63, %v658_v46  ;;  %v892_v13 = vadd.f32 %v655_v51, %v654_v35  ;;  %v652_v63 = vmul.f32 %v3469_v34, %v3469_v34 }
  0xe2   : > { %5058 = vst [vmem:[#allocation169_spill] sm:$0xff] %v3437_v62  ;;  %v903_v28 = vmul.f32 512.0, %v2254_v14  ;;  %vm907_vm0 = vweird.f32 %v2254_v14 }
  0xe3   : > { %5059 = vst [vmem:[#allocation170_spill] sm:$0xff] %v3441_v18  ;;  %v3467_v18 = vunpack.c.h.bf16 %v272_v43  ;;  %v898_v33 = vadd.f32 %v897_v52, %v660_v41  ;;  %v893_v23 = vadd.f32 %v892_v13, %v656_v19  ;;  %v691_v43 = vpop.xlane.xlu2 %690 }
  0xe4   : > { %5060 = vst [vmem:[#allocation171_spill] sm:$0xff] %v3443_v45  ;;  %v904_v45 = vsub.f32 1.0, %v903_v28 }
  0xe5   : > { %5061 = vst [vmem:[#allocation172_spill] sm:$0xff] %v3445_v42  ;;  %v3471_v42 = vunpack.c.h.bf16 %v273_v16  ;;  %v651_v46 = vmul.f32 %v3467_v18, %v3467_v18  ;;  %v899_v35 = vadd.f32 %v898_v33, %v661_v49  ;;  %v894_v51 = vadd.f32 %v893_v23, %v657_v20  ;;  %v681_v28 = vpop.xlane.xlu1 %680 }
  0xe6   : > { %5062 = vst [vmem:[#allocation173_spill] sm:$0xff] %v3453_v27  ;;  %v905_v27 = vmul.f32 %v2254_v14, %v904_v45 }
  0xe7   : > { %5063 = vst [vmem:[#allocation174_spill] sm:$0xff] %v3463_v55  ;;  %v653_v52 = vmul.f32 %v3471_v42, %v3471_v42  ;;  %v887_v41 = vadd.f32 %v651_v46, %v650_v48  ;;  %900 = vadd.xlane.f32.xlu2 %v899_v35  ;;  %895 = vadd.xlane.f32.xlu1 %v894_v51 }
  0xe8   : > { %5064 = vst [vmem:[#allocation175_spill] sm:$0xff] %v3467_v18  ;;  %v906_v16 = vadd.f32 %v2254_v14, %v905_v27  ;;  %v671_v18 = vpop.xlane.xlu0 %670 }
  0xe9   : > { %5065 = vst [vmem:[#allocation176_spill] sm:$0xff] %v3469_v34  ;;  %v888_v13 = vadd.f32 %v887_v41, %v652_v63 }
  0xea   : > { %5066 = vst [vmem:[#allocation177_spill] sm:$0xff] %v3471_v42  ;;  %v3481_v19 = vsel %vm907_vm0, %v2254_v14, %v906_v16 }
  0xeb   : > { %5067 = vst [vmem:[#allocation178_spill] sm:$0xff] %v3481_v19  ;;  %v913_v55 = vmul.f32 %v3481_v19, %v686_v38  ;;  %v911_v45 = vmul.f32 %v3481_v19, %v676_v1  ;;  %v909_v33 = vmul.f32 %v3481_v19, %v666_v61  ;;  %v889_v49 = vadd.f32 %v888_v13, %v653_v52  ;;  %v706_v38 = vpop.xlane.xlu2 %705 }
  0xec   : > { %v914_v23 = vmul.f32 %v3481_v19, %v691_v43  ;;  %v912_v20 = vmul.f32 %v3481_v19, %v681_v28  ;;  %v910_v27 = vmul.f32 %v3481_v19, %v671_v18  ;;  %v1677_v43 = vld [vmem:[#allocation5] sm:$0xf] }
  0xed   : > { %v3489_v48 = vadd.f32 1e-06, %v913_v55  ;;  %v3491_v46 = vadd.f32 1e-06, %v911_v45  ;;  %v3493_v14 = vadd.f32 1e-06, %v909_v33  ;;  %890 = vadd.xlane.f32.xlu0 %v889_v49  ;;  %v701_v35 = vpop.xlane.xlu1 %700  ;;  %v917_v55 = vmul.f32 %v3481_v19, %v706_v38 }
  0xee   : > { %v3495_v63 = vadd.f32 1e-06, %v914_v23  ;;  %v3498_v1 = vadd.f32 1e-06, %v912_v20  ;;  %v3501_v61 = vadd.f32 1e-06, %v910_v27  ;;  %v916_v18 = vmul.f32 %v3481_v19, %v701_v35 }
  0xef   : > { %2255 = vrsqrt.f32 %v3489_v48  ;;  %v3508_v52 = vadd.f32 1e-06, %v917_v55  ;;  %v3514_v13 = vperm.slane %v1677_v43, 0  ;;  %v3521_v49 = vperm.slane %v1677_v43, 1 }
  0xf0   : > { %2257 = vrsqrt.f32 %v3491_v46  ;;  %v696_v51 = vpop.xlane.xlu0 %695  ;;  %v3510_v41 = vadd.f32 1e-06, %v916_v18  ;;  %v3523_v23 = vperm.slane %v1677_v43, 2  ;;  %v3527_v38 = vperm.slane %v1677_v43, 3 }
  0xf1   : > { %2259 = vrsqrt.f32 %v3493_v14  ;;  %v915_v16 = vmul.f32 %v3481_v19, %v696_v51  ;;  %vm1051_vm1 = vweird.f32 %v3489_v48  ;;  %vm1031_vm2 = vweird.f32 %v3491_v46 }
  0xf2   : > { %2261 = vrsqrt.f32 %v3495_v63  ;;  %vm1011_vm5 = vweird.f32 %v3493_v14  ;;  %vm1061_vm8 = vweird.f32 %v3495_v63  ;;  %vm1041_vm10 = vweird.f32 %v3498_v1 }
  0xf3   : > { %2263 = vrsqrt.f32 %v3498_v1  ;;  %v3517_v45 = vadd.f32 1e-06, %v915_v16  ;;  %v721_v55 = vpop.xlane.xlu2 %720 }
  0xf4   : > { %2265 = vrsqrt.f32 %v3501_v61  ;;  %v3549_v60 = vmul.f32 %v3481_v19, %v721_v55 }
  0xf5   : > { %v2256_v28 = vpop.eup %2255  ;;  %2267 = vrsqrt.f32 %v3508_v52  ;;  %v716_v43 = vpop.xlane.xlu1 %715 }
  0xf6   : > { %v3519_v33 = vpop.eup %2257  ;;  %v1046_v20 = vmul.f32 %v2256_v28, %v3489_v48  ;;  %2269 = vrsqrt.f32 %v3510_v41  ;;  %vm1052_vm3 = vweird.f32 %v2256_v28  ;;  %v3558_v37 = vmul.f32 %v3481_v19, %v716_v43 }
  0xf7   : > { %v2260_v27 = vpop.eup %2259  ;;  %v1026_v35 = vmul.f32 %v3519_v33, %v3491_v46  ;;  %vm1032_vm4 = vweird.f32 %v3519_v33  ;;  %2271 = vrsqrt.f32 %v3517_v45  ;;  %vm1053_vm11 = vmor %vm1051_vm1, %vm1052_vm3  ;;  %vm1021_vm1 = vweird.f32 %v3501_v61 }
  0xf8   : > { %v3533_v18 = vpop.eup %2261  ;;  %v1047_v51 = vmul.f32 %v2256_v28, %v1046_v20  ;;  %v1006_v16 = vmul.f32 %v2260_v27, %v3493_v14  ;;  %vm1012_vm6 = vweird.f32 %v2260_v27  ;;  %vm1033_vm12 = vmor %vm1031_vm2, %vm1032_vm4  ;;  %vm1091_vm2 = vweird.f32 %v3508_v52 }
  0xf9   : > { %v3538_v42 = vpop.eup %2263  ;;  %v1027_v34 = vmul.f32 %v3519_v33, %v1026_v35  ;;  %v1056_v62 = vmul.f32 %v3533_v18, %v3495_v63  ;;  %vm1062_vm7 = vweird.f32 %v3533_v18  ;;  %vm1013_vm13 = vmor %vm1011_vm5, %vm1012_vm6  ;;  %vm1081_vm3 = vweird.f32 %v3510_v41 }
  0xfa   : > { %v3544_v15 = vpop.eup %2265  ;;  %v1048_v20 = vmul.f32 0.5, %v1047_v51  ;;  %v1007_v2 = vmul.f32 %v2260_v27, %v1006_v16  ;;  %v1036_v0 = vmul.f32 %v3538_v42, %v3498_v1  ;;  %vm1042_vm9 = vweird.f32 %v3538_v42  ;;  %vm1063_vm15 = vmor %vm1061_vm8, %vm1062_vm7 }
  0xfb   : > { %v3551_v57 = vpop.eup %2267  ;;  %v1028_v47 = vmul.f32 0.5, %v1027_v34  ;;  %v1057_v35 = vmul.f32 %v3533_v18, %v1056_v62  ;;  %v1016_v44 = vmul.f32 %v3544_v15, %v3501_v61  ;;  %vm1022_vm14 = vweird.f32 %v3544_v15  ;;  %vm1043_vm0 = vmor %vm1041_vm10, %vm1042_vm9 }
  0xfc   : > { %v3560_v51 = vpop.eup %2269  ;;  %v1049_v16 = vsub.f32 1.5, %v1048_v20  ;;  %v1008_v36 = vmul.f32 0.5, %v1007_v2  ;;  %v1037_v55 = vmul.f32 %v3538_v42, %v1036_v0  ;;  %v1086_v32 = vmul.f32 %v3551_v57, %v3508_v52  ;;  %vm1023_vm5 = vmor %vm1021_vm1, %vm1022_vm14 }
  0xfd   : > { %v1029_v34 = vsub.f32 1.5, %v1028_v47  ;;  %v1058_v22 = vmul.f32 0.5, %v1057_v35  ;;  %v1017_v62 = vmul.f32 %v3544_v15, %v1016_v44  ;;  %v3570_v20 = vpop.eup %2271  ;;  %v3580_v44 = vmul.f32 %v3560_v51, %v3510_v41 }
  0xfe   : > { %v1050_v21 = vmul.f32 %v2256_v28, %v1049_v16  ;;  %v1009_v43 = vsub.f32 1.5, %v1008_v36  ;;  %v1038_v19 = vmul.f32 0.5, %v1037_v55  ;;  %v1087_v2 = vmul.f32 %v3551_v57, %v1086_v32 }
  0xff   : > { %v1030_v47 = vmul.f32 %v3519_v33, %v1029_v34  ;;  %v1059_v0 = vsub.f32 1.5, %v1058_v22  ;;  %v3576_v35 = vmul.f32 0.5, %v1017_v62  ;;  %vm1092_vm4 = vweird.f32 %v3551_v57 }
 0x100   : > { %v1054_v36 = vsel %vm1053_vm11, %v2256_v28, %v1050_v21  ;;  %v1010_v32 = vmul.f32 %v2260_v27, %v1009_v43  ;;  %v1039_v16 = vsub.f32 1.5, %v1038_v19  ;;  %v3586_v55 = vmul.f32 0.5, %v1087_v2  ;;  %vm1093_vm7 = vmor %vm1091_vm2, %vm1092_vm4 }
 0x101   : > { %v1501_v48 = vmul.f32 %v1054_v36, %v2620_v3  ;;  %v1502_v22 = vmul.f32 %v1054_v36, %v2622_v4  ;;  %v1503_v34 = vmul.f32 %v1054_v36, %v2624_v5  ;;  %v1504_v62 = vmul.f32 %v1054_v36, %v2626_v6 }
 0x102   : > { %v1034_v21 = vsel %vm1033_vm12, %v3519_v33, %v1030_v47  ;;  %v1014_v46 = vsel %vm1013_vm13, %v2260_v27, %v1010_v32  ;;  %v1060_v28 = vmul.f32 %v3533_v18, %v1059_v0  ;;  %v1040_v19 = vmul.f32 %v3538_v42, %v1039_v16 }
 0x103   : > { %v1703_v43 = vmul.f32 %v3514_v13, %v1501_v48  ;;  %v1704_v3 = vmul.f32 %v3521_v49, %v1502_v22  ;;  %v1705_v4 = vmul.f32 %v3523_v23, %v1503_v34  ;;  %v1706_v5 = vmul.f32 %v3527_v38, %v1504_v62 }
 0x104   : > { %v1493_v6 = vmul.f32 %v1034_v21, %v2629_v8  ;;  %v1494_v14 = vmul.f32 %v1034_v21, %v2631_v9  ;;  %v1495_v33 = vmul.f32 %v1034_v21, %v2633_v10  ;;  %v1496_v27 = vmul.f32 %v1034_v21, %v2635_v11 }
 0x105   : > { %v1887_v2 = vpack.c.bf16 %v1704_v3, %v1703_v43  ;;  %v1888_v47 = vpack.c.bf16 %v1706_v5, %v1705_v4  ;;  %v1485_v0 = vmul.f32 %v1014_v46, %v2656_v24  ;;  %v1486_v36 = vmul.f32 %v1014_v46, %v2658_v25 }
 0x106   : > { %v1695_v32 = vmul.f32 %v3514_v13, %v1493_v6  ;;  %v1696_v16 = vmul.f32 %v3521_v49, %v1494_v14  ;;  %v1697_v8 = vmul.f32 %v3523_v23, %v1495_v33  ;;  %v1698_v9 = vmul.f32 %v3527_v38, %v1496_v27 }
 0x107   : > { %1983 = vst [vmem:[%s3619_s20 + $0x40] sm:$0xff] %v1887_v2  ;;  %v1487_v10 = vmul.f32 %v1014_v46, %v2660_v26  ;;  %v1488_v11 = vmul.f32 %v1014_v46, %v2663_v29  ;;  %v1687_v24 = vmul.f32 %v3514_v13, %v1485_v0  ;;  %v1688_v25 = vmul.f32 %v3521_v49, %v1486_v36 }
 0x108   : > { %1984 = vst [vmem:[%s3619_s20 + $0x48] sm:$0xff] %v1888_v47  ;;  %v1883_v63 = vpack.c.bf16 %v1696_v16, %v1695_v32  ;;  %v1884_v48 = vpack.c.bf16 %v1698_v9, %v1697_v8  ;;  %v1064_v26 = vsel %vm1063_vm15, %v3533_v18, %v1060_v28  ;;  %v1044_v22 = vsel %vm1043_vm0, %v3538_v42, %v1040_v19  ;;  %v3664_v47 = vpop.xlane.xlu0 %710 }
 0x109   : > { %v1689_v29 = vmul.f32 %v3523_v23, %v1487_v10  ;;  %v1690_v34 = vmul.f32 %v3527_v38, %v1488_v11  ;;  %v1879_v62 = vpack.c.bf16 %v1688_v25, %v1687_v24  ;;  %v1505_v21 = vmul.f32 %v1064_v26, %v2665_v30  ;;  %v5068_v11 = vld [vmem:[#allocation11_spill] sm:$0xff]  ;;  %v5069_v25 = vld [vmem:[#allocation12_spill] sm:$0xff] }
 0x10a   : > { %1979 = vst [vmem:[%s3619_s20 + $0x20] sm:$0xff] %v1883_v63  ;;  %v1506_v1 = vmul.f32 %v1064_v26, %v2667_v31  ;;  %v1507_v46 = vmul.f32 %v1064_v26, %v2678_v39  ;;  %v1508_v18 = vmul.f32 %v1064_v26, %v2680_v40  ;;  %v1497_v42 = vmul.f32 %v1044_v22, %v2692_v50  ;;  %v5070_v63 = vld [vmem:[#allocation13_spill] sm:$0xff] }
 0x10b   : > { %1980 = vst [vmem:[%s3619_s20 + $0x28] sm:$0xff] %v1884_v48  ;;  %v1880_v28 = vpack.c.bf16 %v1690_v34, %v1689_v29  ;;  %v1707_v19 = vmul.f32 %v3514_v13, %v1505_v21  ;;  %v1498_v43 = vmul.f32 %v1044_v22, %v2694_v53  ;;  %v1499_v30 = vmul.f32 %v1044_v22, %v2696_v54 }
 0x10c   : > { %1975 = vst [vmem:[%s3619_s20] sm:$0xff] %v1879_v62  ;;  %v1708_v3 = vmul.f32 %v3521_v49, %v1506_v1  ;;  %v1709_v4 = vmul.f32 %v3523_v23, %v1507_v46  ;;  %v1710_v31 = vmul.f32 %v3527_v38, %v1508_v18  ;;  %v1500_v39 = vmul.f32 %v1044_v22, %v2699_v56  ;;  %v736_v46 = vpop.xlane.xlu2 %735 }
 0x10d   : > { %1976 = vst [vmem:[%s3619_s20 + $0x8] sm:$0xff] %v1880_v28  ;;  %v1699_v40 = vmul.f32 %v3514_v13, %v1497_v42  ;;  %v1700_v50 = vmul.f32 %v3521_v49, %v1498_v43  ;;  %v1701_v5 = vmul.f32 %v3523_v23, %v1499_v30  ;;  %v1019_v53 = vsub.f32 1.5, %v3576_v35  ;;  %v5071_v30 = vld [vmem:[#allocation14_spill] sm:$0xff] }
 0x10e   : > { %v1889_v54 = vpack.c.bf16 %v1708_v3, %v1707_v19  ;;  %v1890_v6 = vpack.c.bf16 %v1710_v31, %v1709_v4  ;;  %v1702_v14 = vmul.f32 %v3527_v38, %v1500_v39  ;;  %v1089_v33 = vsub.f32 1.5, %v3586_v55  ;;  %v5072_v4 = vld [vmem:[#allocation15_spill] sm:$0xff]  ;;  %v731_v31 = vpop.xlane.xlu1 %730 }
 0x10f   : > { %v1885_v56 = vpack.c.bf16 %v1700_v50, %v1699_v40  ;;  %v1020_v27 = vmul.f32 %v3544_v15, %v1019_v53  ;;  %v1077_v2 = vmul.f32 %v3560_v51, %v3580_v44  ;;  %vm1082_vm6 = vweird.f32 %v3560_v51  ;;  %v5073_v40 = vld [vmem:[#allocation16_spill] sm:$0xff] }
 0x110   : > { %1985 = vst [vmem:[%s3619_s20 + $0x50] sm:$0xff] %v1889_v54  ;;  %v1886_v35 = vpack.c.bf16 %v1702_v14, %v1701_v5  ;;  %v1090_v55 = vmul.f32 %v3551_v57, %v1089_v33  ;;  %v1066_v0 = vmul.f32 %v3570_v20, %v3517_v45  ;;  %v3678_v32 = vadd.f32 1e-06, %v3549_v60  ;;  %vm1083_vm9 = vmor %vm1081_vm3, %vm1082_vm6  ;;  %v726_v39 = vpop.xlane.xlu0 %725 }
 0x111   : > { %1986 = vst [vmem:[%s3619_s20 + $0x58] sm:$0xff] %v1890_v6  ;;  %v1024_v44 = vsel %vm1023_vm5, %v3544_v15, %v1020_v27  ;;  %v1078_v36 = vmul.f32 0.5, %v1077_v2  ;;  %v3681_v16 = vadd.f32 1e-06, %v3558_v37  ;;  %vm1071_vm8 = vweird.f32 %v3517_v45 }
 0x112   : > { %1981 = vst [vmem:[%s3619_s20 + $0x30] sm:$0xff] %v1885_v56  ;;  %v1489_v61 = vmul.f32 %v1024_v44, %v2703_v58  ;;  %v1490_v8 = vmul.f32 %v1024_v44, %v2705_v59  ;;  %v1491_v9 = vmul.f32 %v1024_v44, %v2715_v7  ;;  %v1492_v10 = vmul.f32 %v1024_v44, %v2717_v12  ;;  %v5076_v44 = vld [vmem:[#allocation19_spill] sm:$0xff] }
 0x113   : > { %1982 = vst [vmem:[%s3619_s20 + $0x38] sm:$0xff] %v1886_v35  ;;  %v1094_v37 = vsel %vm1093_vm7, %v3551_v57, %v1090_v55  ;;  %v1079_v60 = vsub.f32 1.5, %v1078_v36  ;;  %v1067_v15 = vmul.f32 %v3570_v20, %v1066_v0  ;;  %2273 = vrsqrt.f32 %v3678_v32  ;;  %v5075_v55 = vld [vmem:[#allocation18_spill] sm:$0xff] }
 0x114   : > { %v1691_v58 = vmul.f32 %v3514_v13, %v1489_v61  ;;  %v1692_v59 = vmul.f32 %v3521_v49, %v1490_v8  ;;  %v1693_v7 = vmul.f32 %v3523_v23, %v1491_v9  ;;  %v1694_v12 = vmul.f32 %v3527_v38, %v1492_v10  ;;  %v5077_v61 = vld [vmem:[#allocation20_spill] sm:$0xff]  ;;  %v5078_v10 = vld [vmem:[#allocation21_spill] sm:$0xff] }
 0x115   : > { %v1517_v52 = vmul.f32 %v1094_v37, %v2723_v17  ;;  %v1518_v24 = vmul.f32 %v1094_v37, %v5068_v11  ;;  %v1519_v57 = vmul.f32 %v1094_v37, %v5069_v25  ;;  %v1520_v48 = vmul.f32 %v1094_v37, %v5070_v63 }
 0x116   : > { %v1881_v26 = vpack.c.bf16 %v1692_v59, %v1691_v58  ;;  %v1882_v22 = vpack.c.bf16 %v1694_v12, %v1693_v7  ;;  %v1080_v29 = vmul.f32 %v3560_v51, %v1079_v60  ;;  %v1068_v34 = vmul.f32 0.5, %v1067_v15  ;;  %v5079_v15 = vld [vmem:[#allocation178_spill] sm:$0xff] }
 0x117   : > { %v1719_v62 = vmul.f32 %v3514_v13, %v1517_v52  ;;  %v1720_v21 = vmul.f32 %v3521_v49, %v1518_v24  ;;  %v1721_v1 = vmul.f32 %v3523_v23, %v1519_v57  ;;  %v1722_v17 = vmul.f32 %v3527_v38, %v1520_v48  ;;  %v751_v48 = vpop.xlane.xlu2 %750 }
 0x118   : > { %1977 = vst [vmem:[%s3619_s20 + $0x10] sm:$0xff] %v1881_v26  ;;  %v1084_v18 = vsel %vm1083_vm9, %v3560_v51, %v1080_v29  ;;  %v1069_v42 = vsub.f32 1.5, %v1068_v34  ;;  %vm1072_vm10 = vweird.f32 %v3570_v20  ;;  %2275 = vrsqrt.f32 %v3681_v16  ;;  %v5074_v51 = vld [vmem:[#allocation17_spill] sm:$0xff] }
 0x119   : > { %v2274_v28 = vpop.eup %2273  ;;  %1978 = vst [vmem:[%s3619_s20 + $0x18] sm:$0xff] %v1882_v22  ;;  %v1895_v19 = vpack.c.bf16 %v1720_v21, %v1719_v62  ;;  %v1896_v43 = vpack.c.bf16 %v1722_v17, %v1721_v1  ;;  %v1513_v3 = vmul.f32 %v1084_v18, %v5071_v30  ;;  %v1514_v41 = vmul.f32 %v1084_v18, %v5072_v4  ;;  %vm1073_vm11 = vmor %vm1071_vm8, %vm1072_vm10  ;;  %v746_v62 = vpop.xlane.xlu1 %745  ;;  %v5082_v30 = vld [vmem:[#allocation24_spill] sm:$0xff]  ;;  %v5083_v4 = vld [vmem:[#allocation25_spill] sm:$0xff] }
 0x11a   : > { %v1515_v50 = vmul.f32 %v1084_v18, %v5073_v40  ;;  %v1516_v5 = vmul.f32 %v1084_v18, %v5074_v51  ;;  %v1070_v53 = vmul.f32 %v3570_v20, %v1069_v42  ;;  %v1116_v54 = vmul.f32 %v2274_v28, %v3678_v32  ;;  %v741_v21 = vpop.xlane.xlu0 %740  ;;  %v5080_v18 = vld [vmem:[#allocation22_spill] sm:$0xff] }
 0x11b   : > { %1991 = vst [vmem:[%s3619_s20 + $0x80] sm:$0xff] %v1895_v19  ;;  %v1715_v6 = vmul.f32 %v3514_v13, %v1513_v3  ;;  %v1716_v14 = vmul.f32 %v3521_v49, %v1514_v41  ;;  %v918_v58 = vmul.f32 %v5079_v15, %v3664_v47  ;;  %vm1122_vm12 = vweird.f32 %v2274_v28  ;;  %v5081_v19 = vld [vmem:[#allocation23_spill] sm:$0xff] }
 0x11c   : > { %1992 = vst [vmem:[%s3619_s20 + $0x88] sm:$0xff] %v1896_v43  ;;  %v1717_v33 = vmul.f32 %v3523_v23, %v1515_v50  ;;  %v1718_v56 = vmul.f32 %v3527_v38, %v1516_v5  ;;  %v1074_v27 = vsel %vm1073_vm11, %v3570_v20, %v1070_v53  ;;  %v1117_v2 = vmul.f32 %v2274_v28, %v1116_v54 }
 0x11d   : > { %v1893_v35 = vpack.c.bf16 %v1716_v14, %v1715_v6  ;;  %v1509_v0 = vmul.f32 %v1074_v27, %v5075_v55  ;;  %v1510_v36 = vmul.f32 %v1074_v27, %v5076_v44  ;;  %v1511_v8 = vmul.f32 %v1074_v27, %v5077_v61 }
 0x11e   : > { %v2276_v9 = vpop.eup %2275  ;;  %v1894_v45 = vpack.c.bf16 %v1718_v56, %v1717_v33  ;;  %v1512_v37 = vmul.f32 %v1074_v27, %v5078_v10  ;;  %v1118_v60 = vmul.f32 0.5, %v1117_v2  ;;  %v3749_v24 = vadd.f32 1e-06, %v918_v58 }
 0x11f   : > { %1989 = vst [vmem:[%s3619_s20 + $0x70] sm:$0xff] %v1893_v35  ;;  %v1711_v20 = vmul.f32 %v3514_v13, %v1509_v0  ;;  %v1712_v59 = vmul.f32 %v3521_v49, %v1510_v36  ;;  %v1713_v7 = vmul.f32 %v3523_v23, %v1511_v8  ;;  %v1106_v12 = vmul.f32 %v2276_v9, %v3681_v16  ;;  %v5084_v35 = vld [vmem:[#allocation26_spill] sm:$0xff]  ;;  %v5085_v0 = vld [vmem:[#allocation27_spill] sm:$0xff]  ;;  %v5086_v36 = vld [vmem:[#allocation28_spill] sm:$0xff] }
 0x120   : > { %1990 = vst [vmem:[%s3619_s20 + $0x78] sm:$0xff] %v1894_v45  ;;  %v1714_v52 = vmul.f32 %v3527_v38, %v1512_v37  ;;  %v1119_v11 = vsub.f32 1.5, %v1118_v60  ;;  %v923_v47 = vmul.f32 %v5079_v15, %v736_v46  ;;  %v922_v63 = vmul.f32 %v5079_v15, %v731_v31  ;;  %v5087_v8 = vld [vmem:[#allocation29_spill] sm:$0xff] }
 0x121   : > { %v1891_v25 = vpack.c.bf16 %v1712_v59, %v1711_v20  ;;  %v1107_v57 = vmul.f32 %v2276_v9, %v1106_v12  ;;  %vm1121_vm13 = vweird.f32 %v3678_v32  ;;  %2277 = vrsqrt.f32 %v3749_v24 }
 0x122   : > { %v1892_v26 = vpack.c.bf16 %v1714_v52, %v1713_v7  ;;  %v1120_v22 = vmul.f32 %v2274_v28, %v1119_v11  ;;  %vm1123_vm14 = vmor %vm1121_vm13, %vm1122_vm12  ;;  %vm1111_vm15 = vweird.f32 %v3681_v16  ;;  %vm1112_vm0 = vweird.f32 %v2276_v9 }
 0x123   : > { %1987 = vst [vmem:[%s3619_s20 + $0x60] sm:$0xff] %v1891_v25  ;;  %v1108_v29 = vmul.f32 0.5, %v1107_v57  ;;  %v3757_v34 = vadd.f32 1e-06, %v923_v47  ;;  %v3760_v17 = vadd.f32 1e-06, %v922_v63  ;;  %v921_v46 = vmul.f32 %v5079_v15, %v726_v39  ;;  %vm1113_vm1 = vmor %vm1111_vm15, %vm1112_vm0  ;;  %v766_v47 = vpop.xlane.xlu2 %765  ;;  %v761_v63 = vpop.xlane.xlu1 %760 }
 0x124   : > { %1988 = vst [vmem:[%s3619_s20 + $0x68] sm:$0xff] %v1892_v26  ;;  %v1124_v1 = vsel %vm1123_vm14, %v2274_v28, %v1120_v22  ;;  %v926_v32 = vmul.f32 %v5079_v15, %v751_v48  ;;  %v925_v40 = vmul.f32 %v5079_v15, %v746_v62  ;;  %v924_v28 = vmul.f32 %v5079_v15, %v741_v21 }
 0x125   : > { %v1529_v42 = vmul.f32 %v1124_v1, %v5080_v18  ;;  %v1530_v43 = vmul.f32 %v1124_v1, %v5081_v19  ;;  %v1531_v3 = vmul.f32 %v1124_v1, %v5082_v30  ;;  %v1532_v41 = vmul.f32 %v1124_v1, %v5083_v4 }
 0x126   : > { %v1109_v31 = vsub.f32 1.5, %v1108_v29  ;;  %2279 = vrsqrt.f32 %v3757_v34  ;;  %v3776_v6 = vadd.f32 1e-06, %v921_v46  ;;  %v3778_v14 = vadd.f32 1e-06, %v926_v32 }
 0x127   : > { %v1731_v39 = vmul.f32 %v3514_v13, %v1529_v42  ;;  %v1732_v50 = vmul.f32 %v3521_v49, %v1530_v43  ;;  %v1733_v51 = vmul.f32 %v3523_v23, %v1531_v3  ;;  %v1734_v5 = vmul.f32 %v3527_v38, %v1532_v41  ;;  %v2278_v53 = vpop.eup %2277 }
 0x128   : > { %v1110_v54 = vmul.f32 %v2276_v9, %v1109_v31  ;;  %2281 = vrsqrt.f32 %v3760_v17  ;;  %v1096_v27 = vmul.f32 %v2278_v53, %v3749_v24  ;;  %v3794_v16 = vadd.f32 1e-06, %v925_v40  ;;  %v5088_v31 = vld [vmem:[#allocation30_spill] sm:$0xff] }
 0x129   : > { %v1901_v33 = vpack.c.bf16 %v1732_v50, %v1731_v39  ;;  %v1902_v56 = vpack.c.bf16 %v1734_v5, %v1733_v51  ;;  %2283 = vrsqrt.f32 %v3776_v6  ;;  %vm1101_vm2 = vweird.f32 %v3749_v24  ;;  %v5089_v24 = vld [vmem:[#allocation31_spill] sm:$0xff]  ;;  %v5090_v39 = vld [vmem:[#allocation32_spill] sm:$0xff]  ;;  %v5091_v51 = vld [vmem:[#allocation33_spill] sm:$0xff] }
 0x12a   : > { %v1114_v2 = vsel %vm1113_vm1, %v2276_v9, %v1110_v54  ;;  %v1097_v37 = vmul.f32 %v2278_v53, %v1096_v27  ;;  %2285 = vrsqrt.f32 %v3778_v14  ;;  %v3796_v9 = vadd.f32 1e-06, %v924_v28 }
 0x12b   : > { %1997 = vst [vmem:[%s3619_s20 + $0xb0] sm:$0xff] %v1901_v33  ;;  %v1525_v55 = vmul.f32 %v1114_v2, %v5084_v35  ;;  %v1526_v44 = vmul.f32 %v1114_v2, %v5085_v0  ;;  %v1527_v61 = vmul.f32 %v1114_v2, %v5086_v36  ;;  %v1528_v45 = vmul.f32 %v1114_v2, %v5087_v8 }
 0x12c   : > { %v3790_v10 = vpop.eup %2279  ;;  %1998 = vst [vmem:[%s3619_s20 + $0xb8] sm:$0xff] %v1902_v56  ;;  %v1098_v12 = vmul.f32 0.5, %v1097_v37  ;;  %vm1151_vm3 = vweird.f32 %v3757_v34  ;;  %vm1102_vm4 = vweird.f32 %v2278_v53  ;;  %vm1141_vm6 = vweird.f32 %v3760_v17 }
 0x12d   : > { %v1727_v60 = vmul.f32 %v3514_v13, %v1525_v55  ;;  %v1728_v58 = vmul.f32 %v3521_v49, %v1526_v44  ;;  %v1729_v20 = vmul.f32 %v3523_v23, %v1527_v61  ;;  %v1730_v59 = vmul.f32 %v3527_v38, %v1528_v45  ;;  %vm1103_vm8 = vmor %vm1101_vm2, %vm1102_vm4 }
 0x12e   : > { %v3802_v7 = vpop.eup %2281  ;;  %v1146_v52 = vmul.f32 %v3790_v10, %v3757_v34  ;;  %v1099_v26 = vsub.f32 1.5, %v1098_v12  ;;  %vm1152_vm5 = vweird.f32 %v3790_v10  ;;  %2287 = vrsqrt.f32 %v3794_v16  ;;  %v5094_v34 = vld [vmem:[#allocation36_spill] sm:$0xff] }
 0x12f   : > { %v1899_v11 = vpack.c.bf16 %v1728_v58, %v1727_v60  ;;  %v1900_v25 = vpack.c.bf16 %v1730_v59, %v1729_v20  ;;  %v1136_v57 = vmul.f32 %v3802_v7, %v3760_v17  ;;  %v3810_v48 = vpop.eup %2283  ;;  %vm1142_vm7 = vweird.f32 %v3802_v7  ;;  %vm1153_vm11 = vmor %vm1151_vm3, %vm1152_vm5  ;;  %v5092_v58 = vld [vmem:[#allocation34_spill] sm:$0xff]  ;;  %v5093_v59 = vld [vmem:[#allocation35_spill] sm:$0xff] }
 0x130   : > { %v1147_v22 = vmul.f32 %v3790_v10, %v1146_v52  ;;  %v1126_v62 = vmul.f32 %v3810_v48, %v3776_v6  ;;  %2289 = vrsqrt.f32 %v3796_v9  ;;  %v3822_v21 = vpop.eup %2285  ;;  %v1100_v1 = vmul.f32 %v2278_v53, %v1099_v26  ;;  %vm1143_vm13 = vmor %vm1141_vm6, %vm1142_vm7  ;;  %v5095_v52 = vld [vmem:[#allocation37_spill] sm:$0xff]  ;;  %v5096_v26 = vld [vmem:[#allocation38_spill] sm:$0xff] }
 0x131   : > { %1995 = vst [vmem:[%s3619_s20 + $0xa0] sm:$0xff] %v1899_v11  ;;  %v1137_v29 = vmul.f32 %v3802_v7, %v1136_v57  ;;  %v929_v32 = vmul.f32 %v5079_v15, %v766_v47  ;;  %v928_v18 = vmul.f32 %v5079_v15, %v761_v63  ;;  %vm1131_vm9 = vweird.f32 %v3776_v6 }
 0x132   : > { %1996 = vst [vmem:[%s3619_s20 + $0xa8] sm:$0xff] %v1900_v25  ;;  %v1148_v46 = vmul.f32 0.5, %v1147_v22  ;;  %v1127_v19 = vmul.f32 %v3810_v48, %v1126_v62  ;;  %vm1132_vm10 = vweird.f32 %v3810_v48  ;;  %v1176_v43 = vmul.f32 %v3822_v21, %v3778_v14 }
 0x133   : > { %v1138_v42 = vmul.f32 0.5, %v1137_v29  ;;  %v1104_v30 = vsel %vm1103_vm8, %v2278_v53, %v1100_v1  ;;  %v3835_v4 = vadd.f32 1e-06, %v929_v32  ;;  %v3837_v41 = vadd.f32 1e-06, %v928_v18  ;;  %v5097_v29 = vld [vmem:[#allocation39_spill] sm:$0xff]  ;;  %vm1133_vm14 = vmor %vm1131_vm9, %vm1132_vm10 }
 0x134   : > { %v1149_v3 = vsub.f32 1.5, %v1148_v46  ;;  %v1521_v40 = vmul.f32 %v1104_v30, %v5088_v31  ;;  %v1522_v28 = vmul.f32 %v1104_v30, %v5089_v24  ;;  %v1523_v50 = vmul.f32 %v1104_v30, %v5090_v39  ;;  %v3843_v54 = vpop.eup %2287  ;;  %v5098_v46 = vld [vmem:[#allocation40_spill] sm:$0xff] }
 0x135   : > { %v1524_v5 = vmul.f32 %v1104_v30, %v5091_v51  ;;  %v1139_v56 = vsub.f32 1.5, %v1138_v42  ;;  %v1128_v27 = vmul.f32 0.5, %v1127_v19  ;;  %v1177_v53 = vmul.f32 %v3822_v21, %v1176_v43 }
 0x136   : > { %v1150_v33 = vmul.f32 %v3790_v10, %v1149_v3  ;;  %v3847_v2 = vpop.eup %2289  ;;  %v1723_v35 = vmul.f32 %v3514_v13, %v1521_v40  ;;  %v1724_v55 = vmul.f32 %v3521_v49, %v1522_v28  ;;  %v1725_v0 = vmul.f32 %v3523_v23, %v1523_v50  ;;  %v756_v3 = vpop.xlane.xlu0 %755  ;;  %v5100_v28 = vld [vmem:[#allocation42_spill] sm:$0xff]  ;;  %v5101_v50 = vld [vmem:[#allocation43_spill] sm:$0xff] }
 0x137   : > { %v1726_v44 = vmul.f32 %v3527_v38, %v1524_v5  ;;  %v1140_v61 = vmul.f32 %v3802_v7, %v1139_v56  ;;  %v1129_v8 = vsub.f32 1.5, %v1128_v27  ;;  %v1178_v45 = vmul.f32 0.5, %v1177_v53  ;;  %v5102_v5 = vld [vmem:[#allocation44_spill] sm:$0xff]  ;;  %v5103_v56 = vld [vmem:[#allocation45_spill] sm:$0xff] }
 0x138   : > { %v1154_v36 = vsel %vm1153_vm11, %v3790_v10, %v1150_v33  ;;  %vm1182_vm12 = vweird.f32 %v3822_v21  ;;  %v1897_v37 = vpack.c.bf16 %v1724_v55, %v1723_v35  ;;  %v1166_v55 = vmul.f32 %v3843_v54, %v3794_v16 }
 0x139   : > { %v1898_v60 = vpack.c.bf16 %v1726_v44, %v1725_v0  ;;  %v1541_v20 = vmul.f32 %v1154_v36, %v5092_v58  ;;  %v1542_v12 = vmul.f32 %v1154_v36, %v5093_v59  ;;  %v1543_v10 = vmul.f32 %v1154_v36, %v5094_v34 }
 0x13a   : > { %v1544_v11 = vmul.f32 %v1154_v36, %v5095_v52  ;;  %v1144_v25 = vsel %vm1143_vm13, %v3802_v7, %v1140_v61  ;;  %v1130_v57 = vmul.f32 %v3810_v48, %v1129_v8  ;;  %1993 = vst [vmem:[%s3619_s20 + $0x90] sm:$0xff] %v1897_v37  ;;  %v5099_v7 = vld [vmem:[#allocation41_spill] sm:$0xff]  ;;  %v1179_v35 = vsub.f32 1.5, %v1178_v45  ;;  %v781_v37 = vpop.xlane.xlu2 %780 }
 0x13b   : > { %v1743_v47 = vmul.f32 %v3514_v13, %v1541_v20  ;;  %v1744_v63 = vmul.f32 %v3521_v49, %v1542_v12  ;;  %v1537_v22 = vmul.f32 %v1144_v25, %v5096_v26  ;;  %v1538_v62 = vmul.f32 %v1144_v25, %v5097_v29  ;;  %1994 = vst [vmem:[%s3619_s20 + $0x98] sm:$0xff] %v1898_v60  ;;  %v5104_v12 = vld [vmem:[#allocation46_spill] sm:$0xff] }
 0x13c   : > { %v1745_v17 = vmul.f32 %v3523_v23, %v1543_v10  ;;  %v1746_v1 = vmul.f32 %v3527_v38, %v1544_v11  ;;  %v1539_v32 = vmul.f32 %v1144_v25, %v5098_v46  ;;  %v1540_v18 = vmul.f32 %v1144_v25, %v5099_v7  ;;  %v5105_v10 = vld [vmem:[#allocation47_spill] sm:$0xff]  ;;  %v5106_v11 = vld [vmem:[#allocation48_spill] sm:$0xff] }
 0x13d   : > { %v1907_v42 = vpack.c.bf16 %v1744_v63, %v1743_v47  ;;  %v1739_v19 = vmul.f32 %v3514_v13, %v1537_v22  ;;  %v1740_v43 = vmul.f32 %v3521_v49, %v1538_v62  ;;  %v1134_v30 = vsel %vm1133_vm14, %v3810_v48, %v1130_v57  ;;  %v5107_v57 = vld [vmem:[#allocation49_spill] sm:$0xff]  ;;  %v776_v22 = vpop.xlane.xlu1 %775 }
 0x13e   : > { %v1908_v31 = vpack.c.bf16 %v1746_v1, %v1745_v17  ;;  %v1741_v40 = vmul.f32 %v3523_v23, %v1539_v32  ;;  %v1742_v24 = vmul.f32 %v3527_v38, %v1540_v18  ;;  %v1533_v39 = vmul.f32 %v1134_v30, %v5100_v28  ;;  %v771_v46 = vpop.xlane.xlu0 %770 }
 0x13f   : > { %2003 = vst [vmem:[%s3619_s20 + $0xe0] sm:$0xff] %v1907_v42  ;;  %v1905_v6 = vpack.c.bf16 %v1740_v43, %v1739_v19  ;;  %v1534_v51 = vmul.f32 %v1134_v30, %v5101_v50  ;;  %v1535_v33 = vmul.f32 %v1134_v30, %v5102_v5  ;;  %v1536_v27 = vmul.f32 %v1134_v30, %v5103_v56  ;;  %v5110_v5 = vld [vmem:[#allocation52_spill] sm:$0xff]  ;;  %v5111_v56 = vld [vmem:[#allocation53_spill] sm:$0xff] }
 0x140   : > { %2004 = vst [vmem:[%s3619_s20 + $0xe8] sm:$0xff] %v1908_v31  ;;  %v1906_v48 = vpack.c.bf16 %v1742_v24, %v1741_v40  ;;  %v1735_v53 = vmul.f32 %v3514_v13, %v1533_v39  ;;  %vm1181_vm15 = vweird.f32 %v3778_v14  ;;  %v1180_v61 = vmul.f32 %v3822_v21, %v1179_v35 }
 0x141   : > { %2001 = vst [vmem:[%s3619_s20 + $0xd0] sm:$0xff] %v1905_v6  ;;  %v1736_v0 = vmul.f32 %v3521_v49, %v1534_v51  ;;  %v1737_v44 = vmul.f32 %v3523_v23, %v1535_v33  ;;  %v1738_v36 = vmul.f32 %v3527_v38, %v1536_v27  ;;  %v1167_v8 = vmul.f32 %v3843_v54, %v1166_v55  ;;  %vm1183_vm1 = vmor %vm1181_vm15, %vm1182_vm12  ;;  %v5108_v6 = vld [vmem:[#allocation50_spill] sm:$0xff] }
 0x142   : > { %2002 = vst [vmem:[%s3619_s20 + $0xd8] sm:$0xff] %v1906_v48  ;;  %vm1171_vm0 = vweird.f32 %v3794_v16  ;;  %v1156_v45 = vmul.f32 %v3847_v2, %v3796_v9  ;;  %vm1161_vm2 = vweird.f32 %v3796_v9  ;;  %2291 = vrsqrt.f32 %v3835_v4  ;;  %v5109_v16 = vld [vmem:[#allocation51_spill] sm:$0xff]  ;;  %v796_v35 = vpop.xlane.xlu2 %795 }
 0x143   : > { %v1903_v60 = vpack.c.bf16 %v1736_v0, %v1735_v53  ;;  %v1904_v58 = vpack.c.bf16 %v1738_v36, %v1737_v44  ;;  %v1184_v14 = vsel %vm1183_vm1, %v3822_v21, %v1180_v61  ;;  %v1168_v20 = vmul.f32 0.5, %v1167_v8  ;;  %v5112_v36 = vld [vmem:[#allocation54_spill] sm:$0xff]  ;;  %v5113_v8 = vld [vmem:[#allocation55_spill] sm:$0xff] }
 0x144   : > { %v1157_v59 = vmul.f32 %v3847_v2, %v1156_v45  ;;  %2293 = vrsqrt.f32 %v3837_v41  ;;  %v1553_v34 = vmul.f32 %v1184_v14, %v5104_v12  ;;  %v1554_v52 = vmul.f32 %v1184_v14, %v5105_v10 }
 0x145   : > { %1999 = vst [vmem:[%s3619_s20 + $0xc0] sm:$0xff] %v1903_v60  ;;  %v1555_v25 = vmul.f32 %v1184_v14, %v5106_v11  ;;  %v1556_v47 = vmul.f32 %v1184_v14, %v5107_v57  ;;  %v1169_v63 = vsub.f32 1.5, %v1168_v20  ;;  %vm1172_vm3 = vweird.f32 %v3843_v54  ;;  %v5115_v60 = vld [vmem:[#allocation57_spill] sm:$0xff] }
 0x146   : > { %2000 = vst [vmem:[%s3619_s20 + $0xc8] sm:$0xff] %v1904_v58  ;;  %v1158_v26 = vmul.f32 0.5, %v1157_v59  ;;  %v927_v21 = vmul.f32 %v5079_v15, %v756_v3  ;;  %v1755_v29 = vmul.f32 %v3514_v13, %v1553_v34  ;;  %v1756_v62 = vmul.f32 %v3521_v49, %v1554_v52  ;;  %vm1173_vm5 = vmor %vm1171_vm0, %vm1172_vm3 }
 0x147   : > { %v1757_v17 = vmul.f32 %v3523_v23, %v1555_v25  ;;  %v1758_v1 = vmul.f32 %v3527_v38, %v1556_v47  ;;  %v1170_v32 = vmul.f32 %v3843_v54, %v1169_v63  ;;  %vm1162_vm4 = vweird.f32 %v3847_v2 }
 0x148   : > { %v1159_v7 = vsub.f32 1.5, %v1158_v26  ;;  %v3930_v18 = vadd.f32 1e-06, %v927_v21  ;;  %v2292_v42 = vpop.eup %2291  ;;  %v1913_v19 = vpack.c.bf16 %v1756_v62, %v1755_v29  ;;  %v932_v30 = vmul.f32 %v5079_v15, %v781_v37  ;;  %vm1163_vm6 = vmor %vm1161_vm2, %vm1162_vm4 }
 0x149   : > { %v1914_v43 = vpack.c.bf16 %v1758_v1, %v1757_v17  ;;  %v931_v3 = vmul.f32 %v5079_v15, %v776_v22  ;;  %v1174_v40 = vsel %vm1173_vm5, %v3843_v54, %v1170_v32  ;;  %v1206_v28 = vmul.f32 %v2292_v42, %v3835_v4  ;;  %v791_v22 = vpop.xlane.xlu1 %790 }
 0x14a   : > { %v3938_v31 = vpop.eup %2293  ;;  %v1160_v24 = vmul.f32 %v3847_v2, %v1159_v7  ;;  %v930_v39 = vmul.f32 %v5079_v15, %v771_v46  ;;  %2009 = vst [vmem:[%s3619_s20 + $0x110] sm:$0xff] %v1913_v19  ;;  %v1549_v50 = vmul.f32 %v1174_v40, %v5108_v6  ;;  %v1550_v51 = vmul.f32 %v1174_v40, %v5109_v16  ;;  %v3988_v46 = vpop.xlane.xlu0 %785 }
 0x14b   : > { %v1551_v33 = vmul.f32 %v1174_v40, %v5110_v5  ;;  %v1552_v27 = vmul.f32 %v1174_v40, %v5111_v56  ;;  %vm1211_vm7 = vweird.f32 %v3835_v4  ;;  %2010 = vst [vmem:[%s3619_s20 + $0x118] sm:$0xff] %v1914_v43  ;;  %v1207_v48 = vmul.f32 %v2292_v42, %v1206_v28  ;;  %v5116_v43 = vld [vmem:[#allocation58_spill] sm:$0xff]  ;;  %v5118_v4 = vld [vmem:[#allocation60_spill] sm:$0xff]  ;;  %v5119_v28 = vld [vmem:[#allocation61_spill] sm:$0xff] }
 0x14c   : > { %v1164_v54 = vsel %vm1163_vm6, %v3847_v2, %v1160_v24  ;;  %vm1212_vm8 = vweird.f32 %v2292_v42  ;;  %v1196_v53 = vmul.f32 %v3938_v31, %v3837_v41  ;;  %v1751_v55 = vmul.f32 %v3514_v13, %v1549_v50  ;;  %v5114_v2 = vld [vmem:[#allocation56_spill] sm:$0xff]  ;;  %v5120_v56 = vld [vmem:[#allocation62_spill] sm:$0xff] }
 0x14d   : > { %v1752_v0 = vmul.f32 %v3521_v49, %v1550_v51  ;;  %v1753_v44 = vmul.f32 %v3523_v23, %v1551_v33  ;;  %v1754_v9 = vmul.f32 %v3527_v38, %v1552_v27  ;;  %v1545_v61 = vmul.f32 %v1164_v54, %v5112_v36  ;;  %vm1213_vm10 = vmor %vm1211_vm7, %vm1212_vm8 }
 0x14e   : > { %v1546_v45 = vmul.f32 %v1164_v54, %v5113_v8  ;;  %v1547_v37 = vmul.f32 %v1164_v54, %v5114_v2  ;;  %v1548_v58 = vmul.f32 %v1164_v54, %v5115_v60  ;;  %v1208_v59 = vmul.f32 0.5, %v1207_v48  ;;  %v5121_v54 = vld [vmem:[#allocation63_spill] sm:$0xff] }
 0x14f   : > { %v1911_v14 = vpack.c.bf16 %v1752_v0, %v1751_v55  ;;  %v1912_v20 = vpack.c.bf16 %v1754_v9, %v1753_v44  ;;  %v1197_v12 = vmul.f32 %v3938_v31, %v1196_v53  ;;  %v1747_v34 = vmul.f32 %v3514_v13, %v1545_v61  ;;  %v5122_v53 = vld [vmem:[#allocation64_spill] sm:$0xff] }
 0x150   : > { %v1748_v10 = vmul.f32 %v3521_v49, %v1546_v45  ;;  %v1749_v52 = vmul.f32 %v3523_v23, %v1547_v37  ;;  %v1750_v11 = vmul.f32 %v3527_v38, %v1548_v58  ;;  %v1209_v25 = vsub.f32 1.5, %v1208_v59 }
 0x151   : > { %2007 = vst [vmem:[%s3619_s20 + $0x100] sm:$0xff] %v1911_v14  ;;  %v1198_v57 = vmul.f32 0.5, %v1197_v12  ;;  %vm1202_vm9 = vweird.f32 %v3938_v31  ;;  %2295 = vrsqrt.f32 %v3930_v18  ;;  %v3975_v26 = vadd.f32 1e-06, %v932_v30 }
 0x152   : > { %2008 = vst [vmem:[%s3619_s20 + $0x108] sm:$0xff] %v1912_v20  ;;  %v1909_v47 = vpack.c.bf16 %v1748_v10, %v1747_v34  ;;  %v1910_v63 = vpack.c.bf16 %v1750_v11, %v1749_v52  ;;  %v3977_v21 = vadd.f32 1e-06, %v931_v3  ;;  %v1210_v29 = vmul.f32 %v2292_v42, %v1209_v25  ;;  %v5117_v3 = vld [vmem:[#allocation59_spill] sm:$0xff] }
 0x153   : > { %v1199_v62 = vsub.f32 1.5, %v1198_v57  ;;  %v3979_v17 = vadd.f32 1e-06, %v930_v39  ;;  %v935_v1 = vmul.f32 %v5079_v15, %v796_v35  ;;  %vm1201_vm11 = vweird.f32 %v3837_v41  ;;  %v811_v39 = vpop.xlane.xlu2 %810  ;;  %v806_v57 = vpop.xlane.xlu1 %805 }
 0x154   : > { %2005 = vst [vmem:[%s3619_s20 + $0xf0] sm:$0xff] %v1909_v47  ;;  %2297 = vrsqrt.f32 %v3975_v26  ;;  %v1214_v32 = vsel %vm1213_vm10, %v2292_v42, %v1210_v29  ;;  %v934_v19 = vmul.f32 %v5079_v15, %v791_v22  ;;  %vm1203_vm12 = vmor %vm1201_vm11, %vm1202_vm9  ;;  %vm1191_vm13 = vweird.f32 %v3930_v18  ;;  %v801_v47 = vpop.xlane.xlu0 %800 }
 0x155   : > { %2006 = vst [vmem:[%s3619_s20 + $0xf8] sm:$0xff] %v1910_v63  ;;  %v1200_v7 = vmul.f32 %v3938_v31, %v1199_v62  ;;  %2299 = vrsqrt.f32 %v3977_v21  ;;  %v1565_v30 = vmul.f32 %v1214_v32, %v5116_v43  ;;  %v1566_v40 = vmul.f32 %v1214_v32, %v5117_v3 }
 0x156   : > { %v1567_v24 = vmul.f32 %v1214_v32, %v5118_v4  ;;  %v1568_v41 = vmul.f32 %v1214_v32, %v5119_v28  ;;  %2301 = vrsqrt.f32 %v3979_v17  ;;  %v4004_v50 = vadd.f32 1e-06, %v935_v1 }
 0x157   : > { %v4000_v6 = vpop.eup %2295  ;;  %v1204_v42 = vsel %vm1203_vm12, %v3938_v31, %v1200_v7  ;;  %v1767_v16 = vmul.f32 %v3514_v13, %v1565_v30  ;;  %v1768_v51 = vmul.f32 %v3521_v49, %v1566_v40  ;;  %v5123_v31 = vld [vmem:[#allocation65_spill] sm:$0xff]  ;;  %v4019_v61 = vadd.f32 1e-06, %v934_v19 }
 0x158   : > { %v1769_v5 = vmul.f32 %v3523_v23, %v1567_v24  ;;  %v1770_v33 = vmul.f32 %v3527_v38, %v1568_v41  ;;  %v1561_v27 = vmul.f32 %v1204_v42, %v5120_v56  ;;  %v1562_v48 = vmul.f32 %v1204_v42, %v5121_v54 }
 0x159   : > { %v1563_v35 = vmul.f32 %v1204_v42, %v5122_v53  ;;  %v1564_v55 = vmul.f32 %v1204_v42, %v5123_v31  ;;  %v1919_v44 = vpack.c.bf16 %v1768_v51, %v1767_v16  ;;  %v1186_v36 = vmul.f32 %v4000_v6, %v3930_v18 }
 0x15a   : > { %v4014_v0 = vpop.eup %2297  ;;  %v1920_v9 = vpack.c.bf16 %v1770_v33, %v1769_v5  ;;  %v1763_v45 = vmul.f32 %v3514_v13, %v1561_v27  ;;  %v1764_v2 = vmul.f32 %v3521_v49, %v1562_v48  ;;  %vm1241_vm14 = vweird.f32 %v3975_v26  ;;  %v5124_v33 = vld [vmem:[#allocation66_spill] sm:$0xff]  ;;  %v5125_v27 = vld [vmem:[#allocation67_spill] sm:$0xff]  ;;  %v5126_v48 = vld [vmem:[#allocation68_spill] sm:$0xff] }
 0x15b   : > { %v2300_v8 = vpop.eup %2299  ;;  %v1765_v37 = vmul.f32 %v3523_v23, %v1563_v35  ;;  %v1766_v60 = vmul.f32 %v3527_v38, %v1564_v55  ;;  %2015 = vst [vmem:[%s3619_s20 + $0x140] sm:$0xff] %v1919_v44  ;;  %v1187_v58 = vmul.f32 %v4000_v6, %v1186_v36  ;;  %v1236_v14 = vmul.f32 %v4014_v0, %v3975_v26  ;;  %v826_v1 = vpop.xlane.xlu2 %825  ;;  %v5127_v35 = vld [vmem:[#allocation69_spill] sm:$0xff] }
 0x15c   : > { %v1226_v20 = vmul.f32 %v2300_v8, %v3977_v21  ;;  %v4031_v59 = vpop.eup %2301  ;;  %2016 = vst [vmem:[%s3619_s20 + $0x148] sm:$0xff] %v1920_v9  ;;  %v1917_v12 = vpack.c.bf16 %v1764_v2, %v1763_v45  ;;  %vm1231_vm15 = vweird.f32 %v3977_v21  ;;  %2303 = vrsqrt.f32 %v4004_v50 }
 0x15d   : > { %v1918_v34 = vpack.c.bf16 %v1766_v60, %v1765_v37  ;;  %v1188_v10 = vmul.f32 0.5, %v1187_v58  ;;  %v1237_v52 = vmul.f32 %v4014_v0, %v1236_v14  ;;  %v1216_v25 = vmul.f32 %v4031_v59, %v3979_v17  ;;  %v5128_v37 = vld [vmem:[#allocation70_spill] sm:$0xff]  ;;  %v5129_v60 = vld [vmem:[#allocation71_spill] sm:$0xff]  ;;  %v5131_v14 = vld [vmem:[#allocation73_spill] sm:$0xff] }
 0x15e   : > { %v1227_v11 = vmul.f32 %v2300_v8, %v1226_v20  ;;  %2013 = vst [vmem:[%s3619_s20 + $0x130] sm:$0xff] %v1917_v12  ;;  %vm1192_vm0 = vweird.f32 %v4000_v6  ;;  %vm1242_vm1 = vweird.f32 %v4014_v0  ;;  %vm1232_vm2 = vweird.f32 %v2300_v8 }
 0x15f   : > { %2305 = vrsqrt.f32 %v4019_v61  ;;  %2014 = vst [vmem:[%s3619_s20 + $0x138] sm:$0xff] %v1918_v34  ;;  %v1189_v63 = vsub.f32 1.5, %v1188_v10  ;;  %v1238_v22 = vmul.f32 0.5, %v1237_v52  ;;  %v1217_v62 = vmul.f32 %v4031_v59, %v1216_v25  ;;  %vm1193_vm5 = vmor %vm1191_vm13, %vm1192_vm0  ;;  %v5132_v10 = vld [vmem:[#allocation74_spill] sm:$0xff] }
 0x160   : > { %v1228_v29 = vmul.f32 0.5, %v1227_v11  ;;  %vm1222_vm3 = vweird.f32 %v4031_v59  ;;  %v933_v32 = vmul.f32 %v5079_v15, %v3988_v46  ;;  %v938_v7 = vmul.f32 %v5079_v15, %v811_v39  ;;  %vm1243_vm6 = vmor %vm1241_vm14, %vm1242_vm1  ;;  %v5133_v11 = vld [vmem:[#allocation75_spill] sm:$0xff] }
 0x161   : > { %v937_v19 = vmul.f32 %v5079_v15, %v806_v57  ;;  %v4051_v43 = vmul.f32 %v5079_v15, %v801_v47  ;;  %v1190_v30 = vmul.f32 %v4000_v6, %v1189_v63  ;;  %v1239_v3 = vsub.f32 1.5, %v1238_v22  ;;  %vm1233_vm7 = vmor %vm1231_vm15, %vm1232_vm2 }
 0x162   : > { %v1229_v40 = vsub.f32 1.5, %v1228_v29  ;;  %v1218_v4 = vmul.f32 0.5, %v1217_v62  ;;  %vm1221_vm4 = vweird.f32 %v3979_v17  ;;  %v4055_v24 = vpop.eup %2303  ;;  %v4061_v46 = vadd.f32 1e-06, %v933_v32  ;;  %v5134_v29 = vld [vmem:[#allocation76_spill] sm:$0xff]  ;;  %v5137_v17 = vld [vmem:[#allocation79_spill] sm:$0xff] }
 0x163   : > { %v4063_v28 = vadd.f32 1e-06, %v938_v7  ;;  %v4065_v41 = vadd.f32 1e-06, %v937_v19  ;;  %v4068_v39 = vmul.f32 %v5079_v15, %v826_v1  ;;  %v1194_v42 = vsel %vm1193_vm5, %v4000_v6, %v1190_v30  ;;  %v5135_v1 = vld [vmem:[#allocation77_spill] sm:$0xff]  ;;  %vm1223_vm8 = vmor %vm1221_vm4, %vm1222_vm3 }
 0x164   : > { %v1240_v16 = vmul.f32 %v4014_v0, %v1239_v3  ;;  %v1230_v18 = vmul.f32 %v2300_v8, %v1229_v40  ;;  %v1219_v51 = vsub.f32 1.5, %v1218_v4  ;;  %v1557_v56 = vmul.f32 %v1194_v42, %v5124_v33 }
 0x165   : > { %v4076_v5 = vpop.eup %2305  ;;  %v1558_v54 = vmul.f32 %v1194_v42, %v5125_v27  ;;  %v1559_v53 = vmul.f32 %v1194_v42, %v5126_v48  ;;  %v1560_v31 = vmul.f32 %v1194_v42, %v5127_v35  ;;  %v1266_v44 = vmul.f32 %v4055_v24, %v4004_v50  ;;  %v5138_v27 = vld [vmem:[#allocation80_spill] sm:$0xff]  ;;  %v5139_v48 = vld [vmem:[#allocation81_spill] sm:$0xff] }
 0x166   : > { %v1244_v6 = vsel %vm1243_vm6, %v4014_v0, %v1240_v16  ;;  %v1234_v26 = vsel %vm1233_vm7, %v2300_v8, %v1230_v18  ;;  %v1220_v55 = vmul.f32 %v4031_v59, %v1219_v51  ;;  %v1759_v9 = vmul.f32 %v3514_v13, %v1557_v56  ;;  %v5130_v0 = vld [vmem:[#allocation72_spill] sm:$0xff]  ;;  %v5136_v51 = vld [vmem:[#allocation78_spill] sm:$0xff] }
 0x167   : > { %v1760_v36 = vmul.f32 %v3521_v49, %v1558_v54  ;;  %v1761_v45 = vmul.f32 %v3523_v23, %v1559_v53  ;;  %v1762_v2 = vmul.f32 %v3527_v38, %v1560_v31  ;;  %v1577_v21 = vmul.f32 %v1244_v6, %v5128_v37 }
 0x168   : > { %v1578_v58 = vmul.f32 %v1244_v6, %v5129_v60  ;;  %v1579_v8 = vmul.f32 %v1244_v6, %v5130_v0  ;;  %v1580_v20 = vmul.f32 %v1244_v6, %v5131_v14  ;;  %v1573_v52 = vmul.f32 %v1234_v26, %v5132_v10  ;;  %v5140_v0 = vld [vmem:[#allocation82_spill] sm:$0xff]  ;;  %v5141_v14 = vld [vmem:[#allocation83_spill] sm:$0xff]  ;;  %v5143_v10 = vld [vmem:[#allocation85_spill] sm:$0xff] }
 0x169   : > { %v1915_v12 = vpack.c.bf16 %v1760_v36, %v1759_v9  ;;  %v1916_v34 = vpack.c.bf16 %v1762_v2, %v1761_v45  ;;  %v1574_v25 = vmul.f32 %v1234_v26, %v5133_v11  ;;  %v1779_v57 = vmul.f32 %v3514_v13, %v1577_v21  ;;  %v821_v11 = vpop.xlane.xlu1 %820 }
 0x16a   : > { %v1780_v47 = vmul.f32 %v3521_v49, %v1578_v58  ;;  %v1781_v63 = vmul.f32 %v3523_v23, %v1579_v8  ;;  %v1782_v22 = vmul.f32 %v3527_v38, %v1580_v20  ;;  %v1575_v62 = vmul.f32 %v1234_v26, %v5134_v29 }
 0x16b   : > { %2011 = vst [vmem:[%s3619_s20 + $0x120] sm:$0xff] %v1915_v12  ;;  %v1576_v32 = vmul.f32 %v1234_v26, %v5135_v1  ;;  %v1775_v7 = vmul.f32 %v3514_v13, %v1573_v52  ;;  %v1776_v19 = vmul.f32 %v3521_v49, %v1574_v25  ;;  %v1224_v40 = vsel %vm1223_vm8, %v4031_v59, %v1220_v55  ;;  %v5142_v12 = vld [vmem:[#allocation84_spill] sm:$0xff] }
 0x16c   : > { %2012 = vst [vmem:[%s3619_s20 + $0x128] sm:$0xff] %v1916_v34  ;;  %v1925_v30 = vpack.c.bf16 %v1780_v47, %v1779_v57  ;;  %v1926_v3 = vpack.c.bf16 %v1782_v22, %v1781_v63  ;;  %v1267_v4 = vmul.f32 %v4055_v24, %v1266_v44  ;;  %v1777_v42 = vmul.f32 %v3523_v23, %v1575_v62 }
 0x16d   : > { %v1778_v16 = vmul.f32 %v3527_v38, %v1576_v32  ;;  %v1923_v18 = vpack.c.bf16 %v1776_v19, %v1775_v7  ;;  %v1569_v33 = vmul.f32 %v1224_v40, %v5136_v51  ;;  %v1570_v56 = vmul.f32 %v1224_v40, %v5137_v17 }
 0x16e   : > { %2021 = vst [vmem:[%s3619_s20 + $0x170] sm:$0xff] %v1925_v30  ;;  %v1571_v54 = vmul.f32 %v1224_v40, %v5138_v27  ;;  %v1572_v53 = vmul.f32 %v1224_v40, %v5139_v48  ;;  %v1268_v35 = vmul.f32 0.5, %v1267_v4  ;;  %vm1272_vm9 = vweird.f32 %v4055_v24  ;;  %v5144_v4 = vld [vmem:[#allocation86_spill] sm:$0xff] }
 0x16f   : > { %2022 = vst [vmem:[%s3619_s20 + $0x178] sm:$0xff] %v1926_v3  ;;  %v1924_v59 = vpack.c.bf16 %v1778_v16, %v1777_v42  ;;  %v1771_v31 = vmul.f32 %v3514_v13, %v1569_v33  ;;  %v1256_v6 = vmul.f32 %v4076_v5, %v4019_v61  ;;  %v1772_v26 = vmul.f32 %v3521_v49, %v1570_v56  ;;  %v5145_v16 = vld [vmem:[#allocation87_spill] sm:$0xff]  ;;  %v5147_v33 = vld [vmem:[#allocation89_spill] sm:$0xff] }
 0x170   : > { %2019 = vst [vmem:[%s3619_s20 + $0x160] sm:$0xff] %v1923_v18  ;;  %v1773_v55 = vmul.f32 %v3523_v23, %v1571_v54  ;;  %v1774_v44 = vmul.f32 %v3527_v38, %v1572_v53  ;;  %v1269_v9 = vsub.f32 1.5, %v1268_v35  ;;  %vm1271_vm10 = vweird.f32 %v4004_v50 }
 0x171   : > { %2020 = vst [vmem:[%s3619_s20 + $0x168] sm:$0xff] %v1924_v59  ;;  %v1257_v36 = vmul.f32 %v4076_v5, %v1256_v6  ;;  %2307 = vrsqrt.f32 %v4061_v46  ;;  %v1921_v45 = vpack.c.bf16 %v1772_v26, %v1771_v31  ;;  %vm1273_vm11 = vmor %vm1271_vm10, %vm1272_vm9  ;;  %v4143_v50 = vadd.f32 1e-06, %v4051_v43 }
 0x172   : > { %v1922_v2 = vpack.c.bf16 %v1774_v44, %v1773_v55  ;;  %v1270_v37 = vmul.f32 %v4055_v24, %v1269_v9  ;;  %2309 = vrsqrt.f32 %v4063_v28  ;;  %v4146_v58 = vadd.f32 1e-06, %v4068_v39 }
 0x173   : > { %v1258_v21 = vmul.f32 0.5, %v1257_v36  ;;  %2311 = vrsqrt.f32 %v4065_v41  ;;  %2017 = vst [vmem:[%s3619_s20 + $0x150] sm:$0xff] %v1921_v45  ;;  %vm1261_vm12 = vweird.f32 %v4019_v61  ;;  %vm1262_vm13 = vweird.f32 %v4076_v5  ;;  %v5146_v61 = vld [vmem:[#allocation88_spill] sm:$0xff] }
 0x174   : > { %v1274_v60 = vsel %vm1273_vm11, %v4055_v24, %v1270_v37  ;;  %2018 = vst [vmem:[%s3619_s20 + $0x158] sm:$0xff] %v1922_v2  ;;  %2313 = vrsqrt.f32 %v4143_v50  ;;  %vm1251_vm14 = vweird.f32 %v4061_v46  ;;  %v940_v62 = vmul.f32 %v5079_v15, %v821_v11  ;;  %vm1263_vm15 = vmor %vm1261_vm12, %vm1262_vm13 }
 0x175   : > { %v1589_v8 = vmul.f32 %v1274_v60, %v5140_v0  ;;  %v1590_v20 = vmul.f32 %v1274_v60, %v5141_v14  ;;  %v1591_v34 = vmul.f32 %v1274_v60, %v5142_v12  ;;  %v1592_v52 = vmul.f32 %v1274_v60, %v5143_v10  ;;  %v4217_v10 = vpop.xlane.xlu2 %840 }
 0x176   : > { %v1259_v25 = vsub.f32 1.5, %v1258_v21  ;;  %2315 = vrsqrt.f32 %v4146_v58  ;;  %vm1301_vm1 = vweird.f32 %v4063_v28  ;;  %v4186_v48 = vadd.f32 1e-06, %v940_v62 }
 0x177   : > { %v2308_v43 = vpop.eup %2307  ;;  %v1791_v24 = vmul.f32 %v3514_v13, %v1589_v8  ;;  %v1792_v39 = vmul.f32 %v3521_v49, %v1590_v20  ;;  %v1793_v57 = vmul.f32 %v3523_v23, %v1591_v34  ;;  %v1794_v47 = vmul.f32 %v3527_v38, %v1592_v52  ;;  %v4199_v8 = vpop.xlane.xlu0 %815  ;;  %v5148_v52 = vld [vmem:[#allocation90_spill] sm:$0xff] }
 0x178   : > { %v4160_v63 = vpop.eup %2309  ;;  %v1260_v22 = vmul.f32 %v4076_v5, %v1259_v25  ;;  %v1246_v29 = vmul.f32 %v2308_v43, %v4061_v46  ;;  %vm1252_vm0 = vweird.f32 %v2308_v43  ;;  %vm1291_vm5 = vweird.f32 %v4065_v41  ;;  %v5149_v25 = vld [vmem:[#allocation91_spill] sm:$0xff] }
 0x179   : > { %v2312_v1 = vpop.eup %2311  ;;  %v1931_v32 = vpack.c.bf16 %v1792_v39, %v1791_v24  ;;  %v1932_v7 = vpack.c.bf16 %v1794_v47, %v1793_v57  ;;  %v1296_v19 = vmul.f32 %v4160_v63, %v4063_v28  ;;  %vm1302_vm2 = vweird.f32 %v4160_v63  ;;  %vm1253_vm4 = vmor %vm1251_vm14, %vm1252_vm0  ;;  %v5151_v57 = vld [vmem:[#allocation93_spill] sm:$0xff] }
 0x17a   : > { %v1264_v30 = vsel %vm1263_vm15, %v4076_v5, %v1260_v22  ;;  %v1247_v3 = vmul.f32 %v2308_v43, %v1246_v29  ;;  %v1286_v40 = vmul.f32 %v2312_v1, %v4065_v41  ;;  %v4182_v56 = vpop.eup %2313  ;;  %vm1292_vm3 = vweird.f32 %v2312_v1  ;;  %vm1303_vm7 = vmor %vm1301_vm1, %vm1302_vm2  ;;  %v5154_v41 = vld [vmem:[#allocation96_spill] sm:$0xff] }
 0x17b   : > { %2027 = vst [vmem:[%s3619_s20 + $0x1a0] sm:$0xff] %v1931_v32  ;;  %v1585_v42 = vmul.f32 %v1264_v30, %v5144_v4  ;;  %v1586_v18 = vmul.f32 %v1264_v30, %v5145_v16  ;;  %v1587_v51 = vmul.f32 %v1264_v30, %v5146_v61  ;;  %v1588_v17 = vmul.f32 %v1264_v30, %v5147_v33  ;;  %vm1293_vm10 = vmor %vm1291_vm5, %vm1292_vm3  ;;  %v5153_v4 = vld [vmem:[#allocation95_spill] sm:$0xff]  ;;  %v5156_v33 = vld [vmem:[#allocation98_spill] sm:$0xff] }
 0x17c   : > { %2028 = vst [vmem:[%s3619_s20 + $0x1a8] sm:$0xff] %v1932_v7  ;;  %v1248_v27 = vmul.f32 0.5, %v1247_v3  ;;  %v1297_v5 = vmul.f32 %v4160_v63, %v1296_v19  ;;  %v1287_v54 = vmul.f32 %v2312_v1, %v1286_v40  ;;  %v4192_v6 = vpop.eup %2315  ;;  %v1276_v9 = vmul.f32 %v4182_v56, %v4143_v50  ;;  %v5152_v3 = vld [vmem:[#allocation94_spill] sm:$0xff] }
 0x17d   : > { %v1787_v53 = vmul.f32 %v3514_v13, %v1585_v42  ;;  %v1788_v35 = vmul.f32 %v3521_v49, %v1586_v18  ;;  %v1789_v59 = vmul.f32 %v3523_v23, %v1587_v51  ;;  %v1790_v31 = vmul.f32 %v3527_v38, %v1588_v17  ;;  %v5155_v18 = vld [vmem:[#allocation97_spill] sm:$0xff] }
 0x17e   : > { %v1249_v26 = vsub.f32 1.5, %v1248_v27  ;;  %v1298_v55 = vmul.f32 0.5, %v1297_v5  ;;  %v1288_v44 = vmul.f32 0.5, %v1287_v54  ;;  %v1326_v2 = vmul.f32 %v4192_v6, %v4146_v58  ;;  %v5157_v27 = vld [vmem:[#allocation99_spill] sm:$0xff] }
 0x17f   : > { %v1929_v36 = vpack.c.bf16 %v1788_v35, %v1787_v53  ;;  %v1930_v45 = vpack.c.bf16 %v1790_v31, %v1789_v59  ;;  %v1277_v0 = vmul.f32 %v4182_v56, %v1276_v9  ;;  %vm1282_vm6 = vweird.f32 %v4182_v56  ;;  %v836_v31 = vpop.xlane.xlu1 %835 }
 0x180   : > { %v1250_v37 = vmul.f32 %v2308_v43, %v1249_v26  ;;  %v1299_v21 = vsub.f32 1.5, %v1298_v55  ;;  %v1289_v60 = vsub.f32 1.5, %v1288_v44  ;;  %v1327_v14 = vmul.f32 %v4192_v6, %v1326_v2  ;;  %v5158_v26 = vld [vmem:[#allocation100_spill] sm:$0xff]  ;;  %v5159_v44 = vld [vmem:[#allocation101_spill] sm:$0xff] }
 0x181   : > { %2025 = vst [vmem:[%s3619_s20 + $0x190] sm:$0xff] %v1929_v36  ;;  %2317 = vrsqrt.f32 %v4186_v48  ;;  %v1278_v46 = vmul.f32 0.5, %v1277_v0  ;;  %vm1281_vm8 = vweird.f32 %v4143_v50  ;;  %vm1332_vm9 = vweird.f32 %v4192_v6  ;;  %v831_v0 = vpop.xlane.xlu0 %830 }
 0x182   : > { %2026 = vst [vmem:[%s3619_s20 + $0x198] sm:$0xff] %v1930_v45  ;;  %v1254_v20 = vsel %vm1253_vm4, %v2308_v43, %v1250_v37  ;;  %v1300_v12 = vmul.f32 %v4160_v63, %v1299_v21  ;;  %v1290_v34 = vmul.f32 %v2312_v1, %v1289_v60  ;;  %v5150_v43 = vld [vmem:[#allocation92_spill] sm:$0xff]  ;;  %v1328_v62 = vmul.f32 0.5, %v1327_v14  ;;  %vm1283_vm11 = vmor %vm1281_vm8, %vm1282_vm6 }
 0x183   : > { %v1581_v11 = vmul.f32 %v1254_v20, %v5148_v52  ;;  %v1582_v24 = vmul.f32 %v1254_v20, %v5149_v25  ;;  %v1583_v39 = vmul.f32 %v1254_v20, %v5150_v43  ;;  %v1584_v47 = vmul.f32 %v1254_v20, %v5151_v57  ;;  %v856_v25 = vpop.xlane.xlu2 %855  ;;  %v5160_v43 = vld [vmem:[#allocation102_spill] sm:$0xff] }
 0x184   : > { %v1304_v28 = vsel %vm1303_vm7, %v4160_v63, %v1300_v12  ;;  %v1294_v22 = vsel %vm1293_vm10, %v2312_v1, %v1290_v34  ;;  %v1279_v29 = vsub.f32 1.5, %v1278_v46  ;;  %v1329_v60 = vsub.f32 1.5, %v1328_v62 }
 0x185   : > { %v1783_v32 = vmul.f32 %v3514_v13, %v1581_v11  ;;  %v1784_v7 = vmul.f32 %v3521_v49, %v1582_v24  ;;  %v1785_v19 = vmul.f32 %v3523_v23, %v1583_v39  ;;  %v1786_v30 = vmul.f32 %v3527_v38, %v1584_v47  ;;  %v5161_v39 = vld [vmem:[#allocation103_spill] sm:$0xff]  ;;  %v5162_v47 = vld [vmem:[#allocation104_spill] sm:$0xff] }
 0x186   : > { %v1601_v40 = vmul.f32 %v1304_v28, %v5152_v3  ;;  %v1602_v42 = vmul.f32 %v1304_v28, %v5153_v4  ;;  %v1603_v16 = vmul.f32 %v1304_v28, %v5154_v41  ;;  %v1604_v63 = vmul.f32 %v1304_v28, %v5155_v18  ;;  %v5167_v41 = vld [vmem:[#allocation109_spill] sm:$0xff] }
 0x187   : > { %v4235_v1 = vpop.eup %2317  ;;  %v1927_v61 = vpack.c.bf16 %v1784_v7, %v1783_v32  ;;  %v1928_v51 = vpack.c.bf16 %v1786_v30, %v1785_v19  ;;  %v1597_v17 = vmul.f32 %v1294_v22, %v5156_v33  ;;  %v1598_v5 = vmul.f32 %v1294_v22, %v5157_v27  ;;  %v5164_v19 = vld [vmem:[#allocation106_spill] sm:$0xff] }
 0x188   : > { %v1803_v54 = vmul.f32 %v3514_v13, %v1601_v40  ;;  %v1804_v53 = vmul.f32 %v3521_v49, %v1602_v42  ;;  %v1805_v35 = vmul.f32 %v3523_v23, %v1603_v16  ;;  %v1806_v59 = vmul.f32 %v3527_v38, %v1604_v63  ;;  %v5165_v40 = vld [vmem:[#allocation107_spill] sm:$0xff]  ;;  %v5166_v42 = vld [vmem:[#allocation108_spill] sm:$0xff] }
 0x189   : > { %2023 = vst [vmem:[%s3619_s20 + $0x180] sm:$0xff] %v1927_v61  ;;  %v1599_v55 = vmul.f32 %v1294_v22, %v5158_v26  ;;  %v1600_v9 = vmul.f32 %v1294_v22, %v5159_v44  ;;  %v1799_v36 = vmul.f32 %v3514_v13, %v1597_v17  ;;  %v1800_v45 = vmul.f32 %v3521_v49, %v1598_v5  ;;  %v851_v5 = vpop.xlane.xlu1 %850 }
 0x18a   : > { %2024 = vst [vmem:[%s3619_s20 + $0x188] sm:$0xff] %v1928_v51  ;;  %v1937_v2 = vpack.c.bf16 %v1804_v53, %v1803_v54  ;;  %v1938_v37 = vpack.c.bf16 %v1806_v59, %v1805_v35  ;;  %v1280_v21 = vmul.f32 %v4182_v56, %v1279_v29  ;;  %v1316_v34 = vmul.f32 %v4235_v1, %v4186_v48 }
 0x18b   : > { %v1801_v14 = vmul.f32 %v3523_v23, %v1599_v55  ;;  %v1802_v20 = vmul.f32 %v3527_v38, %v1600_v9  ;;  %v1935_v12 = vpack.c.bf16 %v1800_v45, %v1799_v36  ;;  %v1330_v52 = vmul.f32 %v4192_v6, %v1329_v60  ;;  %v846_v9 = vpop.xlane.xlu0 %845 }
 0x18c   : > { %2033 = vst [vmem:[%s3619_s20 + $0x1d0] sm:$0xff] %v1937_v2  ;;  %v1284_v46 = vsel %vm1283_vm11, %v4182_v56, %v1280_v21  ;;  %vm1331_vm12 = vweird.f32 %v4146_v58  ;;  %v939_v11 = vmul.f32 %v5079_v15, %v4199_v8  ;;  %v5163_v56 = vld [vmem:[#allocation105_spill] sm:$0xff]  ;;  %v1317_v29 = vmul.f32 %v4235_v1, %v1316_v34 }
 0x18d   : > { %2034 = vst [vmem:[%s3619_s20 + $0x1d8] sm:$0xff] %v1938_v37  ;;  %v1936_v24 = vpack.c.bf16 %v1802_v20, %v1801_v14  ;;  %v1593_v50 = vmul.f32 %v1284_v46, %v5160_v43  ;;  %v1594_v57 = vmul.f32 %v1284_v46, %v5161_v39  ;;  %v1595_v28 = vmul.f32 %v1284_v46, %v5162_v47  ;;  %vm1333_vm13 = vmor %vm1331_vm12, %vm1332_vm9  ;;  %v871_v37 = vpop.xlane.xlu2 %870  ;;  %v5168_v14 = vld [vmem:[#allocation110_spill] sm:$0xff] }
 0x18e   : > { %2031 = vst [vmem:[%s3619_s20 + $0x1c0] sm:$0xff] %v1935_v12  ;;  %v1596_v22 = vmul.f32 %v1284_v46, %v5163_v56  ;;  %v1334_v58 = vsel %vm1333_vm13, %v4192_v6, %v1330_v52  ;;  %v4274_v8 = vadd.f32 1e-06, %v939_v11  ;;  %v1318_v61 = vmul.f32 0.5, %v1317_v29  ;;  %v5169_v12 = vld [vmem:[#allocation111_spill] sm:$0xff]  ;;  %v5170_v46 = vld [vmem:[#allocation112_spill] sm:$0xff] }
 0x18f   : > { %2032 = vst [vmem:[%s3619_s20 + $0x1c8] sm:$0xff] %v1936_v24  ;;  %v1795_v62 = vmul.f32 %v3514_v13, %v1593_v50  ;;  %v1796_v32 = vmul.f32 %v3521_v49, %v1594_v57  ;;  %v1797_v7 = vmul.f32 %v3523_v23, %v1595_v28  ;;  %v1613_v30 = vmul.f32 %v1334_v58, %v5164_v19  ;;  %v5171_v11 = vld [vmem:[#allocation113_spill] sm:$0xff] }
 0x190   : > { %v1798_v3 = vmul.f32 %v3527_v38, %v1596_v22  ;;  %v1614_v4 = vmul.f32 %v1334_v58, %v5165_v40  ;;  %v1615_v6 = vmul.f32 %v1334_v58, %v5166_v42  ;;  %v1616_v16 = vmul.f32 %v1334_v58, %v5167_v41 }
 0x191   : > { %v1933_v18 = vpack.c.bf16 %v1796_v32, %v1795_v62  ;;  %v1815_v63 = vmul.f32 %v3514_v13, %v1613_v30  ;;  %2319 = vrsqrt.f32 %v4274_v8  ;;  %v1319_v54 = vsub.f32 1.5, %v1318_v61  ;;  %v866_v29 = vpop.xlane.xlu1 %865 }
 0x192   : > { %v1934_v51 = vpack.c.bf16 %v1798_v3, %v1797_v7  ;;  %v1816_v33 = vmul.f32 %v3521_v49, %v1614_v4  ;;  %v1817_v17 = vmul.f32 %v3523_v23, %v1615_v6  ;;  %v1818_v27 = vmul.f32 %v3527_v38, %v1616_v16 }
 0x193   : > { %2029 = vst [vmem:[%s3619_s20 + $0x1b0] sm:$0xff] %v1933_v18  ;;  %vm1322_vm14 = vweird.f32 %v4235_v1  ;;  %v944_v53 = vmul.f32 %v5079_v15, %v4217_v10  ;;  %v943_v35 = vmul.f32 %v5079_v15, %v836_v31  ;;  %v942_v55 = vmul.f32 %v5079_v15, %v831_v0  ;;  %v861_v30 = vpop.xlane.xlu0 %860 }
 0x194   : > { %2030 = vst [vmem:[%s3619_s20 + $0x1b8] sm:$0xff] %v1934_v51  ;;  %v1943_v59 = vpack.c.bf16 %v1816_v33, %v1815_v63  ;;  %v1944_v26 = vpack.c.bf16 %v1818_v27, %v1817_v17  ;;  %v947_v44 = vmul.f32 %v5079_v15, %v856_v25  ;;  %v1320_v36 = vmul.f32 %v4235_v1, %v1319_v54 }
 0x195   : > { %vm1321_vm15 = vweird.f32 %v4186_v48  ;;  %v4300_v45 = vadd.f32 1e-06, %v944_v53  ;;  %v4302_v2 = vadd.f32 1e-06, %v943_v35  ;;  %v4305_v10 = vadd.f32 1e-06, %v942_v55 }
 0x196   : > { %2039 = vst [vmem:[%s3619_s20 + $0x200] sm:$0xff] %v1943_v59  ;;  %vm1323_vm0 = vmor %vm1321_vm15, %vm1322_vm14  ;;  %v946_v31 = vmul.f32 %v5079_v15, %v851_v5  ;;  %v4311_v0 = vadd.f32 1e-06, %v947_v44  ;;  %v945_v48 = vmul.f32 %v5079_v15, %v846_v9  ;;  %vm1311_vm1 = vweird.f32 %v4274_v8  ;;  %v5173_v53 = vld [vmem:[#allocation115_spill] sm:$0xff]  ;;  %v5174_v59 = vld [vmem:[#allocation116_spill] sm:$0xff] }
 0x197   : > { %v2320_v21 = vpop.eup %2319  ;;  %2040 = vst [vmem:[%s3619_s20 + $0x208] sm:$0xff] %v1944_v26  ;;  %v1324_v60 = vsel %vm1323_vm0, %v4235_v1, %v1320_v36  ;;  %2321 = vrsqrt.f32 %v4300_v45  ;;  %v950_v1 = vmul.f32 %v5079_v15, %v871_v37  ;;  %vm1361_vm3 = vweird.f32 %v4300_v45  ;;  %v5175_v55 = vld [vmem:[#allocation117_spill] sm:$0xff] }
 0x198   : > { %v1609_v20 = vmul.f32 %v1324_v60, %v5168_v14  ;;  %v1610_v34 = vmul.f32 %v1324_v60, %v5169_v12  ;;  %v1611_v52 = vmul.f32 %v1324_v60, %v5170_v46  ;;  %v1612_v25 = vmul.f32 %v1324_v60, %v5171_v11 }
 0x199   : > { %v1306_v24 = vmul.f32 %v2320_v21, %v4274_v8  ;;  %2323 = vrsqrt.f32 %v4302_v2  ;;  %v4326_v28 = vadd.f32 1e-06, %v946_v31  ;;  %v4329_v58 = vadd.f32 1e-06, %v945_v48  ;;  %v5172_v8 = vld [vmem:[#allocation114_spill] sm:$0xff] }
 0x19a   : > { %v1811_v43 = vmul.f32 %v3514_v13, %v1609_v20  ;;  %v1812_v50 = vmul.f32 %v3521_v49, %v1610_v34  ;;  %v1813_v39 = vmul.f32 %v3523_v23, %v1611_v52  ;;  %v1814_v57 = vmul.f32 %v3527_v38, %v1612_v25 }
 0x19b   : > { %v1307_v47 = vmul.f32 %v2320_v21, %v1306_v24  ;;  %2325 = vrsqrt.f32 %v4305_v10  ;;  %v4331_v7 = vadd.f32 1e-06, %v950_v1  ;;  %vm1312_vm2 = vweird.f32 %v2320_v21 }
 0x19c   : > { %v1941_v56 = vpack.c.bf16 %v1812_v50, %v1811_v43  ;;  %v1942_v22 = vpack.c.bf16 %v1814_v57, %v1813_v39  ;;  %2327 = vrsqrt.f32 %v4311_v0  ;;  %v949_v4 = vmul.f32 %v5079_v15, %v866_v29  ;;  %vm1313_vm7 = vmor %vm1311_vm1, %vm1312_vm2  ;;  %v5177_v29 = vld [vmem:[#allocation119_spill] sm:$0xff] }
 0x19d   : > { %v2322_v62 = vpop.eup %2321  ;;  %v1308_v32 = vmul.f32 0.5, %v1307_v47  ;;  %2329 = vrsqrt.f32 %v4326_v28  ;;  %vm1351_vm5 = vweird.f32 %v4302_v2  ;;  %v4351_v18 = vmul.f32 %v5079_v15, %v861_v30 }
 0x19e   : > { %2037 = vst [vmem:[%s3619_s20 + $0x1f0] sm:$0xff] %v1941_v56  ;;  %v1356_v19 = vmul.f32 %v2322_v62, %v4300_v45  ;;  %vm1362_vm4 = vweird.f32 %v2322_v62  ;;  %2331 = vrsqrt.f32 %v4329_v58  ;;  %v4361_v17 = vadd.f32 1e-06, %v949_v4  ;;  %v5176_v56 = vld [vmem:[#allocation118_spill] sm:$0xff] }
 0x19f   : > { %v4336_v3 = vpop.eup %2323  ;;  %2038 = vst [vmem:[%s3619_s20 + $0x1f8] sm:$0xff] %v1942_v22  ;;  %v1309_v40 = vsub.f32 1.5, %v1308_v32  ;;  %2333 = vrsqrt.f32 %v4331_v7  ;;  %vm1341_vm8 = vweird.f32 %v4305_v10  ;;  %vm1391_vm11 = vweird.f32 %v4311_v0  ;;  %vm1363_vm12 = vmor %vm1361_vm3, %vm1362_vm4 }
 0x1a0   : > { %v1357_v42 = vmul.f32 %v2322_v62, %v1356_v19  ;;  %v1346_v6 = vmul.f32 %v4336_v3, %v4302_v2  ;;  %vm1352_vm6 = vweird.f32 %v4336_v3  ;;  %2335 = vrsqrt.f32 %v4361_v17  ;;  %v5178_v19 = vld [vmem:[#allocation120_spill] sm:$0xff]  ;;  %v5180_v2 = vld [vmem:[#allocation122_spill] sm:$0xff] }
 0x1a1   : > { %v4345_v41 = vpop.eup %2325  ;;  %v1310_v16 = vmul.f32 %v2320_v21, %v1309_v40  ;;  %v5179_v40 = vld [vmem:[#allocation121_spill] sm:$0xff]  ;;  %vm1353_vm13 = vmor %vm1351_vm5, %vm1352_vm6  ;;  %vm1381_vm0 = vweird.f32 %v4326_v28  ;;  %vm1371_vm1 = vweird.f32 %v4329_v58  ;;  %vm1421_vm3 = vweird.f32 %v4331_v7 }
 0x1a2   : > { %v4353_v63 = vpop.eup %2327  ;;  %v1358_v61 = vmul.f32 0.5, %v1357_v42  ;;  %v1347_v51 = vmul.f32 %v4336_v3, %v1346_v6  ;;  %v1336_v33 = vmul.f32 %v4345_v41, %v4305_v10  ;;  %vm1342_vm9 = vweird.f32 %v4345_v41 }
 0x1a3   : > { %v1314_v27 = vsel %vm1313_vm7, %v2320_v21, %v1310_v16  ;;  %v1386_v5 = vmul.f32 %v4353_v63, %v4311_v0  ;;  %vm1392_vm10 = vweird.f32 %v4353_v63  ;;  %v4373_v9 = vpop.eup %2329  ;;  %vm1343_vm14 = vmor %vm1341_vm8, %vm1342_vm9  ;;  %v5184_v0 = vld [vmem:[#allocation126_spill] sm:$0xff]  ;;  %vm1411_vm7 = vweird.f32 %v4361_v17 }
 0x1a4   : > { %v1605_v54 = vmul.f32 %v1314_v27, %v5172_v8  ;;  %v1606_v35 = vmul.f32 %v1314_v27, %v5173_v53  ;;  %v1607_v26 = vmul.f32 %v1314_v27, %v5174_v59  ;;  %v1608_v44 = vmul.f32 %v1314_v27, %v5175_v55  ;;  %v4377_v60 = vpop.eup %2331  ;;  %v5181_v27 = vld [vmem:[#allocation123_spill] sm:$0xff]  ;;  %v5182_v8 = vld [vmem:[#allocation124_spill] sm:$0xff]  ;;  %v5183_v53 = vld [vmem:[#allocation125_spill] sm:$0xff] }
 0x1a5   : > { %v1359_v36 = vsub.f32 1.5, %v1358_v61  ;;  %v1348_v31 = vmul.f32 0.5, %v1347_v51  ;;  %v1337_v37 = vmul.f32 %v4345_v41, %v1336_v33  ;;  %v1387_v21 = vmul.f32 %v4353_v63, %v1386_v5  ;;  %v4383_v34 = vpop.eup %2333  ;;  %vm1393_vm15 = vmor %vm1391_vm11, %vm1392_vm10 }
 0x1a6   : > { %v1807_v48 = vmul.f32 %v3514_v13, %v1605_v54  ;;  %v1808_v14 = vmul.f32 %v3521_v49, %v1606_v35  ;;  %v1809_v20 = vmul.f32 %v3523_v23, %v1607_v26  ;;  %v1810_v12 = vmul.f32 %v3527_v38, %v1608_v44  ;;  %v4422_v59 = vpop.eup %2335 }
 0x1a7   : > { %v1360_v46 = vmul.f32 %v2322_v62, %v1359_v36  ;;  %v1349_v52 = vsub.f32 1.5, %v1348_v31  ;;  %v1338_v11 = vmul.f32 0.5, %v1337_v37  ;;  %v1388_v25 = vmul.f32 0.5, %v1387_v21 }
 0x1a8   : > { %v1939_v24 = vpack.c.bf16 %v1808_v14, %v1807_v48  ;;  %v1940_v1 = vpack.c.bf16 %v1810_v12, %v1809_v20  ;;  %v1376_v43 = vmul.f32 %v4373_v9, %v4326_v28  ;;  %v5185_v14 = vld [vmem:[#allocation127_spill] sm:$0xff]  ;;  %v5186_v12 = vld [vmem:[#allocation128_spill] sm:$0xff]  ;;  %vm1382_vm2 = vweird.f32 %v4373_v9  ;;  %v5192_v28 = vld [vmem:[#allocation134_spill] sm:$0xff] }
 0x1a9   : > { %v1364_v50 = vsel %vm1363_vm12, %v2322_v62, %v1360_v46  ;;  %v1350_v39 = vmul.f32 %v4336_v3, %v1349_v52  ;;  %v1339_v57 = vsub.f32 1.5, %v1338_v11  ;;  %v1389_v47 = vsub.f32 1.5, %v1388_v25  ;;  %v5187_v52 = vld [vmem:[#allocation129_spill] sm:$0xff]  ;;  %v5188_v25 = vld [vmem:[#allocation130_spill] sm:$0xff]  ;;  %vm1383_vm6 = vmor %vm1381_vm0, %vm1382_vm2 }
 0x1aa   : > { %2035 = vst [vmem:[%s3619_s20 + $0x1e0] sm:$0xff] %v1939_v24  ;;  %v1625_v22 = vmul.f32 %v1364_v50, %v5176_v56  ;;  %v1626_v32 = vmul.f32 %v1364_v50, %v5177_v29  ;;  %v1627_v30 = vmul.f32 %v1364_v50, %v5178_v19  ;;  %v1628_v45 = vmul.f32 %v1364_v50, %v5179_v40  ;;  %v5190_v56 = vld [vmem:[#allocation132_spill] sm:$0xff]  ;;  %v5191_v29 = vld [vmem:[#allocation133_spill] sm:$0xff] }
 0x1ab   : > { %2036 = vst [vmem:[%s3619_s20 + $0x1e8] sm:$0xff] %v1940_v1  ;;  %v1354_v62 = vsel %vm1353_vm13, %v4336_v3, %v1350_v39  ;;  %v1340_v4 = vmul.f32 %v4345_v41, %v1339_v57  ;;  %v1390_v42 = vmul.f32 %v4353_v63, %v1389_v47  ;;  %v1377_v6 = vmul.f32 %v4373_v9, %v1376_v43  ;;  %v5189_v1 = vld [vmem:[#allocation131_spill] sm:$0xff] }
 0x1ac   : > { %v1827_v16 = vmul.f32 %v3514_v13, %v1625_v22  ;;  %v1828_v61 = vmul.f32 %v3521_v49, %v1626_v32  ;;  %v1829_v51 = vmul.f32 %v3523_v23, %v1627_v30  ;;  %v1830_v33 = vmul.f32 %v3527_v38, %v1628_v45 }
 0x1ad   : > { %v1621_v3 = vmul.f32 %v1354_v62, %v5180_v2  ;;  %v1622_v5 = vmul.f32 %v1354_v62, %v5181_v27  ;;  %v1623_v54 = vmul.f32 %v1354_v62, %v5182_v8  ;;  %v1624_v35 = vmul.f32 %v1354_v62, %v5183_v53  ;;  %v886_v2 = vpop.xlane.xlu2 %885  ;;  %v876_v8 = vpop.xlane.xlu0 %875 }
 0x1ae   : > { %v1949_v26 = vpack.c.bf16 %v1828_v61, %v1827_v16  ;;  %v1950_v10 = vpack.c.bf16 %v1830_v33, %v1829_v51  ;;  %v1344_v55 = vsel %vm1343_vm14, %v4345_v41, %v1340_v4  ;;  %v1394_v44 = vsel %vm1393_vm15, %v4353_v63, %v1390_v42 }
 0x1af   : > { %v1823_v36 = vmul.f32 %v3514_v13, %v1621_v3  ;;  %v1824_v31 = vmul.f32 %v3521_v49, %v1622_v5  ;;  %v1825_v37 = vmul.f32 %v3523_v23, %v1623_v54  ;;  %v1826_v21 = vmul.f32 %v3527_v38, %v1624_v35  ;;  %v881_v3 = vpop.xlane.xlu1 %880 }
 0x1b0   : > { %2045 = vst [vmem:[%s3619_s20 + $0x230] sm:$0xff] %v1949_v26  ;;  %v1617_v48 = vmul.f32 %v1344_v55, %v5184_v0  ;;  %v1618_v20 = vmul.f32 %v1344_v55, %v5185_v14  ;;  %v1619_v46 = vmul.f32 %v1344_v55, %v5186_v12  ;;  %v1620_v41 = vmul.f32 %v1344_v55, %v5187_v52  ;;  %v5193_v0 = vld [vmem:[#allocation135_spill] sm:$0xff]  ;;  %v5194_v14 = vld [vmem:[#allocation136_spill] sm:$0xff]  ;;  %v5195_v12 = vld [vmem:[#allocation137_spill] sm:$0xff] }
 0x1b1   : > { %2046 = vst [vmem:[%s3619_s20 + $0x238] sm:$0xff] %v1950_v10  ;;  %v1947_v63 = vpack.c.bf16 %v1824_v31, %v1823_v36  ;;  %v1948_v11 = vpack.c.bf16 %v1826_v21, %v1825_v37  ;;  %v1637_v24 = vmul.f32 %v1394_v44, %v5188_v25  ;;  %v1638_v43 = vmul.f32 %v1394_v44, %v5189_v1 }
 0x1b2   : > { %v1819_v50 = vmul.f32 %v3514_v13, %v1617_v48  ;;  %v1820_v39 = vmul.f32 %v3521_v49, %v1618_v20  ;;  %v1821_v57 = vmul.f32 %v3523_v23, %v1619_v46  ;;  %v1822_v47 = vmul.f32 %v3527_v38, %v1620_v41 }
 0x1b3   : > { %2043 = vst [vmem:[%s3619_s20 + $0x220] sm:$0xff] %v1947_v63  ;;  %v1639_v22 = vmul.f32 %v1394_v44, %v5190_v56  ;;  %v1640_v32 = vmul.f32 %v1394_v44, %v5191_v29  ;;  %v1839_v19 = vmul.f32 %v3514_v13, %v1637_v24  ;;  %v1840_v30 = vmul.f32 %v3521_v49, %v1638_v43  ;;  %v5196_v56 = vld [vmem:[#allocation138_spill] sm:$0xff]  ;;  %v5197_v29 = vld [vmem:[#allocation139_spill] sm:$0xff] }
 0x1b4   : > { %2044 = vst [vmem:[%s3619_s20 + $0x228] sm:$0xff] %v1948_v11  ;;  %v1945_v40 = vpack.c.bf16 %v1820_v39, %v1819_v50  ;;  %v1946_v45 = vpack.c.bf16 %v1822_v47, %v1821_v57  ;;  %v1378_v62 = vmul.f32 0.5, %v1377_v6  ;;  %v1366_v4 = vmul.f32 %v4377_v60, %v4329_v58  ;;  %v5198_v58 = vld [vmem:[#allocation140_spill] sm:$0xff] }
 0x1b5   : > { %v1841_v42 = vmul.f32 %v3523_v23, %v1639_v22  ;;  %v1842_v16 = vmul.f32 %v3527_v38, %v1640_v32  ;;  %v1955_v61 = vpack.c.bf16 %v1840_v30, %v1839_v19  ;;  %v1416_v6 = vmul.f32 %v4383_v34, %v4331_v7 }
 0x1b6   : > { %2041 = vst [vmem:[%s3619_s20 + $0x210] sm:$0xff] %v1945_v40  ;;  %v1379_v51 = vsub.f32 1.5, %v1378_v62  ;;  %v1367_v33 = vmul.f32 %v4377_v60, %v1366_v4  ;;  %vm1372_vm4 = vweird.f32 %v4377_v60  ;;  %vm1422_vm5 = vweird.f32 %v4383_v34 }
 0x1b7   : > { %2042 = vst [vmem:[%s3619_s20 + $0x218] sm:$0xff] %v1946_v45  ;;  %v1956_v27 = vpack.c.bf16 %v1842_v16, %v1841_v42  ;;  %v1406_v5 = vmul.f32 %v4422_v59, %v4361_v17  ;;  %v1417_v35 = vmul.f32 %v4383_v34, %v1416_v6  ;;  %v4469_v26 = vadd.f32 1e-06, %v4351_v18  ;;  %vm1373_vm9 = vmor %vm1371_vm1, %vm1372_vm4  ;;  %v5200_v42 = vld [vmem:[#allocation142_spill] sm:$0xff]  ;;  %v5205_v17 = vld [vmem:[#allocation147_spill] sm:$0xff] }
 0x1b8   : > { %2051 = vst [vmem:[%s3619_s20 + $0x260] sm:$0xff] %v1955_v61  ;;  %v1380_v54 = vmul.f32 %v4373_v9, %v1379_v51  ;;  %v1368_v53 = vmul.f32 0.5, %v1367_v33  ;;  %vm1412_vm8 = vweird.f32 %v4422_v59  ;;  %v953_v55 = vmul.f32 %v5079_v15, %v886_v2  ;;  %vm1423_vm10 = vmor %vm1421_vm3, %vm1422_vm5  ;;  %v5201_v61 = vld [vmem:[#allocation143_spill] sm:$0xff]  ;;  %v5202_v2 = vld [vmem:[#allocation144_spill] sm:$0xff] }
 0x1b9   : > { %2052 = vst [vmem:[%s3619_s20 + $0x268] sm:$0xff] %v1956_v27  ;;  %v1407_v10 = vmul.f32 %v4422_v59, %v1406_v5  ;;  %v4481_v44 = vmul.f32 %v5079_v15, %v881_v3  ;;  %v1418_v31 = vmul.f32 0.5, %v1417_v35  ;;  %v4485_v37 = vmul.f32 %v5079_v15, %v876_v8  ;;  %v5203_v3 = vld [vmem:[#allocation145_spill] sm:$0xff]  ;;  %vm1413_vm11 = vmor %vm1411_vm7, %vm1412_vm8 }
 0x1ba   : > { %v1384_v18 = vsel %vm1383_vm6, %v4373_v9, %v1380_v54  ;;  %v1369_v36 = vsub.f32 1.5, %v1368_v53  ;;  %2337 = vrsqrt.f32 %v4469_v26  ;;  %v4503_v39 = vadd.f32 1e-06, %v953_v55 }
 0x1bb   : > { %v1633_v21 = vmul.f32 %v1384_v18, %v5192_v28  ;;  %v1634_v48 = vmul.f32 %v1384_v18, %v5193_v0  ;;  %v1635_v20 = vmul.f32 %v1384_v18, %v5194_v14  ;;  %v1636_v46 = vmul.f32 %v1384_v18, %v5195_v12  ;;  %v5204_v18 = vld [vmem:[#allocation146_spill] sm:$0xff] }
 0x1bc   : > { %v1370_v52 = vmul.f32 %v4377_v60, %v1369_v36  ;;  %v1419_v41 = vsub.f32 1.5, %v1418_v31  ;;  %v1408_v63 = vmul.f32 0.5, %v1407_v10  ;;  %2339 = vrsqrt.f32 %v4503_v39 }
 0x1bd   : > { %v1835_v9 = vmul.f32 %v3514_v13, %v1633_v21  ;;  %v1836_v11 = vmul.f32 %v3521_v49, %v1634_v48  ;;  %v1837_v25 = vmul.f32 %v3523_v23, %v1635_v20  ;;  %v1838_v24 = vmul.f32 %v3527_v38, %v1636_v46  ;;  %v5206_v21 = vld [vmem:[#allocation148_spill] sm:$0xff]  ;;  %v5207_v48 = vld [vmem:[#allocation149_spill] sm:$0xff]  ;;  %v901_v46 = vpop.xlane.xlu2 %900 }
 0x1be   : > { %v1374_v1 = vsel %vm1373_vm9, %v4377_v60, %v1370_v52  ;;  %v1420_v43 = vmul.f32 %v4383_v34, %v1419_v41  ;;  %v1409_v50 = vsub.f32 1.5, %v1408_v63  ;;  %v5199_v60 = vld [vmem:[#allocation141_spill] sm:$0xff]  ;;  %v896_v52 = vpop.xlane.xlu1 %895  ;;  %vm1401_vm13 = vweird.f32 %v4469_v26 }
 0x1bf   : > { %v1953_v57 = vpack.c.bf16 %v1836_v11, %v1835_v9  ;;  %v1954_v47 = vpack.c.bf16 %v1838_v24, %v1837_v25  ;;  %v1629_v22 = vmul.f32 %v1374_v1, %v5196_v56  ;;  %v1630_v32 = vmul.f32 %v1374_v1, %v5197_v29 }
 0x1c0   : > { %v1631_v19 = vmul.f32 %v1374_v1, %v5198_v58  ;;  %v1632_v30 = vmul.f32 %v1374_v1, %v5199_v60  ;;  %v1424_v40 = vsel %vm1423_vm10, %v4383_v34, %v1420_v43  ;;  %v1410_v45 = vmul.f32 %v4422_v59, %v1409_v50  ;;  %v2338_v7 = vpop.eup %2337  ;;  %v891_v1 = vpop.xlane.xlu0 %890 }
 0x1c1   : > { %2049 = vst [vmem:[%s3619_s20 + $0x250] sm:$0xff] %v1953_v57  ;;  %v1831_v62 = vmul.f32 %v3514_v13, %v1629_v22  ;;  %v1832_v4 = vmul.f32 %v3521_v49, %v1630_v32  ;;  %v1649_v16 = vmul.f32 %v1424_v40, %v5200_v42  ;;  %v1650_v51 = vmul.f32 %v1424_v40, %v5201_v61  ;;  %v5209_v42 = vld [vmem:[#allocation151_spill] sm:$0xff]  ;;  %v5210_v61 = vld [vmem:[#allocation152_spill] sm:$0xff] }
 0x1c2   : > { %2050 = vst [vmem:[%s3619_s20 + $0x258] sm:$0xff] %v1954_v47  ;;  %v1833_v33 = vmul.f32 %v3523_v23, %v1631_v19  ;;  %v1834_v6 = vmul.f32 %v3527_v38, %v1632_v30  ;;  %v1651_v34 = vmul.f32 %v1424_v40, %v5202_v2  ;;  %v1652_v27 = vmul.f32 %v1424_v40, %v5203_v3  ;;  %v2340_v32 = vpop.eup %2339 }
 0x1c3   : > { %v1951_v5 = vpack.c.bf16 %v1832_v4, %v1831_v62  ;;  %v1851_v8 = vmul.f32 %v3514_v13, %v1649_v16  ;;  %v1852_v54 = vmul.f32 %v3521_v49, %v1650_v51  ;;  %v1414_v53 = vsel %vm1413_vm11, %v4422_v59, %v1410_v45  ;;  %v5208_v62 = vld [vmem:[#allocation150_spill] sm:$0xff] }
 0x1c4   : > { %v1952_v35 = vpack.c.bf16 %v1834_v6, %v1833_v33  ;;  %v1853_v10 = vmul.f32 %v3523_v23, %v1651_v34  ;;  %v1854_v55 = vmul.f32 %v3527_v38, %v1652_v27  ;;  %v1645_v36 = vmul.f32 %v1414_v53, %v5204_v18 }
 0x1c5   : > { %2047 = vst [vmem:[%s3619_s20 + $0x240] sm:$0xff] %v1951_v5  ;;  %v1961_v31 = vpack.c.bf16 %v1852_v54, %v1851_v8  ;;  %v1646_v28 = vmul.f32 %v1414_v53, %v5205_v17  ;;  %v1647_v0 = vmul.f32 %v1414_v53, %v5206_v21  ;;  %v1648_v14 = vmul.f32 %v1414_v53, %v5207_v48 }
 0x1c6   : > { %2048 = vst [vmem:[%s3619_s20 + $0x248] sm:$0xff] %v1952_v35  ;;  %v1962_v20 = vpack.c.bf16 %v1854_v55, %v1853_v10  ;;  %v1847_v59 = vmul.f32 %v3514_v13, %v1645_v36  ;;  %v1396_v12 = vmul.f32 %v2338_v7, %v4469_v26  ;;  %v4549_v25 = vadd.f32 1e-06, %v4481_v44  ;;  %v5211_v26 = vld [vmem:[#allocation153_spill] sm:$0xff] }
 0x1c7   : > { %2057 = vst [vmem:[%s3619_s20 + $0x290] sm:$0xff] %v1961_v31  ;;  %v1848_v41 = vmul.f32 %v3521_v49, %v1646_v28  ;;  %v1849_v63 = vmul.f32 %v3523_v23, %v1647_v0  ;;  %v1850_v9 = vmul.f32 %v3527_v38, %v1648_v14  ;;  %v4552_v24 = vadd.f32 1e-06, %v4485_v37 }
 0x1c8   : > { %2058 = vst [vmem:[%s3619_s20 + $0x298] sm:$0xff] %v1962_v20  ;;  %v1397_v11 = vmul.f32 %v2338_v7, %v1396_v12  ;;  %v956_v57 = vmul.f32 %v5079_v15, %v901_v46  ;;  %v955_v47 = vmul.f32 %v5079_v15, %v896_v52  ;;  %2341 = vrsqrt.f32 %v4549_v25  ;;  %v5212_v52 = vld [vmem:[#allocation154_spill] sm:$0xff] }
 0x1c9   : > { %v1959_v43 = vpack.c.bf16 %v1848_v41, %v1847_v59  ;;  %v1960_v50 = vpack.c.bf16 %v1850_v9, %v1849_v63  ;;  %2343 = vrsqrt.f32 %v4552_v24  ;;  %v954_v37 = vmul.f32 %v5079_v15, %v891_v1  ;;  %v5213_v63 = vld [vmem:[#allocation155_spill] sm:$0xff]  ;;  %v5215_v1 = vld [vmem:[#allocation157_spill] sm:$0xff] }
 0x1ca   : > { %v1398_v56 = vmul.f32 0.5, %v1397_v11  ;;  %v4559_v22 = vadd.f32 1e-06, %v956_v57  ;;  %v4561_v44 = vadd.f32 1e-06, %v955_v47  ;;  %vm1402_vm12 = vweird.f32 %v2338_v7 }
 0x1cb   : > { %2055 = vst [vmem:[%s3619_s20 + $0x280] sm:$0xff] %v1959_v43  ;;  %v4566_v58 = vadd.f32 1e-06, %v954_v37  ;;  %v1446_v60 = vmul.f32 %v2340_v32, %v4503_v39  ;;  %vm1403_vm14 = vmor %vm1401_vm13, %vm1402_vm12  ;;  %vm1451_vm15 = vweird.f32 %v4503_v39  ;;  %vm1441_vm0 = vweird.f32 %v4549_v25  ;;  %v5214_v39 = vld [vmem:[#allocation156_spill] sm:$0xff] }
 0x1cc   : > { %2056 = vst [vmem:[%s3619_s20 + $0x288] sm:$0xff] %v1960_v50  ;;  %v1399_v29 = vsub.f32 1.5, %v1398_v56  ;;  %2345 = vrsqrt.f32 %v4559_v22  ;;  %vm1431_vm1 = vweird.f32 %v4552_v24  ;;  %vm1452_vm2 = vweird.f32 %v2340_v32 }
 0x1cd   : > { %2347 = vrsqrt.f32 %v4561_v44  ;;  %v1447_v40 = vmul.f32 %v2340_v32, %v1446_v60  ;;  %vm1453_vm4 = vmor %vm1451_vm15, %vm1452_vm2  ;;  %vm1481_vm7 = vweird.f32 %v4559_v22  ;;  %vm1471_vm12 = vweird.f32 %v4561_v44 }
 0x1ce   : > { %v1400_v19 = vmul.f32 %v2338_v7, %v1399_v29  ;;  %2349 = vrsqrt.f32 %v4566_v58  ;;  %v2342_v30 = vpop.eup %2341  ;;  %vm1461_vm15 = vweird.f32 %v4566_v58 }
 0x1cf   : > { %v2344_v45 = vpop.eup %2343  ;;  %v1448_v6 = vmul.f32 0.5, %v1447_v40  ;;  %v1436_v2 = vmul.f32 %v2342_v30, %v4549_v25  ;;  %vm1442_vm3 = vweird.f32 %v2342_v30 }
 0x1d0   : > { %v1404_v15 = vsel %vm1403_vm14, %v2338_v7, %v1400_v19  ;;  %v1426_v34 = vmul.f32 %v2344_v45, %v4552_v24  ;;  %vm1432_vm5 = vweird.f32 %v2344_v45  ;;  %vm1443_vm9 = vmor %vm1441_vm0, %vm1442_vm3 }
 0x1d1   : > { %v1641_v4 = vmul.f32 %v1404_v15, %v5208_v62  ;;  %v1642_v16 = vmul.f32 %v1404_v15, %v5209_v42  ;;  %v1643_v51 = vmul.f32 %v1404_v15, %v5210_v61  ;;  %v1644_v33 = vmul.f32 %v1404_v15, %v5211_v26  ;;  %vm1433_vm10 = vmor %vm1431_vm1, %vm1432_vm5  ;;  %v5216_v42 = vld [vmem:[#allocation158_spill] sm:$0xff]  ;;  %v5217_v61 = vld [vmem:[#allocation159_spill] sm:$0xff] }
 0x1d2   : > { %v4581_v7 = vpop.eup %2345  ;;  %v1449_v53 = vsub.f32 1.5, %v1448_v6  ;;  %v1437_v35 = vmul.f32 %v2342_v30, %v1436_v2  ;;  %v1427_v10 = vmul.f32 %v2344_v45, %v1426_v34  ;;  %v5218_v26 = vld [vmem:[#allocation160_spill] sm:$0xff]  ;;  %v5219_v6 = vld [vmem:[#allocation161_spill] sm:$0xff]  ;;  %v5220_v34 = vld [vmem:[#allocation162_spill] sm:$0xff] }
 0x1d3   : > { %v1843_v3 = vmul.f32 %v3514_v13, %v1641_v4  ;;  %v1844_v27 = vmul.f32 %v3521_v49, %v1642_v16  ;;  %v1845_v5 = vmul.f32 %v3523_v23, %v1643_v51  ;;  %v1846_v8 = vmul.f32 %v3527_v38, %v1644_v33  ;;  %v4587_v54 = vpop.eup %2347 }
 0x1d4   : > { %v4589_v55 = vpop.eup %2349  ;;  %v1476_v31 = vmul.f32 %v4581_v7, %v4559_v22  ;;  %v1450_v17 = vmul.f32 %v2340_v32, %v1449_v53  ;;  %v1438_v28 = vmul.f32 0.5, %v1437_v35  ;;  %v1428_v21 = vmul.f32 0.5, %v1427_v10  ;;  %v5223_v53 = vld [vmem:[#allocation165_spill] sm:$0xff] }
 0x1d5   : > { %v1957_v18 = vpack.c.bf16 %v1844_v27, %v1843_v3  ;;  %v1958_v36 = vpack.c.bf16 %v1846_v8, %v1845_v5  ;;  %v1466_v0 = vmul.f32 %v4587_v54, %v4561_v44  ;;  %vm1482_vm6 = vweird.f32 %v4581_v7  ;;  %v5221_v27 = vld [vmem:[#allocation163_spill] sm:$0xff]  ;;  %v5222_v5 = vld [vmem:[#allocation164_spill] sm:$0xff] }
 0x1d6   : > { %v1477_v48 = vmul.f32 %v4581_v7, %v1476_v31  ;;  %v1456_v14 = vmul.f32 %v4589_v55, %v4566_v58  ;;  %v1454_v20 = vsel %vm1453_vm4, %v2340_v32, %v1450_v17  ;;  %v1439_v59 = vsub.f32 1.5, %v1438_v28  ;;  %vm1483_vm11 = vmor %vm1481_vm7, %vm1482_vm6 }
 0x1d7   : > { %2053 = vst [vmem:[%s3619_s20 + $0x270] sm:$0xff] %v1957_v18  ;;  %v1429_v12 = vsub.f32 1.5, %v1428_v21  ;;  %v1467_v46 = vmul.f32 %v4587_v54, %v1466_v0  ;;  %v1661_v41 = vmul.f32 %v1454_v20, %v5212_v52  ;;  %v1662_v9 = vmul.f32 %v1454_v20, %v5213_v63 }
 0x1d8   : > { %2054 = vst [vmem:[%s3619_s20 + $0x278] sm:$0xff] %v1958_v36  ;;  %v1663_v11 = vmul.f32 %v1454_v20, %v5214_v39  ;;  %v1664_v43 = vmul.f32 %v1454_v20, %v5215_v1  ;;  %vm1472_vm8 = vweird.f32 %v4587_v54  ;;  %v1440_v50 = vmul.f32 %v2342_v30, %v1439_v59  ;;  %v5227_v1 = vld [vmem:[#allocation169_spill] sm:$0xff] }
 0x1d9   : > { %v1430_v57 = vmul.f32 %v2344_v45, %v1429_v12  ;;  %v1478_v47 = vmul.f32 0.5, %v1477_v48  ;;  %v1468_v56 = vmul.f32 0.5, %v1467_v46  ;;  %v1863_v37 = vmul.f32 %v3514_v13, %v1661_v41  ;;  %v5224_v41 = vld [vmem:[#allocation166_spill] sm:$0xff]  ;;  %vm1473_vm13 = vmor %vm1471_vm12, %vm1472_vm8 }
 0x1da   : > { %v1864_v29 = vmul.f32 %v3521_v49, %v1662_v9  ;;  %v1865_v32 = vmul.f32 %v3523_v23, %v1663_v11  ;;  %v1866_v19 = vmul.f32 %v3527_v38, %v1664_v43  ;;  %v1444_v60 = vsel %vm1443_vm9, %v2342_v30, %v1440_v50  ;;  %v5225_v9 = vld [vmem:[#allocation167_spill] sm:$0xff]  ;;  %v5226_v11 = vld [vmem:[#allocation168_spill] sm:$0xff] }
 0x1db   : > { %v1434_v15 = vsel %vm1433_vm10, %v2344_v45, %v1430_v57  ;;  %v1479_v25 = vsub.f32 1.5, %v1478_v47  ;;  %v1469_v40 = vsub.f32 1.5, %v1468_v56  ;;  %v1657_v16 = vmul.f32 %v1444_v60, %v5216_v42  ;;  %v5228_v56 = vld [vmem:[#allocation170_spill] sm:$0xff] }
 0x1dc   : > { %v1967_v62 = vpack.c.bf16 %v1864_v29, %v1863_v37  ;;  %v1968_v4 = vpack.c.bf16 %v1866_v19, %v1865_v32  ;;  %v1658_v51 = vmul.f32 %v1444_v60, %v5217_v61  ;;  %v1659_v33 = vmul.f32 %v1444_v60, %v5218_v26  ;;  %v5229_v29 = vld [vmem:[#allocation171_spill] sm:$0xff]  ;;  %v5230_v19 = vld [vmem:[#allocation172_spill] sm:$0xff] }
 0x1dd   : > { %v1660_v2 = vmul.f32 %v1444_v60, %v5219_v6  ;;  %v1653_v3 = vmul.f32 %v1434_v15, %v5220_v34  ;;  %v1654_v24 = vmul.f32 %v1434_v15, %v5221_v27  ;;  %v1859_v30 = vmul.f32 %v3514_v13, %v1657_v16 }
 0x1de   : > { %2063 = vst [vmem:[%s3619_s20 + $0x2c0] sm:$0xff] %v1967_v62  ;;  %v1860_v45 = vmul.f32 %v3521_v49, %v1658_v51  ;;  %v1655_v8 = vmul.f32 %v1434_v15, %v5222_v5  ;;  %v1656_v35 = vmul.f32 %v1434_v15, %v5223_v53  ;;  %v1861_v10 = vmul.f32 %v3523_v23, %v1659_v33  ;;  %v5231_v15 = vld [vmem:[#allocation173_spill] sm:$0xff] }
 0x1df   : > { %2064 = vst [vmem:[%s3619_s20 + $0x2c8] sm:$0xff] %v1968_v4  ;;  %v1862_v18 = vmul.f32 %v3527_v38, %v1660_v2  ;;  %v1855_v36 = vmul.f32 %v3514_v13, %v1653_v3  ;;  %v1856_v31 = vmul.f32 %v3521_v49, %v1654_v24  ;;  %v1480_v0 = vmul.f32 %v4581_v7, %v1479_v25  ;;  %v5232_v2 = vld [vmem:[#allocation174_spill] sm:$0xff]  ;;  %v5233_v3 = vld [vmem:[#allocation175_spill] sm:$0xff]  ;;  %v5234_v24 = vld [vmem:[#allocation176_spill] sm:$0xff] }
 0x1e0   : > { %v1965_v17 = vpack.c.bf16 %v1860_v45, %v1859_v30  ;;  %v1857_v28 = vmul.f32 %v3523_v23, %v1655_v8  ;;  %v1858_v21 = vmul.f32 %v3527_v38, %v1656_v35  ;;  %v1470_v59 = vmul.f32 %v4587_v54, %v1469_v40  ;;  %v5235_v30 = vld [vmem:[#allocation177_spill] sm:$0xff] }
 0x1e1   : > { %v1966_v48 = vpack.c.bf16 %v1862_v18, %v1861_v10  ;;  %v1963_v20 = vpack.c.bf16 %v1856_v31, %v1855_v36  ;;  %v1457_v12 = vmul.f32 %v4589_v55, %v1456_v14  ;;  %v1484_v52 = vsel %vm1483_vm11, %v4581_v7, %v1480_v0 }
 0x1e2   : > { %2061 = vst [vmem:[%s3619_s20 + $0x2b0] sm:$0xff] %v1965_v17  ;;  %v1964_v46 = vpack.c.bf16 %v1858_v21, %v1857_v28  ;;  %v1673_v63 = vmul.f32 %v1484_v52, %v5224_v41  ;;  %v1674_v39 = vmul.f32 %v1484_v52, %v5225_v9  ;;  %v1675_v22 = vmul.f32 %v1484_v52, %v5226_v11 }
 0x1e3   : > { %2062 = vst [vmem:[%s3619_s20 + $0x2b8] sm:$0xff] %v1966_v48  ;;  %v1676_v43 = vmul.f32 %v1484_v52, %v5227_v1  ;;  %v1474_v14 = vsel %vm1473_vm13, %v4587_v54, %v1470_v59  ;;  %v1458_v50 = vmul.f32 0.5, %v1457_v12  ;;  %vm1462_vm14 = vweird.f32 %v4589_v55 }
 0x1e4   : > { %2059 = vst [vmem:[%s3619_s20 + $0x2a0] sm:$0xff] %v1963_v20  ;;  %v1875_v44 = vmul.f32 %v3514_v13, %v1673_v63  ;;  %v1876_v7 = vmul.f32 %v3521_v49, %v1674_v39  ;;  %v1877_v57 = vmul.f32 %v3523_v23, %v1675_v22  ;;  %v1669_v37 = vmul.f32 %v1474_v14, %v5228_v56  ;;  %vm1463_vm0 = vmor %vm1461_vm15, %vm1462_vm14 }
 0x1e5   : > { %2060 = vst [vmem:[%s3619_s20 + $0x2a8] sm:$0xff] %v1964_v46  ;;  %v1878_v47 = vmul.f32 %v3527_v38, %v1676_v43  ;;  %v1670_v32 = vmul.f32 %v1474_v14, %v5229_v29  ;;  %v1671_v60 = vmul.f32 %v1474_v14, %v5230_v19  ;;  %v1672_v54 = vmul.f32 %v1474_v14, %v5231_v15 }
 0x1e6   : > { %v1973_v25 = vpack.c.bf16 %v1876_v7, %v1875_v44  ;;  %v1459_v62 = vsub.f32 1.5, %v1458_v50  ;;  %v1871_v4 = vmul.f32 %v3514_v13, %v1669_v37 }
 0x1e7   : > { %v1974_v40 = vpack.c.bf16 %v1878_v47, %v1877_v57  ;;  %v1872_v42 = vmul.f32 %v3521_v49, %v1670_v32  ;;  %v1873_v16 = vmul.f32 %v3523_v23, %v1671_v60  ;;  %v1874_v61 = vmul.f32 %v3527_v38, %v1672_v54 }
 0x1e8   : > { %2069 = vst [vmem:[%s3619_s20 + $0x2f0] sm:$0xff] %v1973_v25  ;;  %v1460_v51 = vmul.f32 %v4589_v55, %v1459_v62 }
 0x1e9   : > { %2070 = vst [vmem:[%s3619_s20 + $0x2f8] sm:$0xff] %v1974_v40  ;;  %v1971_v26 = vpack.c.bf16 %v1872_v42, %v1871_v4  ;;  %v1972_v33 = vpack.c.bf16 %v1874_v61, %v1873_v16 }
 0x1ea   : > { %v1464_v6 = vsel %vm1463_vm0, %v4589_v55, %v1460_v51 }
 0x1eb   : > { %2067 = vst [vmem:[%s3619_s20 + $0x2e0] sm:$0xff] %v1971_v26  ;;  %v1665_v34 = vmul.f32 %v1464_v6, %v5232_v2  ;;  %v1666_v27 = vmul.f32 %v1464_v6, %v5233_v3  ;;  %v1667_v58 = vmul.f32 %v1464_v6, %v5234_v24  ;;  %v1668_v45 = vmul.f32 %v1464_v6, %v5235_v30 }
 0x1ec   : > { %2068 = vst [vmem:[%s3619_s20 + $0x2e8] sm:$0xff] %v1972_v33 }
 0x1ed   : > { %v1867_v5 = vmul.f32 %v3514_v13, %v1665_v34  ;;  %v1868_v55 = vmul.f32 %v3521_v49, %v1666_v27  ;;  %v1869_v8 = vmul.f32 %v3523_v23, %v1667_v58  ;;  %v1870_v53 = vmul.f32 %v3527_v38, %v1668_v45 }
 0x1ef   : > { %v1969_v35 = vpack.c.bf16 %v1868_v55, %v1867_v5  ;;  %v1970_v10 = vpack.c.bf16 %v1870_v53, %v1869_v8 }
 0x1f1   : > { %2065 = vst [vmem:[%s3619_s20 + $0x2d0] sm:$0xff] %v1969_v35 }
 0x1f2   : > { %2066 = vst [vmem:[%s3619_s20 + $0x2d8] sm:$0xff] %v1970_v10 }
 0x1f3   : > { %2438 = shalt.err (!%p2435_p8)
}
 0x1f4   : > { %s2487_s3 = smov 256   ;;  %s2488_s5 = smov 16  }
 0x1f5   : > { %2197 = dma.vmem_to_hbm [thread:$0]  (%p2556_p11), %s2086_s16, 12288, %s2088_s17, %s2072_s24, %s2487_s3, %s2487_s3, %s2488_s5  }
 0x1f6 PF: > { %s2102_s6 = sand.u32 1, %s2469_s9   ;;  %p5236_p9 = scmp.ge.s32.totalorder %s2481_s12, 2 }
 0x1f7   : > { %s2103_s7 = scalar_lea.sflag [#allocation4], %s2102_s6 }
 0x1f8   : > { %p2208_p10 = pnand %p5236_p9, %p2560_p12 }
 0x1fa   : > { %p2209_p1 = pneg %p2208_p10 }
 0x1fc   : > { %2464 = dma.done.wait (%p2209_p1), %s2103_s7, 12288  }
 0x1fd   : > { %2466 = vsyncadd (%p2209_p1), %s2103_s7, 4294955008  ;;  %p16_p2 = scmp.ge.s32.totalorder %s2529_s15, 4   ;;  %s5237_s9 = smov %s2473_s10 }
 0x1fe   : > { %s5238_s10 = smov %s2477_s11  ;;  %s5239_s11 = smov %s2541_s18 }
 0x1ff   : > { %s5240_s12 = smov %s2529_s15  ;;  %18 = sbr.rel (!%p16_p2) target bundleno = 6 (0x6), region = 77 }
 0x204   :  { %2109 = vsyncpa [#allocation3], 1 }
 0x205   :  { %2111 = vsyncpa [#allocation3 + $0x1], 1 }
 0x206   :  { %2112 = vsyncpa [#allocation6], 1 }
 0x207   :  { %2113 = vsyncpa [#allocation4], 1 }
 0x208   :  { %2115 = vsyncpa [#allocation4 + $0x1], 1 }

</bundles_post_ra>
